<compile_context>
chip_gen: v7x
topology: tpu7x:2x2x1
jax: 0.10.0
libtpu: 0.0.40
codegen_flags: <defaults>
</compile_context>

<pallas_src>
import functools

import numpy as np

import jax
import jax.numpy as jnp
from jax import lax
from jax.experimental import pallas as pl
from jax.experimental.pallas import tpu as pltpu

NEG_SLOPE = 0.2   # LeakyReLU slope used by the PyTorch module
TAPS = 16         # 4x4 conv kernel taps
KS = 4            # conv kernel size
PAD = 1           # conv padding
OUT_LANES = 128   # lane-dense final store width


# ----------------------------------------------------------------------------
# Fused Pallas kernel: all four conv layers, bias adds and LeakyReLUs.
# ----------------------------------------------------------------------------
def _fused_kernel(patches0_ref, w0_ref, b0_ref,
                  g1_ref, w1_ref, b1_ref,
                  g2_ref, w2_ref, b2_ref,
                  g3_ref, w3_ref, b3_ref,
                  out_ref, *, n, rows0_img, blk1, blk2, m2_rows, blk3):
    f32 = jnp.float32

    def leaky(v):
        return jnp.where(v >= 0.0, v, NEG_SLOPE * v)

    # ---- layer 0: host-built im2col patches -> one MXU matmul ----------------
    acc0 = jnp.dot(patches0_ref[...], w0_ref[...], preferred_element_type=f32)
    act0 = leaky(acc0 + b0_ref[...])                       # (n*rows0_img, C0p) f32

    # ---- layer 1: per-image 0/1 gather, batched deep-K conv matmul ----------
    act0_bf = act0.astype(jnp.bfloat16)                    # one cast, exact selection after
    g1 = g1_ref[...]                                       # (TAPS*blk1, rows0_img) bf16
    pv1 = []
    for img in range(n):
        a_img = act0_bf[img * rows0_img:(img + 1) * rows0_img, :]
        p = jnp.dot(g1, a_img, preferred_element_type=f32)
        pv1.append(p.astype(jnp.bfloat16))                 # (TAPS*blk1, C0p) bf16, exact
    # Wide, tap-major patch matrix (n*blk1, TAPS*C0p): tile-aligned slices
    # (blk1 multiple of 16 rows) + 128-lane-granular concats -> no relayout.
    cols1 = []
    for t in range(TAPS):
        blocks = [pv1[img][t * blk1:(t + 1) * blk1, :] for img in range(n)]
        cols1.append(blocks[0] if n == 1 else jnp.concatenate(blocks, axis=0))
    patches1 = jnp.concatenate(cols1, axis=1)              # (n*blk1, TAPS*C0p) bf16
    acc1 = jnp.dot(patches1, w1_ref[...], preferred_element_type=f32)
    act1 = leaky(acc1 + b1_ref[...])                       # (n*blk1, C1p) f32

    # ---- layer 2: batched gather, deep-K conv matmul -------------------------
    act1_bf = act1.astype(jnp.bfloat16)
    pv2 = jnp.dot(g2_ref[...], act1_bf,
                  preferred_element_type=f32).astype(jnp.bfloat16)   # (TAPS*blk2, C1p)
    patches2 = jnp.concatenate(
        [pv2[t * blk2:(t + 1) * blk2, :] for t in range(TAPS)], axis=1)
    acc2 = jnp.dot(patches2, w2_ref[...], preferred_element_type=f32)
    act2 = leaky(acc2[:m2_rows, :] + b2_ref[...])          # (m2_rows, C2p) f32

    # ---- layer 3 (cout=1): f32 gather + compact weight, VPU mult + reduce ----
    # Kept entirely in f32 (gather is exact selection; weight is 16 KiB).
    pv3 = jnp.dot(g3_ref[...], act2, preferred_element_type=f32)     # (TAPS*blk3, C2p)
    patches3 = jnp.concatenate(
        [pv3[t * blk3:(t + 1) * blk3, :] for t in range(TAPS)], axis=1)  # (blk3, TAPS*C2p)
    out_vec = jnp.sum(patches3 * w3_ref[...], axis=1, keepdims=True)     # (blk3, 1)
    out_ref[...] = (out_vec + b3_ref[...]).astype(out_ref.dtype)         # lane-dense (blk3,128)


# ----------------------------------------------------------------------------
# Host-side packing helpers (run once, outside the kernel)
# ----------------------------------------------------------------------------
def _conv_out(size, stride):
    return (size + 2 * PAD - KS) // stride + 1


def _round_up(v, m):
    return (v + m - 1) // m * m


def _im2col(x_nhwc, stride):
    """4x4 / pad=1 patch extraction, tap-major ((kh,kw) outer, channel inner)."""
    x = jnp.pad(x_nhwc, ((0, 0), (1, 1), (1, 1), (0, 0)))
    n, hp, wp, c = x.shape
    oh = (hp - KS) // stride + 1
    ow = (wp - KS) // stride + 1
    pieces = []
    for i in range(KS):
        for j in range(KS):
            pieces.append(x[:, i:i + stride * oh:stride, j:j + stride * ow:stride, :])
    patches = jnp.concatenate(pieces, axis=-1)              # (n, oh, ow, 16*c)
    return patches.reshape(n * oh * ow, TAPS * c)


def _pack_weight(w, cin_pad, cout_pad):
    """OIHW (Cout,Cin,4,4) -> (16*cin_pad, cout_pad) bf16, tap-major, cin inner."""
    cout, cin, kh, kw = w.shape
    wt = jnp.transpose(w, (2, 3, 1, 0)).reshape(kh * kw, cin, cout)
    wt = jnp.pad(wt, ((0, 0), (0, cin_pad - cin), (0, cout_pad - cout)))
    return wt.reshape(kh * kw * cin_pad, cout_pad).astype(jnp.bfloat16)


def _pack_final_weight(w, cin_pad):
    """cout=1 conv weight -> compact (1, 16*cin_pad) f32, tap-major, cin inner."""
    cout, cin, kh, kw = w.shape
    assert cout == 1
    wt = jnp.transpose(w[0], (1, 2, 0)).reshape(kh * kw, cin)     # (16, cin)
    wt = jnp.pad(wt, ((0, 0), (0, cin_pad - cin)))
    return wt.reshape(1, kh * kw * cin_pad).astype(jnp.float32)


def _pad_bias(b, cout_pad):
    return jnp.pad(b, (0, cout_pad - b.shape[0])).reshape(1, cout_pad).astype(jnp.float32)


def _gather_matrix(n_img, h, w, stride, blk, dtype):
    """0/1 gather matrix of shape (16*blk, n_img*h*w).

    Row t*blk + (img*oh*ow + oy*ow + ox) selects the flattened (img, y, x)
    input row feeding tap t of that output position; rows are zero for conv
    zero-padding and for block-padding rows (m >= n_img*oh*ow)."""
    oh, ow = _conv_out(h, stride), _conv_out(w, stride)
    assert n_img * oh * ow <= blk
    g = np.zeros((TAPS, blk, n_img * h * w), np.float32)
    for i in range(KS):
        for j in range(KS):
            t = i * KS + j
            for img in range(n_img):
                for oy in range(oh):
                    for ox in range(ow):
                        y = stride * oy - PAD + i
                        x = stride * ox - PAD + j
                        if 0 <= y < h and 0 <= x < w:
                            g[t, img * oh * ow + oy * ow + ox,
                              img * h * w + y * w + x] = 1.0
    return jnp.asarray(g.reshape(TAPS * blk, n_img * h * w), dtype)


# ----------------------------------------------------------------------------
# Build the fused forward for a fixed input shape / parameter set
# ----------------------------------------------------------------------------
def make_lr_discriminator(params, x_shape):
    n, c_in, in_h, in_w = x_shape
    assert len(params) == 4, "LRDiscriminator has 4 conv layers"
    (wt0, bs0), (wt1, bs1), (wt2, bs2), (wt3, bs3) = params

    # spatial sizes through the network
    oh0, ow0 = _conv_out(in_h, 2), _conv_out(in_w, 2)
    oh1, ow1 = _conv_out(oh0, 2), _conv_out(ow0, 2)
    oh2, ow2 = _conv_out(oh1, 2), _conv_out(ow1, 2)
    oh3, ow3 = _conv_out(oh2, 1), _conv_out(ow2, 1)

    c0, c1, c2, c3 = wt0.shape[0], wt1.shape[0], wt2.shape[0], wt3.shape[0]
    assert c3 == 1, "final conv must have a single output channel"
    c0p = _round_up(c0, 128)
    c1p = _round_up(c1, 128)
    c2p = _round_up(c2, 128)

    rows0_img = oh0 * ow0                     # per-image layer-0 rows
    blk1 = oh1 * ow1                          # per-image, per-tap block (layer 1)
    m1_rows = n * blk1                        # batched layer-1 rows
    m2_rows = n * oh2 * ow2                   # batched layer-2 rows
    blk2 = _round_up(m2_rows, 16)             # per-tap block (layer 2), bf16 tile
    m3_rows = n * oh3 * ow3                   # batched final rows
    blk3 = _round_up(m3_rows, 8)              # per-tap block (layer 3), f32 tile

    # validated-shape guards (see correctness concerns in the review)
    assert rows0_img % 16 == 0, "per-image layer-0 rows must be 16-aligned (bf16 slicing)"
    assert blk1 % 16 == 0, "per-image layer-1 output rows must be 16-aligned"
    assert m2_rows % 8 == 0, "batched layer-2 rows must be 8-aligned (f32 slicing)"

    consts = [
        _pack_weight(wt0, c_in, c0p),                         # (16*c_in, c0p) bf16
        _pad_bias(bs0, c0p),                                  # (1, c0p) f32
        _gather_matrix(1, oh0, ow0, 2, blk1, jnp.bfloat16),   # per-image layer-1 gather
        _pack_weight(wt1, c0p, c1p),                          # (16*c0p, c1p) bf16
        _pad_bias(bs1, c1p),
        _gather_matrix(n, oh1, ow1, 2, blk2, jnp.bfloat16),   # batched layer-2 gather
        _pack_weight(wt2, c1p, c2p),                          # (16*c1p, c2p) bf16
        _pad_bias(bs2, c2p),
        _gather_matrix(n, oh2, ow2, 1, blk3, jnp.float32),    # batched final gather (f32)
        _pack_final_weight(wt3, c2p),                         # compact (1, 16*c2p) f32
        jnp.full((1, OUT_LANES), bs3[0], jnp.float32),        # final bias, lane-broadcast
    ]

    kernel = functools.partial(
        _fused_kernel, n=n, rows0_img=rows0_img,
        blk1=blk1, blk2=blk2, m2_rows=m2_rows, blk3=blk3)

    # advisory cost estimate
    flops = 2 * (n * rows0_img) * (TAPS * c_in) * c0p            # layer 0
    flops += n * 2 * (TAPS * blk1) * rows0_img * c0p             # per-image gathers
    flops += 2 * (n * blk1) * (TAPS * c0p) * c1p                 # conv 1 (deep K)
    flops += 2 * (TAPS * blk2) * m1_rows * c1p                   # gather 2
    flops += 2 * blk2 * (TAPS * c1p) * c2p                       # conv 2 (deep K)
    flops += 2 * (TAPS * blk3) * m2_rows * c2p                   # gather 3 (f32)
    flops += 2 * blk3 * (TAPS * c2p)                             # final mult + reduce
    patches0_bytes = n * rows0_img * TAPS * c_in * 2
    bytes_accessed = patches0_bytes + sum(int(c.size) * c.dtype.itemsize for c in consts)
    bytes_accessed += blk3 * OUT_LANES * 4
    cost = pl.CostEstimate(flops=int(flops), transcendentals=0,
                           bytes_accessed=int(bytes_accessed))

    n_in = 1 + len(consts)

    def forward(x):
        x_nhwc = jnp.transpose(x, (0, 2, 3, 1))                  # NCHW -> NHWC (free for C=1)
        # Layer-0 input patches (Cin=1, ~4 KiB) built as one small XLA fusion.
        patches0 = _im2col(x_nhwc, 2).astype(jnp.bfloat16)
        out = pl.pallas_call(
            kernel,
            out_shape=jax.ShapeDtypeStruct((blk3, OUT_LANES), jnp.float32),
            in_specs=[pl.BlockSpec(memory_space=pltpu.MemorySpace.VMEM)] * n_in,
            out_specs=pl.BlockSpec(memory_space=pltpu.MemorySpace.VMEM),
            compiler_params=pltpu.CompilerParams(vmem_limit_bytes=32 * 1024 * 1024),
            cost_estimate=cost,
        )(patches0, *consts)
        y = out[:m3_rows, :1].reshape(n, oh3, ow3, 1)
        return jnp.transpose(y, (0, 3, 1, 2))                    # NHWC -> NCHW

    return jax.jit(forward)


# ----------------------------------------------------------------------------
# Deterministic synthetic parameters (shapes match nn.Conv2d in __init__)
# ----------------------------------------------------------------------------
def init_params(key, in_channels=1):
    params = []
    channels = in_channels
    specs = []
    for i in range(3):
        specs.append((channels, 64 * 2 ** i))
        channels = 64 * 2 ** i
    specs.append((channels, 1))
    for cin, cout in specs:
        key, kw_key, kb_key = jax.random.split(key, 3)
        scale = 1.0 / jnp.sqrt(jnp.float32(cin * KS * KS))
        w = jax.random.normal(kw_key, (cout, cin, KS, KS), jnp.float32) * scale
        b = jax.random.normal(kb_key, (cout,), jnp.float32) * scale
        params.append((w, b))
    return params


# ----------------------------------------------------------------------------
# Pure-JAX reference (per-layer matmul-operand dtypes) for correctness checks
# ----------------------------------------------------------------------------
def _reference_forward(x, params, matmul_dtypes=None):
    strides = (2, 2, 2, 1)
    act = x
    for idx, (w, b) in enumerate(params):
        lhs, rhs = act, w
        if matmul_dtypes is not None and matmul_dtypes[idx] is not None:
            lhs = lhs.astype(matmul_dtypes[idx])
            rhs = rhs.astype(matmul_dtypes[idx])
        y = lax.conv_general_dilated(
            lhs, rhs,
            window_strides=(strides[idx], strides[idx]),
            padding=[(PAD, PAD), (PAD, PAD)],
            dimension_numbers=("NCHW", "OIHW", "NCHW"),
            preferred_element_type=jnp.float32,
        ) + b.reshape(1, -1, 1, 1)
        act = jnp.where(y >= 0.0, y, NEG_SLOPE * y) if idx < len(params) - 1 else y
    return act


if __name__ == "__main__":
    key = jax.random.PRNGKey(0)
    pkey, xkey = jax.random.split(key)

    params = init_params(pkey, in_channels=1)
    x = jax.random.normal(xkey, (2, 1, 16, 16), jnp.float32)     # NCHW input

    fwd = make_lr_discriminator(params, x.shape)
    out = jax.block_until_ready(fwd(x))
    assert out.shape == (2, 1, 1, 1), out.shape

    # Reference matched to the kernel's numerics: bf16 matmul operands / f32
    # accumulation for layers 0-2, full f32 for the final cout=1 layer.
    ref_matched = jax.block_until_ready(
        _reference_forward(x, params,
                           (jnp.bfloat16, jnp.bfloat16, jnp.bfloat16, jnp.float32)))
    assert jnp.allclose(out, ref_matched, atol=3e-3, rtol=3e-3), (out, ref_matched)

    # Pure-f32 reference of the original module: difference bounded by the
    # bf16 rounding of the first three layers' matmul operands.
    ref_f32 = jax.block_until_ready(_reference_forward(x, params))
    assert jnp.allclose(out, ref_f32, atol=5e-2, rtol=5e-2), (out, ref_f32)

    print("KERNEL_OK")
</pallas_src>

<mosaic_0001>
module attributes {stable_mosaic.version = 11 : i64} {
  func.func @_fused_kernel(%arg0: memref<128x16xbf16, #tpu.memory_space<vmem>>, %arg1: memref<16x128xbf16, #tpu.memory_space<vmem>>, %arg2: memref<1x128xf32, #tpu.memory_space<vmem>>, %arg3: memref<256x64xbf16, #tpu.memory_space<vmem>>, %arg4: memref<2048x128xbf16, #tpu.memory_space<vmem>>, %arg5: memref<1x128xf32, #tpu.memory_space<vmem>>, %arg6: memref<256x32xbf16, #tpu.memory_space<vmem>>, %arg7: memref<2048x256xbf16, #tpu.memory_space<vmem>>, %arg8: memref<1x256xf32, #tpu.memory_space<vmem>>, %arg9: memref<128x8xf32, #tpu.memory_space<vmem>>, %arg10: memref<1x4096xf32, #tpu.memory_space<vmem>>, %arg11: memref<1x128xf32, #tpu.memory_space<vmem>>, %arg12: memref<8x128xf32, #tpu.memory_space<vmem>>) attributes {dimension_semantics = [], scalar_prefetch = 0 : i64, scratch_operands = 0 : i64, tpu.core_type = #tpu.core_type<tc>} {
    %c0 = arith.constant 0 : index
    %c0_0 = arith.constant 0 : index
    %0 = vector.load %arg0[%c0, %c0_0] : memref<128x16xbf16, #tpu.memory_space<vmem>>, vector<128x16xbf16>
    %c0_1 = arith.constant 0 : index
    %c0_2 = arith.constant 0 : index
    %1 = vector.load %arg1[%c0_1, %c0_2] : memref<16x128xbf16, #tpu.memory_space<vmem>>, vector<16x128xbf16>
    %cst = arith.constant dense<0.000000e+00> : vector<128x128xf32>
    %2 = tpu.matmul %0, %1, %cst {dimension_numbers = #tpu.dot_dimension_numbers<[1], [0], [0], [1], [0, 0, 1, 1], [], []>} : vector<128x16xbf16>, vector<16x128xbf16>, vector<128x128xf32> -> vector<128x128xf32>
    %c0_3 = arith.constant 0 : index
    %c0_4 = arith.constant 0 : index
    %3 = vector.load %arg2[%c0_3, %c0_4] : memref<1x128xf32, #tpu.memory_space<vmem>>, vector<1x128xf32>
    %4 = vector.broadcast %3 : vector<1x128xf32> to vector<128x128xf32>
    %5 = arith.addf %2, %4 : vector<128x128xf32>
    %cst_5 = arith.constant 0.000000e+00 : f32
    %6 = vector.broadcast %cst_5 : f32 to vector<128x128xf32>
    %7 = arith.cmpf oge, %5, %6 : vector<128x128xf32>
    %cst_6 = arith.constant 2.000000e-01 : f32
    %8 = vector.broadcast %cst_6 : f32 to vector<128x128xf32>
    %9 = arith.mulf %8, %5 : vector<128x128xf32>
    %10 = arith.select %7, %5, %9 : vector<128x128xi1>, vector<128x128xf32>
    %11 = arith.truncf %10 : vector<128x128xf32> to vector<128x128xbf16>
    %c0_7 = arith.constant 0 : index
    %c0_8 = arith.constant 0 : index
    %12 = vector.load %arg3[%c0_7, %c0_8] : memref<256x64xbf16, #tpu.memory_space<vmem>>, vector<256x64xbf16>
    %13 = vector.extract_strided_slice %11 {offsets = [0, 0], sizes = [64, 128], strides = [1, 1]} : vector<128x128xbf16> to vector<64x128xbf16>
    %cst_9 = arith.constant dense<0.000000e+00> : vector<256x128xf32>
    %14 = tpu.matmul %12, %13, %cst_9 {dimension_numbers = #tpu.dot_dimension_numbers<[1], [0], [0], [1], [0, 0, 1, 1], [], []>} : vector<256x64xbf16>, vector<64x128xbf16>, vector<256x128xf32> -> vector<256x128xf32>
    %15 = arith.truncf %14 : vector<256x128xf32> to vector<256x128xbf16>
    %16 = vector.extract_strided_slice %11 {offsets = [64, 0], sizes = [64, 128], strides = [1, 1]} : vector<128x128xbf16> to vector<64x128xbf16>
    %cst_10 = arith.constant dense<0.000000e+00> : vector<256x128xf32>
    %17 = tpu.matmul %12, %16, %cst_10 {dimension_numbers = #tpu.dot_dimension_numbers<[1], [0], [0], [1], [0, 0, 1, 1], [], []>} : vector<256x64xbf16>, vector<64x128xbf16>, vector<256x128xf32> -> vector<256x128xf32>
    %18 = arith.truncf %17 : vector<256x128xf32> to vector<256x128xbf16>
    %19 = vector.extract_strided_slice %15 {offsets = [0, 0], sizes = [16, 128], strides = [1, 1]} : vector<256x128xbf16> to vector<16x128xbf16>
    %20 = vector.extract_strided_slice %18 {offsets = [0, 0], sizes = [16, 128], strides = [1, 1]} : vector<256x128xbf16> to vector<16x128xbf16>
    %21 = tpu.concatenate %19, %20 in 0 : vector<16x128xbf16>, vector<16x128xbf16> -> vector<32x128xbf16>
    %22 = vector.extract_strided_slice %15 {offsets = [16, 0], sizes = [16, 128], strides = [1, 1]} : vector<256x128xbf16> to vector<16x128xbf16>
    %23 = vector.extract_strided_slice %18 {offsets = [16, 0], sizes = [16, 128], strides = [1, 1]} : vector<256x128xbf16> to vector<16x128xbf16>
    %24 = tpu.concatenate %22, %23 in 0 : vector<16x128xbf16>, vector<16x128xbf16> -> vector<32x128xbf16>
    %25 = vector.extract_strided_slice %15 {offsets = [32, 0], sizes = [16, 128], strides = [1, 1]} : vector<256x128xbf16> to vector<16x128xbf16>
    %26 = vector.extract_strided_slice %18 {offsets = [32, 0], sizes = [16, 128], strides = [1, 1]} : vector<256x128xbf16> to vector<16x128xbf16>
    %27 = tpu.concatenate %25, %26 in 0 : vector<16x128xbf16>, vector<16x128xbf16> -> vector<32x128xbf16>
    %28 = vector.extract_strided_slice %15 {offsets = [48, 0], sizes = [16, 128], strides = [1, 1]} : vector<256x128xbf16> to vector<16x128xbf16>
    %29 = vector.extract_strided_slice %18 {offsets = [48, 0], sizes = [16, 128], strides = [1, 1]} : vector<256x128xbf16> to vector<16x128xbf16>
    %30 = tpu.concatenate %28, %29 in 0 : vector<16x128xbf16>, vector<16x128xbf16> -> vector<32x128xbf16>
    %31 = vector.extract_strided_slice %15 {offsets = [64, 0], sizes = [16, 128], strides = [1, 1]} : vector<256x128xbf16> to vector<16x128xbf16>
    %32 = vector.extract_strided_slice %18 {offsets = [64, 0], sizes = [16, 128], strides = [1, 1]} : vector<256x128xbf16> to vector<16x128xbf16>
    %33 = tpu.concatenate %31, %32 in 0 : vector<16x128xbf16>, vector<16x128xbf16> -> vector<32x128xbf16>
    %34 = vector.extract_strided_slice %15 {offsets = [80, 0], sizes = [16, 128], strides = [1, 1]} : vector<256x128xbf16> to vector<16x128xbf16>
    %35 = vector.extract_strided_slice %18 {offsets = [80, 0], sizes = [16, 128], strides = [1, 1]} : vector<256x128xbf16> to vector<16x128xbf16>
    %36 = tpu.concatenate %34, %35 in 0 : vector<16x128xbf16>, vector<16x128xbf16> -> vector<32x128xbf16>
    %37 = vector.extract_strided_slice %15 {offsets = [96, 0], sizes = [16, 128], strides = [1, 1]} : vector<256x128xbf16> to vector<16x128xbf16>
    %38 = vector.extract_strided_slice %18 {offsets = [96, 0], sizes = [16, 128], strides = [1, 1]} : vector<256x128xbf16> to vector<16x128xbf16>
    %39 = tpu.concatenate %37, %38 in 0 : vector<16x128xbf16>, vector<16x128xbf16> -> vector<32x128xbf16>
    %40 = vector.extract_strided_slice %15 {offsets = [112, 0], sizes = [16, 128], strides = [1, 1]} : vector<256x128xbf16> to vector<16x128xbf16>
    %41 = vector.extract_strided_slice %18 {offsets = [112, 0], sizes = [16, 128], strides = [1, 1]} : vector<256x128xbf16> to vector<16x128xbf16>
    %42 = tpu.concatenate %40, %41 in 0 : vector<16x128xbf16>, vector<16x128xbf16> -> vector<32x128xbf16>
    %43 = vector.extract_strided_slice %15 {offsets = [128, 0], sizes = [16, 128], strides = [1, 1]} : vector<256x128xbf16> to vector<16x128xbf16>
    %44 = vector.extract_strided_slice %18 {offsets = [128, 0], sizes = [16, 128], strides = [1, 1]} : vector<256x128xbf16> to vector<16x128xbf16>
    %45 = tpu.concatenate %43, %44 in 0 : vector<16x128xbf16>, vector<16x128xbf16> -> vector<32x128xbf16>
    %46 = vector.extract_strided_slice %15 {offsets = [144, 0], sizes = [16, 128], strides = [1, 1]} : vector<256x128xbf16> to vector<16x128xbf16>
    %47 = vector.extract_strided_slice %18 {offsets = [144, 0], sizes = [16, 128], strides = [1, 1]} : vector<256x128xbf16> to vector<16x128xbf16>
    %48 = tpu.concatenate %46, %47 in 0 : vector<16x128xbf16>, vector<16x128xbf16> -> vector<32x128xbf16>
    %49 = vector.extract_strided_slice %15 {offsets = [160, 0], sizes = [16, 128], strides = [1, 1]} : vector<256x128xbf16> to vector<16x128xbf16>
    %50 = vector.extract_strided_slice %18 {offsets = [160, 0], sizes = [16, 128], strides = [1, 1]} : vector<256x128xbf16> to vector<16x128xbf16>
    %51 = tpu.concatenate %49, %50 in 0 : vector<16x128xbf16>, vector<16x128xbf16> -> vector<32x128xbf16>
    %52 = vector.extract_strided_slice %15 {offsets = [176, 0], sizes = [16, 128], strides = [1, 1]} : vector<256x128xbf16> to vector<16x128xbf16>
    %53 = vector.extract_strided_slice %18 {offsets = [176, 0], sizes = [16, 128], strides = [1, 1]} : vector<256x128xbf16> to vector<16x128xbf16>
    %54 = tpu.concatenate %52, %53 in 0 : vector<16x128xbf16>, vector<16x128xbf16> -> vector<32x128xbf16>
    %55 = vector.extract_strided_slice %15 {offsets = [192, 0], sizes = [16, 128], strides = [1, 1]} : vector<256x128xbf16> to vector<16x128xbf16>
    %56 = vector.extract_strided_slice %18 {offsets = [192, 0], sizes = [16, 128], strides = [1, 1]} : vector<256x128xbf16> to vector<16x128xbf16>
    %57 = tpu.concatenate %55, %56 in 0 : vector<16x128xbf16>, vector<16x128xbf16> -> vector<32x128xbf16>
    %58 = vector.extract_strided_slice %15 {offsets = [208, 0], sizes = [16, 128], strides = [1, 1]} : vector<256x128xbf16> to vector<16x128xbf16>
    %59 = vector.extract_strided_slice %18 {offsets = [208, 0], sizes = [16, 128], strides = [1, 1]} : vector<256x128xbf16> to vector<16x128xbf16>
    %60 = tpu.concatenate %58, %59 in 0 : vector<16x128xbf16>, vector<16x128xbf16> -> vector<32x128xbf16>
    %61 = vector.extract_strided_slice %15 {offsets = [224, 0], sizes = [16, 128], strides = [1, 1]} : vector<256x128xbf16> to vector<16x128xbf16>
    %62 = vector.extract_strided_slice %18 {offsets = [224, 0], sizes = [16, 128], strides = [1, 1]} : vector<256x128xbf16> to vector<16x128xbf16>
    %63 = tpu.concatenate %61, %62 in 0 : vector<16x128xbf16>, vector<16x128xbf16> -> vector<32x128xbf16>
    %64 = vector.extract_strided_slice %15 {offsets = [240, 0], sizes = [16, 128], strides = [1, 1]} : vector<256x128xbf16> to vector<16x128xbf16>
    %65 = vector.extract_strided_slice %18 {offsets = [240, 0], sizes = [16, 128], strides = [1, 1]} : vector<256x128xbf16> to vector<16x128xbf16>
    %66 = tpu.concatenate %64, %65 in 0 : vector<16x128xbf16>, vector<16x128xbf16> -> vector<32x128xbf16>
    %67 = tpu.concatenate %21, %24, %27, %30, %33, %36, %39, %42, %45, %48, %51, %54, %57, %60, %63, %66 in 1 : vector<32x128xbf16>, vector<32x128xbf16>, vector<32x128xbf16>, vector<32x128xbf16>, vector<32x128xbf16>, vector<32x128xbf16>, vector<32x128xbf16>, vector<32x128xbf16>, vector<32x128xbf16>, vector<32x128xbf16>, vector<32x128xbf16>, vector<32x128xbf16>, vector<32x128xbf16>, vector<32x128xbf16>, vector<32x128xbf16>, vector<32x128xbf16> -> vector<32x2048xbf16>
    %c0_11 = arith.constant 0 : index
    %c0_12 = arith.constant 0 : index
    %68 = vector.load %arg4[%c0_11, %c0_12] : memref<2048x128xbf16, #tpu.memory_space<vmem>>, vector<2048x128xbf16>
    %cst_13 = arith.constant dense<0.000000e+00> : vector<32x128xf32>
    %69 = tpu.matmul %67, %68, %cst_13 {dimension_numbers = #tpu.dot_dimension_numbers<[1], [0], [0], [1], [0, 0, 1, 1], [], []>} : vector<32x2048xbf16>, vector<2048x128xbf16>, vector<32x128xf32> -> vector<32x128xf32>
    %c0_14 = arith.constant 0 : index
    %c0_15 = arith.constant 0 : index
    %70 = vector.load %arg5[%c0_14, %c0_15] : memref<1x128xf32, #tpu.memory_space<vmem>>, vector<1x128xf32>
    %71 = vector.broadcast %70 : vector<1x128xf32> to vector<32x128xf32>
    %72 = arith.addf %69, %71 : vector<32x128xf32>
    %cst_16 = arith.constant 0.000000e+00 : f32
    %73 = vector.broadcast %cst_16 : f32 to vector<32x128xf32>
    %74 = arith.cmpf oge, %72, %73 : vector<32x128xf32>
    %cst_17 = arith.constant 2.000000e-01 : f32
    %75 = vector.broadcast %cst_17 : f32 to vector<32x128xf32>
    %76 = arith.mulf %75, %72 : vector<32x128xf32>
    %77 = arith.select %74, %72, %76 : vector<32x128xi1>, vector<32x128xf32>
    %78 = arith.truncf %77 : vector<32x128xf32> to vector<32x128xbf16>
    %c0_18 = arith.constant 0 : index
    %c0_19 = arith.constant 0 : index
    %79 = vector.load %arg6[%c0_18, %c0_19] : memref<256x32xbf16, #tpu.memory_space<vmem>>, vector<256x32xbf16>
    %cst_20 = arith.constant dense<0.000000e+00> : vector<256x128xf32>
    %80 = tpu.matmul %79, %78, %cst_20 {dimension_numbers = #tpu.dot_dimension_numbers<[1], [0], [0], [1], [0, 0, 1, 1], [], []>} : vector<256x32xbf16>, vector<32x128xbf16>, vector<256x128xf32> -> vector<256x128xf32>
    %81 = arith.truncf %80 : vector<256x128xf32> to vector<256x128xbf16>
    %82 = vector.extract_strided_slice %81 {offsets = [0, 0], sizes = [16, 128], strides = [1, 1]} : vector<256x128xbf16> to vector<16x128xbf16>
    %83 = vector.extract_strided_slice %81 {offsets = [16, 0], sizes = [16, 128], strides = [1, 1]} : vector<256x128xbf16> to vector<16x128xbf16>
    %84 = vector.extract_strided_slice %81 {offsets = [32, 0], sizes = [16, 128], strides = [1, 1]} : vector<256x128xbf16> to vector<16x128xbf16>
    %85 = vector.extract_strided_slice %81 {offsets = [48, 0], sizes = [16, 128], strides = [1, 1]} : vector<256x128xbf16> to vector<16x128xbf16>
    %86 = vector.extract_strided_slice %81 {offsets = [64, 0], sizes = [16, 128], strides = [1, 1]} : vector<256x128xbf16> to vector<16x128xbf16>
    %87 = vector.extract_strided_slice %81 {offsets = [80, 0], sizes = [16, 128], strides = [1, 1]} : vector<256x128xbf16> to vector<16x128xbf16>
    %88 = vector.extract_strided_slice %81 {offsets = [96, 0], sizes = [16, 128], strides = [1, 1]} : vector<256x128xbf16> to vector<16x128xbf16>
    %89 = vector.extract_strided_slice %81 {offsets = [112, 0], sizes = [16, 128], strides = [1, 1]} : vector<256x128xbf16> to vector<16x128xbf16>
    %90 = vector.extract_strided_slice %81 {offsets = [128, 0], sizes = [16, 128], strides = [1, 1]} : vector<256x128xbf16> to vector<16x128xbf16>
    %91 = vector.extract_strided_slice %81 {offsets = [144, 0], sizes = [16, 128], strides = [1, 1]} : vector<256x128xbf16> to vector<16x128xbf16>
    %92 = vector.extract_strided_slice %81 {offsets = [160, 0], sizes = [16, 128], strides = [1, 1]} : vector<256x128xbf16> to vector<16x128xbf16>
    %93 = vector.extract_strided_slice %81 {offsets = [176, 0], sizes = [16, 128], strides = [1, 1]} : vector<256x128xbf16> to vector<16x128xbf16>
    %94 = vector.extract_strided_slice %81 {offsets = [192, 0], sizes = [16, 128], strides = [1, 1]} : vector<256x128xbf16> to vector<16x128xbf16>
    %95 = vector.extract_strided_slice %81 {offsets = [208, 0], sizes = [16, 128], strides = [1, 1]} : vector<256x128xbf16> to vector<16x128xbf16>
    %96 = vector.extract_strided_slice %81 {offsets = [224, 0], sizes = [16, 128], strides = [1, 1]} : vector<256x128xbf16> to vector<16x128xbf16>
    %97 = vector.extract_strided_slice %81 {offsets = [240, 0], sizes = [16, 128], strides = [1, 1]} : vector<256x128xbf16> to vector<16x128xbf16>
    %98 = tpu.concatenate %82, %83, %84, %85, %86, %87, %88, %89, %90, %91, %92, %93, %94, %95, %96, %97 in 1 : vector<16x128xbf16>, vector<16x128xbf16>, vector<16x128xbf16>, vector<16x128xbf16>, vector<16x128xbf16>, vector<16x128xbf16>, vector<16x128xbf16>, vector<16x128xbf16>, vector<16x128xbf16>, vector<16x128xbf16>, vector<16x128xbf16>, vector<16x128xbf16>, vector<16x128xbf16>, vector<16x128xbf16>, vector<16x128xbf16>, vector<16x128xbf16> -> vector<16x2048xbf16>
    %c0_21 = arith.constant 0 : index
    %c0_22 = arith.constant 0 : index
    %99 = vector.load %arg7[%c0_21, %c0_22] : memref<2048x256xbf16, #tpu.memory_space<vmem>>, vector<2048x256xbf16>
    %cst_23 = arith.constant dense<0.000000e+00> : vector<16x256xf32>
    %100 = tpu.matmul %98, %99, %cst_23 {dimension_numbers = #tpu.dot_dimension_numbers<[1], [0], [0], [1], [0, 0, 1, 1], [], []>} : vector<16x2048xbf16>, vector<2048x256xbf16>, vector<16x256xf32> -> vector<16x256xf32>
    %101 = vector.extract_strided_slice %100 {offsets = [0, 0], sizes = [8, 256], strides = [1, 1]} : vector<16x256xf32> to vector<8x256xf32>
    %c0_24 = arith.constant 0 : index
    %c0_25 = arith.constant 0 : index
    %102 = vector.load %arg8[%c0_24, %c0_25] : memref<1x256xf32, #tpu.memory_space<vmem>>, vector<1x256xf32>
    %103 = vector.broadcast %102 : vector<1x256xf32> to vector<8x256xf32>
    %104 = arith.addf %101, %103 : vector<8x256xf32>
    %cst_26 = arith.constant 0.000000e+00 : f32
    %105 = vector.broadcast %cst_26 : f32 to vector<8x256xf32>
    %106 = arith.cmpf oge, %104, %105 : vector<8x256xf32>
    %cst_27 = arith.constant 2.000000e-01 : f32
    %107 = vector.broadcast %cst_27 : f32 to vector<8x256xf32>
    %108 = arith.mulf %107, %104 : vector<8x256xf32>
    %109 = arith.select %106, %104, %108 : vector<8x256xi1>, vector<8x256xf32>
    %c0_28 = arith.constant 0 : index
    %c0_29 = arith.constant 0 : index
    %110 = vector.load %arg9[%c0_28, %c0_29] : memref<128x8xf32, #tpu.memory_space<vmem>>, vector<128x8xf32>
    %cst_30 = arith.constant dense<0.000000e+00> : vector<128x256xf32>
    %111 = tpu.matmul %110, %109, %cst_30 {dimension_numbers = #tpu.dot_dimension_numbers<[1], [0], [0], [1], [0, 0, 1, 1], [], []>} : vector<128x8xf32>, vector<8x256xf32>, vector<128x256xf32> -> vector<128x256xf32>
    %112 = vector.extract_strided_slice %111 {offsets = [0, 0], sizes = [8, 256], strides = [1, 1]} : vector<128x256xf32> to vector<8x256xf32>
    %113 = vector.extract_strided_slice %111 {offsets = [8, 0], sizes = [8, 256], strides = [1, 1]} : vector<128x256xf32> to vector<8x256xf32>
    %114 = vector.extract_strided_slice %111 {offsets = [16, 0], sizes = [8, 256], strides = [1, 1]} : vector<128x256xf32> to vector<8x256xf32>
    %115 = vector.extract_strided_slice %111 {offsets = [24, 0], sizes = [8, 256], strides = [1, 1]} : vector<128x256xf32> to vector<8x256xf32>
    %116 = vector.extract_strided_slice %111 {offsets = [32, 0], sizes = [8, 256], strides = [1, 1]} : vector<128x256xf32> to vector<8x256xf32>
    %117 = vector.extract_strided_slice %111 {offsets = [40, 0], sizes = [8, 256], strides = [1, 1]} : vector<128x256xf32> to vector<8x256xf32>
    %118 = vector.extract_strided_slice %111 {offsets = [48, 0], sizes = [8, 256], strides = [1, 1]} : vector<128x256xf32> to vector<8x256xf32>
    %119 = vector.extract_strided_slice %111 {offsets = [56, 0], sizes = [8, 256], strides = [1, 1]} : vector<128x256xf32> to vector<8x256xf32>
    %120 = vector.extract_strided_slice %111 {offsets = [64, 0], sizes = [8, 256], strides = [1, 1]} : vector<128x256xf32> to vector<8x256xf32>
    %121 = vector.extract_strided_slice %111 {offsets = [72, 0], sizes = [8, 256], strides = [1, 1]} : vector<128x256xf32> to vector<8x256xf32>
    %122 = vector.extract_strided_slice %111 {offsets = [80, 0], sizes = [8, 256], strides = [1, 1]} : vector<128x256xf32> to vector<8x256xf32>
    %123 = vector.extract_strided_slice %111 {offsets = [88, 0], sizes = [8, 256], strides = [1, 1]} : vector<128x256xf32> to vector<8x256xf32>
    %124 = vector.extract_strided_slice %111 {offsets = [96, 0], sizes = [8, 256], strides = [1, 1]} : vector<128x256xf32> to vector<8x256xf32>
    %125 = vector.extract_strided_slice %111 {offsets = [104, 0], sizes = [8, 256], strides = [1, 1]} : vector<128x256xf32> to vector<8x256xf32>
    %126 = vector.extract_strided_slice %111 {offsets = [112, 0], sizes = [8, 256], strides = [1, 1]} : vector<128x256xf32> to vector<8x256xf32>
    %127 = vector.extract_strided_slice %111 {offsets = [120, 0], sizes = [8, 256], strides = [1, 1]} : vector<128x256xf32> to vector<8x256xf32>
    %128 = tpu.concatenate %112, %113, %114, %115, %116, %117, %118, %119, %120, %121, %122, %123, %124, %125, %126, %127 in 1 : vector<8x256xf32>, vector<8x256xf32>, vector<8x256xf32>, vector<8x256xf32>, vector<8x256xf32>, vector<8x256xf32>, vector<8x256xf32>, vector<8x256xf32>, vector<8x256xf32>, vector<8x256xf32>, vector<8x256xf32>, vector<8x256xf32>, vector<8x256xf32>, vector<8x256xf32>, vector<8x256xf32>, vector<8x256xf32> -> vector<8x4096xf32>
    %c0_31 = arith.constant 0 : index
    %c0_32 = arith.constant 0 : index
    %129 = vector.load %arg10[%c0_31, %c0_32] : memref<1x4096xf32, #tpu.memory_space<vmem>>, vector<1x4096xf32>
    %130 = vector.broadcast %129 : vector<1x4096xf32> to vector<8x4096xf32>
    %131 = arith.mulf %128, %130 : vector<8x4096xf32>
    %cst_33 = arith.constant dense<0.000000e+00> : vector<8xf32>
    %132 = vector.multi_reduction <add>, %131, %cst_33 [1] : vector<8x4096xf32> to vector<8xf32>
    %133 = vector.shape_cast %132 : vector<8xf32> to vector<8x1xf32>
    %c0_34 = arith.constant 0 : index
    %c0_35 = arith.constant 0 : index
    %134 = vector.load %arg11[%c0_34, %c0_35] : memref<1x128xf32, #tpu.memory_space<vmem>>, vector<1x128xf32>
    %135 = vector.broadcast %133 : vector<8x1xf32> to vector<8x128xf32>
    %136 = vector.broadcast %134 : vector<1x128xf32> to vector<8x128xf32>
    %137 = arith.addf %135, %136 : vector<8x128xf32>
    %c0_36 = arith.constant 0 : index
    %c0_37 = arith.constant 0 : index
    %138 = vector.load %arg12[%c0_36, %c0_37] : memref<8x128xf32, #tpu.memory_space<vmem>>, vector<8x128xf32>
    tpu.vector_store %arg12[%c0_36, %c0_37], %137 {strides = array<i32>} : memref<8x128xf32, #tpu.memory_space<vmem>>, vector<8x128xf32>,
    return
  }
}

</mosaic_0001>

<bundles_post_ra>
// kernel: forward.1
= control target key start
LH: loop header
LB: loop body
LE: loop exit
PB: predicated region body
PF: predicated region fallthrough
CT: control target
= control target key end

     0   :  { %vm113_vm0 = vcmask 130048   ;;  %vm403_vm1 = vcmask 523264   ;;  %s8256_s1 = inlined_call_operand.vmem [shape: bf16[16,128], index: 1, kind: input, shape index: {}]   ;;  %s8257_s0 = inlined_call_operand.vmem [shape: bf16[128,16], index: 0, kind: input, shape index: {}]   ;;  %s8258_s3 = inlined_call_operand.vmem [shape: bf16[256,64], index: 3, kind: input, shape index: {}]   ;;  %s8259_s4 = inlined_call_operand.vmem [shape: bf16[2048,128], index: 4, kind: input, shape index: {}]   ;;  %s8260_s2 = inlined_call_operand.vmem [shape: f32[1,128], index: 2, kind: input, shape index: {}]   ;;  %s8261_s5 = inlined_call_operand.vmem [shape: f32[1,128], index: 5, kind: input, shape index: {}]   ;;  %s8262_s6 = inlined_call_operand.vmem [shape: bf16[256,32], index: 6, kind: input, shape index: {}]   ;;  %s8263_s7 = inlined_call_operand.vmem [shape: bf16[2048,256], index: 7, kind: input, shape index: {}]   ;;  %s8264_s8 = inlined_call_operand.vmem [shape: f32[1,256], index: 8, kind: input, shape index: {}]   ;;  %s8265_s9 = inlined_call_operand.vmem [shape: f32[128,8], index: 9, kind: input, shape index: {}]   ;;  %s8266_s10 = inlined_call_operand.vmem [shape: f32[1,4096], index: 10, kind: input, shape index: {}]   ;;  %s8267_s11 = inlined_call_operand.vmem [shape: f32[1,128], index: 11, kind: input, shape index: {}]   ;;  %s8268_s12 = inlined_call_operand.vmem [shape: f32[8,128], index: 12, kind: output, shape index: {}]  }
   0x1   :  { %v5871_v0 = vld [vmem:[%s8256_s1] sm:$0xff]   ;;  %v5873_v2 = vld [vmem:[%s8257_s0 + $0x8] sm:$0xff]   ;;  %v5874_v3 = vld [vmem:[%s8257_s0 + $0x10] sm:$0xff]  }
   0x2   :  { %v5872_v1 = vld [vmem:[%s8257_s0] sm:$0xff]   ;;  %5728 = vmatprep.subr.bf16.mxu0 %v5871_v0  ;;  %v5875_v4 = vld [vmem:[%s8257_s0 + $0x18] sm:$0xff]   ;;  %v5877_v6 = vld [vmem:[%s8257_s0 + $0x28] sm:$0xff]  }
   0x3   :  { %5729 = vmatpush3.bf16.msra.mxu0 %v5871_v0  ;;  %5730 = vmatprep.mubr.msk.bf16.mxu0 %vm113_vm0, %v5872_v1  ;;  %v5876_v5 = vld [vmem:[%s8257_s0 + $0x20] sm:$0xff]   ;;  %v5878_v7 = vld [vmem:[%s8257_s0 + $0x30] sm:$0xff]   ;;  %v5879_v8 = vld [vmem:[%s8257_s0 + $0x38] sm:$0xff]  }
   0x4   :  { %v6528_v9 = vld [vmem:[%s8258_s3] sm:$0xff]   ;;  %v6559_v59 = vld [vmem:[%s8258_s3 + $0x8] sm:$0xff]   ;;  %v6567_v0 = vld [vmem:[%s8258_s3 + $0x10] sm:$0xff]  }
   0x5   :  { %v6535_v10 = vld [vmem:[%s8258_s3 + $0x40] sm:$0xff]  }
   0x6   :  { %5731 = vmatmul.mubr.msk.bf16.vlgmr.msra.gmra.mrb[0].mxu0 %vm113_vm0, %v5873_v2  ;;  %5770 = vmatprep.mubr.msk.bf16.mxu1 %vm403_vm1, %v6535_v10  ;;  %v6542_v11 = vld [vmem:[%s8260_s2] ss:$0 sm:$0xff]  ;;  %v6572_v2 = vld [vmem:[%s8258_s3 + $0x48] sm:$0xff]  }
   0x7   :  { %5734 = vmatprep.mubr.msk.bf16.mxu0 %vm113_vm0, %v5874_v3  ;;  %v5898_v61 = vld [vmem:[%s8259_s4 + $0x40] sm:$0xff]  }
   0xe   :  { %5735 = vmatmul.mubr.msk.bf16.gmra.mrb[4].mxu0 %vm113_vm0, %v5875_v4 }
   0xf   :  { %5738 = vmatprep.mubr.msk.bf16.mxu0 %vm113_vm0, %v5876_v5 }
  0x16   :  { %5739 = vmatmul.mubr.msk.bf16.gmra.mrb[8].mxu0 %vm113_vm0, %v5877_v6  ;;  %v6577_v6 = vld [vmem:[%s8258_s3 + $0x50] sm:$0xff]  }
  0x17   :  { %5742 = vmatprep.mubr.msk.bf16.mxu0 %vm113_vm0, %v5878_v7 }
  0x1e   :  { %5743 = vmatmul.mubr.msk.bf16.gmra.mrb[12].mxu0 %vm113_vm0, %v5879_v8 }
  0x1f   :  { %5754 = vmatprep.mubr.msk.bf16.mxu0 %vm403_vm1, %v6528_v9 }
  0xd9   :  { %v5732_v12 = vpop.f32.mrb[0].mxu0 }
  0xda   :  { %v181_v13 = vadd.f32 %v5732_v12, %v6542_v11  ;;  %v172_v14 = vpop.f32.mrb[1].mxu0 }
  0xdb   :  { %v173_v15 = vadd.f32 %v6542_v11, %v172_v14  ;;  %v5733_v16 = vpop.f32.mrb[2].mxu0 }
  0xdc   :  { %v253_v17 = vmul.f32 0.2, %v181_v13  ;;  %v184_v18 = vadd.f32 %v5733_v16, %v6542_v11  ;;  %v175_v19 = vpop.f32.mrb[3].mxu0  ;;  %vm237_vm2 = vcmp.ge.f32.partialorder %v181_v13, 0.0  ;;  %v5900_v16 = vld [vmem:[%s8259_s4 + $0x48] sm:$0xff]  }
  0xdd   :  { %v251_v20 = vmul.f32 0.2, %v173_v15  ;;  %v176_v21 = vadd.f32 %v6542_v11, %v175_v19  ;;  %vm235_vm3 = vcmp.ge.f32.partialorder %v173_v15, 0.0 }
  0xde   :  { %vm238_vm4 = vcmp.ge.f32.partialorder %v184_v18, 0.0  ;;  %v254_v22 = vmul.f32 0.2, %v184_v18  ;;  %v269_v24 = vsel %vm237_vm2, %v181_v13, %v253_v17  ;;  %v5899_v13 = vld [vmem:[%s8259_s4] sm:$0xff]  }
  0xdf   :  { %vm236_vm5 = vcmp.ge.f32.partialorder %v176_v21, 0.0  ;;  %v252_v23 = vmul.f32 0.2, %v176_v21  ;;  %v267_v26 = vsel %vm235_vm3, %v173_v15, %v251_v20 }
  0xe0   :  { %v270_v25 = vsel %vm238_vm4, %v184_v18, %v254_v22  ;;  %v6596_v22 = vld [vmem:[%s8258_s3 + $0x18] sm:$0xff]  }
  0xe1   :  { %v284_v27 = vpack.c.bf16 %v270_v25, %v269_v24  ;;  %v268_v28 = vsel %vm236_vm5, %v176_v21, %v252_v23  ;;  %v5736_v29 = vpop.f32.mrb[4].mxu0 }
  0xe2   :  { %v283_v30 = vpack.c.bf16 %v268_v28, %v267_v26  ;;  %v197_v31 = vadd.f32 %v5736_v29, %v6542_v11  ;;  %v188_v32 = vpop.f32.mrb[5].mxu0  ;;  %v6603_v26 = vld [vmem:[%s8258_s3 + $0x20] sm:$0xff]   ;;  %v6613_v29 = vld [vmem:[%s8258_s3 + $0x58] sm:$0xff]  }
  0xe3   :  { %v189_v33 = vadd.f32 %v6542_v11, %v188_v32  ;;  %v5737_v34 = vpop.f32.mrb[6].mxu0  ;;  %v6618_v32 = vld [vmem:[%s8258_s3 + $0x60] sm:$0xff]  }
  0xe4   :  { %v257_v35 = vmul.f32 0.2, %v197_v31  ;;  %v200_v36 = vadd.f32 %v5737_v34, %v6542_v11  ;;  %v191_v37 = vpop.f32.mrb[7].mxu0  ;;  %5746 = vmatprep.subr.bf16.mxu0 %v283_v30  ;;  %5862 = vmatprep.subr.bf16.mxu1 %v283_v30  ;;  %vm241_vm6 = vcmp.ge.f32.partialorder %v197_v31, 0.0 }
  0xe5   :  { %v255_v38 = vmul.f32 0.2, %v189_v33  ;;  %v192_v39 = vadd.f32 %v6542_v11, %v191_v37  ;;  %5747 = vmatpush3.bf16.msra.mxu0 %v283_v30  ;;  %5866 = vmatpush3.bf16.msra.mxu1 %v283_v30  ;;  %vm239_vm7 = vcmp.ge.f32.partialorder %v189_v33, 0.0  ;;  %v5896_v37 = vld [vmem:[%s8259_s4 + $0xc0] sm:$0xff]  }
  0xe6   :  { %vm242_vm8 = vcmp.ge.f32.partialorder %v200_v36, 0.0  ;;  %v258_v40 = vmul.f32 0.2, %v200_v36  ;;  %5748 = vmatprep.subr.bf16.mxu0 %v284_v27  ;;  %5863 = vmatprep.subr.bf16.mxu1 %v284_v27  ;;  %v273_v42 = vsel %vm241_vm6, %v197_v31, %v257_v35  ;;  %v5905_v35 = vld [vmem:[%s8259_s4 + $0x10] sm:$0xff]  }
  0xe7   :  { %vm240_vm9 = vcmp.ge.f32.partialorder %v192_v39, 0.0  ;;  %v256_v41 = vmul.f32 0.2, %v192_v39  ;;  %v271_v44 = vsel %vm239_vm7, %v189_v33, %v255_v38  ;;  %v5904_v33 = vld [vmem:[%s8259_s4 + $0x50] sm:$0xff]   ;;  %v5885_v38 = vld [vmem:[%s8258_s3 + $0x28] sm:$0xff]  }
  0xe8   :  { %v274_v43 = vsel %vm242_vm8, %v200_v36, %v258_v40  ;;  %v5906_v36 = vld [vmem:[%s8259_s4 + $0x58] sm:$0xff]   ;;  %v5886_v40 = vld [vmem:[%s8258_s3 + $0x30] sm:$0xff]  }
  0xe9   :  { %v286_v45 = vpack.c.bf16 %v274_v43, %v273_v42  ;;  %v272_v46 = vsel %vm240_vm9, %v192_v39, %v256_v41  ;;  %5749 = vmatpush3.bf16.msra.mxu0 %v284_v27  ;;  %5867 = vmatpush3.bf16.msra.mxu1 %v284_v27  ;;  %v5740_v47 = vpop.f32.mrb[8].mxu0  ;;  %v5902_v27 = vld [vmem:[%s8259_s4 + $0x8] sm:$0xff]   ;;  %v5908_v39 = vld [vmem:[%s8259_s4 + $0x18] sm:$0xff]   ;;  %v5910_v41 = vld [vmem:[%s8259_s4 + $0x60] sm:$0xff]   ;;  %vm4481_vm9 = vcmask 64512  }
  0xea   :  { %v285_v48 = vpack.c.bf16 %v272_v46, %v271_v44  ;;  %v213_v49 = vadd.f32 %v5740_v47, %v6542_v11  ;;  %v204_v50 = vpop.f32.mrb[9].mxu0  ;;  %v5893_v42 = vld [vmem:[%s8258_s3 + $0x68] sm:$0xff]   ;;  %v5894_v43 = vld [vmem:[%s8258_s3 + $0x70] sm:$0xff]   ;;  %v5912_v44 = vld [vmem:[%s8259_s4 + $0x20] sm:$0xff]  }
  0xeb   :  { %v205_v51 = vadd.f32 %v6542_v11, %v204_v50  ;;  %v5741_v52 = vpop.f32.mrb[10].mxu0  ;;  %v5887_v46 = vld [vmem:[%s8258_s3 + $0x38] sm:$0xff]   ;;  %v5916_v47 = vld [vmem:[%s8259_s4 + $0x28] sm:$0xff]   ;;  %v5920_v50 = vld [vmem:[%s8259_s4 + $0x30] sm:$0xff]  }
  0xec   :  { %5750 = vmatprep.subr.bf16.mxu0 %v285_v48  ;;  %5864 = vmatprep.subr.bf16.mxu1 %v285_v48  ;;  %vm245_vm10 = vcmp.ge.f32.partialorder %v213_v49, 0.0  ;;  %v261_v53 = vmul.f32 0.2, %v213_v49  ;;  %v216_v54 = vadd.f32 %v5741_v52, %v6542_v11  ;;  %v207_v55 = vpop.f32.mrb[11].mxu0  ;;  %v5901_v52 = vld [vmem:[%s8259_s4 + $0xc8] sm:$0xff]  }
  0xed   :  { %5751 = vmatpush3.bf16.msra.mxu0 %v285_v48  ;;  %5868 = vmatpush3.bf16.msra.mxu1 %v285_v48  ;;  %vm243_vm11 = vcmp.ge.f32.partialorder %v205_v51, 0.0  ;;  %v259_v56 = vmul.f32 0.2, %v205_v51  ;;  %v208_v57 = vadd.f32 %v6542_v11, %v207_v55  ;;  %v5918_v48 = vld [vmem:[%s8259_s4 + $0x70] sm:$0xff]   ;;  %v5911_v55 = vld [vmem:[%s8259_s4 + $0xd8] sm:$0xff]  }
  0xee   :  { %5752 = vmatprep.subr.bf16.mxu0 %v286_v45  ;;  %5865 = vmatprep.subr.bf16.mxu1 %v286_v45  ;;  %vm246_vm12 = vcmp.ge.f32.partialorder %v216_v54, 0.0  ;;  %v262_v58 = vmul.f32 0.2, %v216_v54  ;;  %v277_v60 = vsel %vm245_vm10, %v213_v49, %v261_v53  ;;  %v5895_v49 = vld [vmem:[%s8258_s3 + $0x78] sm:$0xff]   ;;  %v5903_v53 = vld [vmem:[%s8259_s4 + $0x88] sm:$0xff]  }
  0xef   :  { %vm244_vm13 = vcmp.ge.f32.partialorder %v208_v57, 0.0  ;;  %v260_v62 = vmul.f32 0.2, %v208_v57  ;;  %v275_v63 = vsel %vm243_vm11, %v205_v51, %v259_v56  ;;  %v5897_v51 = vld [vmem:[%s8259_s4 + $0x80] sm:$0xff]   ;;  %v5913_v56 = vld [vmem:[%s8259_s4 + $0x98] sm:$0xff]  }
  0xf0   :  { %v278_v1 = vsel %vm246_vm12, %v216_v54, %v262_v58  ;;  %v5909_v54 = vld [vmem:[%s8259_s4 + $0x90] sm:$0xff]   ;;  %v5917_v58 = vld [vmem:[%s8259_s4 + $0xa0] sm:$0xff]  }
  0xf1   :  { %5753 = vmatpush3.bf16.msra.mxu0 %v286_v45  ;;  %5869 = vmatpush3.bf16.msra.mxu1 %v286_v45  ;;  %v276_v3 = vsel %vm244_vm13, %v208_v57, %v260_v62  ;;  %v288_v4 = vpack.c.bf16 %v278_v1, %v277_v60  ;;  %v5744_v5 = vpop.f32.mrb[12].mxu0  ;;  %v5914_v45 = vld [vmem:[%s8259_s4 + $0x68] sm:$0xff]   ;;  %v5915_v57 = vld [vmem:[%s8259_s4 + $0xe0] sm:$0xff]   ;;  %v5923_v62 = vld [vmem:[%s8259_s4 + $0xf0] sm:$0xff]  }
  0xf2   :  { %v287_v7 = vpack.c.bf16 %v276_v3, %v275_v63  ;;  %v229_v8 = vadd.f32 %v5744_v5, %v6542_v11  ;;  %v220_v12 = vpop.f32.mrb[13].mxu0  ;;  %5486 = vmatprep.subr.bf16.mxu1 %v5898_v61  ;;  %v5921_v60 = vld [vmem:[%s8259_s4 + $0xa8] sm:$0xff]   ;;  %v5924_v61 = vld [vmem:[%s8259_s4 + $0x38] sm:$0xff]   ;;  %v5925_v63 = vld [vmem:[%s8259_s4 + $0xb0] sm:$0xff]  }
  0xf3   :  { %v221_v14 = vadd.f32 %v6542_v11, %v220_v12  ;;  %v5745_v15 = vpop.f32.mrb[14].mxu0  ;;  %v5927_v1 = vld [vmem:[%s8259_s4 + $0xb8] sm:$0xff]   ;;  %v5933_v3 = vld [vmem:[%s8259_s4 + $0x1c0] sm:$0xff]  }
  0xf4   :  { %5755 = vmatmul.mubr.msk.bf16.vlgmr.msra.gmra.mrb[16].mxu0 %vm403_vm1, %v6559_v59  ;;  %5786 = vmatprep.subr.bf16.mxu0 %v287_v7  ;;  %vm249_vm14 = vcmp.ge.f32.partialorder %v229_v8, 0.0  ;;  %v265_v17 = vmul.f32 0.2, %v229_v8  ;;  %v232_v18 = vadd.f32 %v5745_v15, %v6542_v11  ;;  %v223_v19 = vpop.f32.mrb[15].mxu0 }
  0xf5   :  { %5758 = vmatprep.mubr.msk.bf16.mxu0 %vm403_vm1, %v6567_v0  ;;  %5787 = vmatpush3.bf16.msra.mxu0 %v287_v7  ;;  %vm247_vm15 = vcmp.ge.f32.partialorder %v221_v14, 0.0  ;;  %v263_v20 = vmul.f32 0.2, %v221_v14  ;;  %v224_v21 = vadd.f32 %v6542_v11, %v223_v19 }
  0xf6   :  { %5788 = vmatprep.subr.bf16.mxu0 %v288_v4  ;;  %vm250_vm0 = vcmp.ge.f32.partialorder %v232_v18, 0.0  ;;  %v266_v23 = vmul.f32 0.2, %v232_v18  ;;  %v281_v24 = vsel %vm249_vm14, %v229_v8, %v265_v17  ;;  %5771 = vmatmul.mubr.msk.bf16.vlgmr.msra.gmra.mrb[0].mxu1 %vm403_vm1, %v6572_v2 }
  0xf7   :  { %vm248_vm2 = vcmp.ge.f32.partialorder %v224_v21, 0.0  ;;  %v264_v25 = vmul.f32 0.2, %v224_v21  ;;  %v279_v11 = vsel %vm247_vm15, %v221_v14, %v263_v20  ;;  %5774 = vmatprep.mubr.msk.bf16.mxu1 %vm403_vm1, %v6577_v6  ;;  %5487 = vmatpush3.bf16.msra.mxu1 %v5899_v13  ;;  %v5929_v13 = vld [vmem:[%s8259_s4 + $0x100] sm:$0xff]  }
  0xf8   :  { %v282_v28 = vsel %vm250_vm0, %v232_v18, %v266_v23  ;;  %5488 = vmatprep.subr.bf16.mxu1 %v5900_v16  ;;  %v5930_v16 = vld [vmem:[%s8259_s4 + $0x148] sm:$0xff]   ;;  %v5932_v23 = vld [vmem:[%s8259_s4 + $0x150] sm:$0xff]  }
  0xf9   :  { %5789 = vmatpush3.bf16.msra.mxu0 %v288_v4  ;;  %v280_v30 = vsel %vm248_vm2, %v224_v21, %v264_v25  ;;  %v290_v31 = vpack.c.bf16 %v282_v28, %v281_v24  ;;  %v5931_v21 = vld [vmem:[%s8259_s4 + $0x108] sm:$0xff]   ;;  %v5934_v28 = vld [vmem:[%s8259_s4 + $0x110] sm:$0xff]  }
  0xfa   :  { %v289_v34 = vpack.c.bf16 %v280_v30, %v279_v11 }
  0xfb   :  { %5489 = vmatpush3.bf16.msra.mxu1 %v5902_v27 }
  0xfc   :  { %5759 = vmatmul.mubr.msk.bf16.gmra.mrb[20].mxu0 %vm403_vm1, %v6596_v22  ;;  %5790 = vmatprep.subr.bf16.mxu0 %v289_v34 }
  0xfd   :  { %5762 = vmatprep.mubr.msk.bf16.mxu0 %vm403_vm1, %v6603_v26  ;;  %5791 = vmatpush3.bf16.msra.mxu0 %v289_v34 }
  0xfe   :  { %5792 = vmatprep.subr.bf16.mxu0 %v290_v31  ;;  %5775 = vmatmul.mubr.msk.bf16.gmra.mrb[4].mxu1 %vm403_vm1, %v6613_v29 }
  0xff   :  { %5778 = vmatprep.mubr.msk.bf16.mxu1 %vm403_vm1, %v6618_v32  ;;  %5490 = vmatprep.subr.bf16.mxu1 %v5904_v33  ;;  %v5937_v33 = vld [vmem:[%s8259_s4 + $0x1c8] sm:$0xff]  }
 0x100   :  { %5491 = vmatpush3.bf16.msra.mxu1 %v5905_v35 }
 0x101   :  { %5793 = vmatpush3.bf16.msra.mxu0 %v290_v31  ;;  %5492 = vmatprep.subr.bf16.mxu1 %v5906_v36 }
 0x102   :  { %5514 = vmatprep.subr.bf16.mxu0 %v5896_v37 }
 0x104   :  { %5763 = vmatmul.mubr.msk.bf16.gmra.mrb[24].mxu0 %vm403_vm1, %v5885_v38  ;;  %5493 = vmatpush3.bf16.msra.mxu1 %v5908_v39  ;;  %v5939_v39 = vld [vmem:[%s8259_s4 + $0x188] sm:$0xff]  }
 0x105   :  { %5766 = vmatprep.mubr.msk.bf16.mxu0 %vm403_vm1, %v5886_v40  ;;  %5494 = vmatprep.subr.bf16.mxu1 %v5910_v41  ;;  %v5940_v41 = vld [vmem:[%s8259_s4 + $0x160] sm:$0xff]  }
 0x106   :  { %5779 = vmatmul.mubr.msk.bf16.gmra.mrb[8].mxu1 %vm403_vm1, %v5893_v42 }
 0x107   :  { %5782 = vmatprep.mubr.msk.bf16.mxu1 %vm403_vm1, %v5894_v43 }
 0x108   :  { %5495 = vmatpush3.bf16.msra.mxu1 %v5912_v44 }
 0x109   :  { %5496 = vmatprep.subr.bf16.mxu1 %v5914_v45 }
 0x10c   :  { %5767 = vmatmul.mubr.msk.bf16.gmra.mrb[28].mxu0 %vm403_vm1, %v5887_v46  ;;  %5497 = vmatpush3.bf16.msra.mxu1 %v5916_v47 }
 0x10d   :  { %5794 = vmatprep.mubr.msk.bf16.mxu0 %vm403_vm1, %v6528_v9  ;;  %5498 = vmatprep.subr.bf16.mxu1 %v5918_v48  ;;  %v5907_v9 = vld [vmem:[%s8259_s4 + $0xd0] sm:$0xff]   ;;  %v5942_v48 = vld [vmem:[%s8259_s4 + $0x120] sm:$0xff]  }
 0x10e   :  { %5783 = vmatmul.mubr.msk.bf16.gmra.mrb[12].mxu1 %vm403_vm1, %v5895_v49 }
 0x110   :  { %5499 = vmatpush3.bf16.msra.mxu1 %v5920_v50 }
 0x114   :  { %5795 = vmatmul.mubr.msk.bf16.vlgmr.msra.gmra.mrb[32].mxu0 %vm403_vm1, %v6559_v59  ;;  %v5919_v59 = vld [vmem:[%s8259_s4 + $0xe8] sm:$0xff]  }
 0x115   :  { %5798 = vmatprep.mubr.msk.bf16.mxu0 %vm403_vm1, %v6567_v0  ;;  %5515 = vmatpush3.bf16.msra.mxu0 %v5897_v51  ;;  %v5926_v0 = vld [vmem:[%s8259_s4 + $0xf8] sm:$0xff]  }
 0x116   :  { %5516 = vmatprep.subr.bf16.mxu0 %v5901_v52  ;;  %v5944_v52 = vld [vmem:[%s8259_s4 + $0x168] sm:$0xff]  }
 0x119   :  { %5517 = vmatpush3.bf16.msra.mxu0 %v5903_v53  ;;  %v5945_v53 = vld [vmem:[%s8259_s4 + $0x1d8] sm:$0xff]  }
 0x11a   :  { %5518 = vmatprep.subr.bf16.mxu0 %v5907_v9 }
 0x11c   :  { %5799 = vmatmul.mubr.msk.bf16.gmra.mrb[36].mxu0 %vm403_vm1, %v6596_v22 }
 0x11d   :  { %5802 = vmatprep.mubr.msk.bf16.mxu0 %vm403_vm1, %v6603_v26  ;;  %5519 = vmatpush3.bf16.msra.mxu0 %v5909_v54 }
 0x11e   :  { %5520 = vmatprep.subr.bf16.mxu0 %v5911_v55 }
 0x121   :  { %5521 = vmatpush3.bf16.msra.mxu0 %v5913_v56 }
 0x122   :  { %5522 = vmatprep.subr.bf16.mxu0 %v5915_v57  ;;  %v5946_v57 = vld [vmem:[%s8259_s4 + $0x128] sm:$0xff]  }
 0x124   :  { %5803 = vmatmul.mubr.msk.bf16.gmra.mrb[40].mxu0 %vm403_vm1, %v5885_v38  ;;  %v5938_v38 = vld [vmem:[%s8259_s4 + $0x118] sm:$0xff]  }
 0x125   :  { %5806 = vmatprep.mubr.msk.bf16.mxu0 %vm403_vm1, %v5886_v40  ;;  %5523 = vmatpush3.bf16.msra.mxu0 %v5917_v58  ;;  %v5947_v58 = vld [vmem:[%s8259_s4 + $0x198] sm:$0xff]  }
 0x126   :  { %5524 = vmatprep.subr.bf16.mxu0 %v5919_v59 }
 0x129   :  { %5525 = vmatpush3.bf16.msra.mxu0 %v5921_v60  ;;  %v5948_v60 = vld [vmem:[%s8259_s4 + $0x170] sm:$0xff]  }
 0x12a   :  { %5526 = vmatprep.subr.bf16.mxu0 %v5923_v62 }
 0x12c   :  { %5807 = vmatmul.mubr.msk.bf16.gmra.mrb[44].mxu0 %vm403_vm1, %v5887_v46 }
 0x12d   :  { %5810 = vmatprep.mubr.msk.bf16.mxu0 %vm403_vm1, %v6535_v10  ;;  %v5922_v10 = vld [vmem:[%s8259_s4 + $0x78] sm:$0xff]   ;;  %5527 = vmatpush3.bf16.msra.mxu0 %v5925_v63 }
 0x12e   :  { %5500 = vmatprep.subr.bf16.mxu1 %v5922_v10  ;;  %5528 = vmatprep.subr.bf16.mxu0 %v5926_v0  ;;  %v5949_v10 = vld [vmem:[%s8259_s4 + $0x1e0] sm:$0xff]  }
 0x12f   :  { %5501 = vmatpush3.bf16.msra.mxu1 %v5924_v61 }
 0x131   :  { %5529 = vmatpush3.bf16.msra.mxu0 %v5927_v1 }
 0x132   :  { %5570 = vmatprep.subr.bf16.mxu0 %v5933_v3  ;;  %v5951_v3 = vld [vmem:[%s8259_s4 + $0x1a0] sm:$0xff]  }
 0x134   :  { %5811 = vmatmul.mubr.msk.bf16.gmra.mrb[48].mxu0 %vm403_vm1, %v6572_v2  ;;  %v5928_v2 = vld [vmem:[%s8259_s4 + $0x140] sm:$0xff]  }
 0x135   :  { %5814 = vmatprep.mubr.msk.bf16.mxu0 %vm403_vm1, %v6577_v6  ;;  %5542 = vmatprep.subr.bf16.mxu1 %v5928_v2  ;;  %v5950_v2 = vld [vmem:[%s8259_s4 + $0x130] sm:$0xff]  }
 0x13c   :  { %5815 = vmatmul.mubr.msk.bf16.gmra.mrb[52].mxu0 %vm403_vm1, %v6613_v29  ;;  %v5935_v29 = vld [vmem:[%s8259_s4 + $0x180] sm:$0xff]  }
 0x13d   :  { %5818 = vmatprep.mubr.msk.bf16.mxu0 %vm403_vm1, %v6618_v32  ;;  %v5936_v32 = vld [vmem:[%s8259_s4 + $0x158] sm:$0xff]  }
 0x144   :  { %5819 = vmatmul.mubr.msk.bf16.gmra.mrb[56].mxu0 %vm403_vm1, %v5893_v42  ;;  %v5941_v42 = vld [vmem:[%s8259_s4 + $0x1d0] sm:$0xff]  }
 0x145   :  { %5822 = vmatprep.mubr.msk.bf16.mxu0 %vm403_vm1, %v5894_v43 }
 0x14c   :  { %5823 = vmatmul.mubr.msk.bf16.gmra.mrb[60].mxu0 %vm403_vm1, %v5895_v49  ;;  %v5943_v49 = vld [vmem:[%s8259_s4 + $0x190] sm:$0xff]   ;;  %vm2355_vm1 = vcmask 261120  }
 0x1c7   :  { %v5756_v4 = vpop.f32.mrb[16].mxu0 }
 0x1c8   :  { %v486_v5 = vpop.f32.mrb[17].mxu0 }
 0x1c9   :  { %v5757_v6 = vpop.f32.mrb[18].mxu0  ;;  %v6768_v7 = vpop.f32.mrb[0].mxu1 }
 0x1ca   :  { %v614_v8 = vpack.c.bf16 %v5757_v6, %v5756_v4  ;;  %v489_v12 = vpop.f32.mrb[19].mxu0  ;;  %v6773_v14 = vpop.f32.mrb[1].mxu1  ;;  %v5952_v6 = vld [vmem:[%s8259_s4 + $0x178] sm:$0xff]  }
 0x1cb   :  { %v613_v15 = vpack.c.bf16 %v489_v12, %v486_v5  ;;  %v6778_v17 = vpop.f32.mrb[2].mxu1 }
 0x1cc   :  { %1869 = vmatprep.mubr.bf16.mxu1 %v614_v8  ;;  %v622_v18 = vpack.c.bf16 %v6778_v17, %v6768_v7  ;;  %v6782_v19 = vpop.f32.mrb[3].mxu1  ;;  %v5953_v8 = vld [vmem:[%s8259_s4 + $0x1e8] sm:$0xff]   ;;  %v5977_v17 = vld [vmem:[%s8259_s4 + $0x2d8] sm:$0xff]  }
 0x1cd   :  { %1870 = vmatmul.mubr.bf16.vlgmr.msra.gmra.mrb[16].mxu1 %v613_v15  ;;  %v621_v20 = vpack.c.bf16 %v6782_v19, %v6773_v14  ;;  %v5976_v7 = vld [vmem:[%s8259_s4 + $0x268] sm:$0xff]   ;;  %v5997_v14 = vld [vmem:[%s8259_s4 + $0x3c0] sm:$0xff]  }
 0x1ce   :  { %5543 = vmatpush3.bf16.msra.mxu1 %v5929_v13 }
 0x1cf   :  { %v5760_v22 = vpop.f32.mrb[20].mxu0  ;;  %5544 = vmatprep.subr.bf16.mxu1 %v5930_v16 }
 0x1d0   :  { %v502_v24 = vpop.f32.mrb[21].mxu0 }
 0x1d1   :  { %v5761_v25 = vpop.f32.mrb[22].mxu0  ;;  %v6792_v26 = vpop.f32.mrb[4].mxu1 }
 0x1d2   :  { %v616_v11 = vpack.c.bf16 %v5761_v25, %v5760_v22  ;;  %v505_v27 = vpop.f32.mrb[23].mxu0  ;;  %5545 = vmatpush3.bf16.msra.mxu1 %v5931_v21  ;;  %v6800_v30 = vpop.f32.mrb[5].mxu1  ;;  %v5954_v21 = vld [vmem:[%s8259_s4 + $0x138] sm:$0xff]   ;;  %v5955_v22 = vld [vmem:[%s8259_s4 + $0x1a8] sm:$0xff]   ;;  %v5957_v25 = vld [vmem:[%s8259_s4 + $0x240] sm:$0xff]  }
 0x1d3   :  { %v615_v31 = vpack.c.bf16 %v505_v27, %v502_v24  ;;  %5546 = vmatprep.subr.bf16.mxu1 %v5932_v23  ;;  %v6808_v34 = vpop.f32.mrb[6].mxu1  ;;  %v5956_v24 = vld [vmem:[%s8259_s4 + $0x1f0] sm:$0xff]  }
 0x1d4   :  { %1918 = vmatprep.mubr.bf16.mxu0 %v616_v11  ;;  %v624_v35 = vpack.c.bf16 %v6808_v34, %v6792_v26  ;;  %v6812_v36 = vpop.f32.mrb[7].mxu1  ;;  %v5984_v26 = vld [vmem:[%s8259_s4 + $0x278] sm:$0xff]   ;;  %v5985_v34 = vld [vmem:[%s8259_s4 + $0x2e8] sm:$0xff]  }
 0x1d5   :  { %1919 = vmatmul.mubr.bf16.vlgmr.msra.gmra.mrb[64].mxu0 %v615_v31  ;;  %v623_v37 = vpack.c.bf16 %v6812_v36, %v6800_v30  ;;  %v5958_v31 = vld [vmem:[%s8259_s4 + $0x1b0] sm:$0xff]  }
 0x1d6   :  { %5547 = vmatpush3.bf16.msra.mxu1 %v5934_v28  ;;  %5571 = vmatpush3.bf16.msra.mxu0 %v5935_v29  ;;  %v6005_v30 = vld [vmem:[%s8259_s4 + $0x3d0] sm:$0xff]  }
 0x1d7   :  { %v6822_v40 = vpop.f32.mrb[24].mxu0  ;;  %5548 = vmatprep.subr.bf16.mxu1 %v5936_v32  ;;  %5572 = vmatprep.subr.bf16.mxu0 %v5937_v33  ;;  %v5960_v33 = vld [vmem:[%s8259_s4 + $0x1f8] sm:$0xff]  }
 0x1d8   :  { %v6830_v43 = vpop.f32.mrb[25].mxu0 }
 0x1d9   :  { %v6832_v44 = vpop.f32.mrb[26].mxu0  ;;  %v6834_v45 = vpop.f32.mrb[8].mxu1 }
 0x1da   :  { %v618_v46 = vpack.c.bf16 %v6832_v44, %v6822_v40  ;;  %v6838_v47 = vpop.f32.mrb[27].mxu0  ;;  %5549 = vmatpush3.bf16.msra.mxu1 %v5938_v38  ;;  %5573 = vmatpush3.bf16.msra.mxu0 %v5939_v39  ;;  %v6846_v50 = vpop.f32.mrb[9].mxu1  ;;  %v5962_v38 = vld [vmem:[%s8259_s4 + $0x1b8] sm:$0xff]   ;;  %v5959_v40 = vld [vmem:[%s8259_s4 + $0x200] sm:$0xff]  }
 0x1db   :  { %v617_v51 = vpack.c.bf16 %v6838_v47, %v6830_v43  ;;  %5550 = vmatprep.subr.bf16.mxu1 %v5940_v41  ;;  %5574 = vmatprep.subr.bf16.mxu0 %v5941_v42  ;;  %v6856_v9 = vpop.f32.mrb[10].mxu1  ;;  %v5965_v41 = vld [vmem:[%s8259_s4 + $0x2c0] sm:$0xff]   ;;  %v5966_v43 = vld [vmem:[%s8259_s4 + $0x210] sm:$0xff]  }
 0x1dc   :  { %v626_v54 = vpack.c.bf16 %v6856_v9, %v6834_v45  ;;  %v6860_v55 = vpop.f32.mrb[11].mxu1  ;;  %v5967_v47 = vld [vmem:[%s8259_s4 + $0x280] sm:$0xff]   ;;  %v6008_v45 = vld [vmem:[%s8259_s4 + $0x368] sm:$0xff]   ;;  %v6009_v9 = vld [vmem:[%s8259_s4 + $0x3d8] sm:$0xff]  }
 0x1dd   :  { %v625_v56 = vpack.c.bf16 %v6860_v55, %v6846_v50 }
 0x1de   :  { %5551 = vmatpush3.bf16.msra.mxu1 %v5942_v48  ;;  %5575 = vmatpush3.bf16.msra.mxu0 %v5943_v49 }
 0x1df   :  { %v6870_v59 = vpop.f32.mrb[28].mxu0  ;;  %5552 = vmatprep.subr.bf16.mxu1 %v5944_v52  ;;  %5576 = vmatprep.subr.bf16.mxu0 %v5945_v53  ;;  %v5963_v53 = vld [vmem:[%s8259_s4 + $0x208] sm:$0xff]  }
 0x1e0   :  { %v6878_v61 = vpop.f32.mrb[29].mxu0 }
 0x1e1   :  { %v5769_v62 = vpop.f32.mrb[30].mxu0  ;;  %v6880_v63 = vpop.f32.mrb[12].mxu1 }
 0x1e2   :  { %v620_v0 = vpack.c.bf16 %v5769_v62, %v6870_v59  ;;  %v6883_v1 = vpop.f32.mrb[31].mxu0  ;;  %5553 = vmatpush3.bf16.msra.mxu1 %v5946_v57  ;;  %5577 = vmatpush3.bf16.msra.mxu0 %v5947_v58  ;;  %v6891_v4 = vpop.f32.mrb[13].mxu1  ;;  %v5964_v58 = vld [vmem:[%s8259_s4 + $0x250] sm:$0xff]  }
 0x1e3   :  { %v619_v5 = vpack.c.bf16 %v6883_v1, %v6878_v61  ;;  %5554 = vmatprep.subr.bf16.mxu1 %v5948_v60  ;;  %5578 = vmatprep.subr.bf16.mxu0 %v5949_v10  ;;  %v6901_v12 = vpop.f32.mrb[14].mxu1  ;;  %v5973_v61 = vld [vmem:[%s8259_s4 + $0x2d0] sm:$0xff]  }
 0x1e4   :  { %v628_v13 = vpack.c.bf16 %v6901_v12, %v6880_v63  ;;  %v6905_v15 = vpop.f32.mrb[15].mxu1  ;;  %v6017_v63 = vld [vmem:[%s8259_s4 + $0x3e8] sm:$0xff]   ;;  %v6018_v12 = vld [vmem:[%s8259_s4 + $0x338] sm:$0xff]  }
 0x1e5   :  { %v627_v16 = vpack.c.bf16 %v6905_v15, %v6891_v4 }
 0x1e6   :  { %5555 = vmatpush3.bf16.msra.mxu1 %v5950_v2  ;;  %5579 = vmatpush3.bf16.msra.mxu0 %v5951_v3  ;;  %v5969_v2 = vld [vmem:[%s8259_s4 + $0x2c8] sm:$0xff]   ;;  %v5970_v3 = vld [vmem:[%s8259_s4 + $0x218] sm:$0xff]  }
 0x1e7   :  { %v5796_v23 = vpop.f32.mrb[32].mxu0  ;;  %5556 = vmatprep.subr.bf16.mxu1 %v5952_v6  ;;  %5580 = vmatprep.subr.bf16.mxu0 %v5953_v8  ;;  %v5971_v6 = vld [vmem:[%s8259_s4 + $0x288] sm:$0xff]  }
 0x1e8   :  { %v663_v11 = vpop.f32.mrb[33].mxu0 }
 0x1e9   :  { %v5797_v27 = vpop.f32.mrb[34].mxu0 }
 0x1ea   :  { %v791_v28 = vpack.c.bf16 %v5797_v27, %v5796_v23  ;;  %v666_v29 = vpop.f32.mrb[35].mxu0  ;;  %5557 = vmatpush3.bf16.msra.mxu1 %v5954_v21  ;;  %5581 = vmatpush3.bf16.msra.mxu0 %v5955_v22  ;;  %v5972_v21 = vld [vmem:[%s8259_s4 + $0x260] sm:$0xff]   ;;  %v5979_v27 = vld [vmem:[%s8259_s4 + $0x298] sm:$0xff]  }
 0x1eb   :  { %v790_v32 = vpack.c.bf16 %v666_v29, %v663_v11  ;;  %5582 = vmatprep.subr.bf16.mxu0 %v5956_v24  ;;  %5598 = vmatprep.subr.bf16.mxu1 %v5957_v25  ;;  %v5974_v24 = vld [vmem:[%s8259_s4 + $0x220] sm:$0xff]   ;;  %v5975_v25 = vld [vmem:[%s8259_s4 + $0x290] sm:$0xff]  }
 0x1ec   :  { %1877 = vmatprep.mubr.bf16.mxu1 %v791_v28  ;;  %v5980_v28 = vld [vmem:[%s8259_s4 + $0x270] sm:$0xff]   ;;  %v5981_v29 = vld [vmem:[%s8259_s4 + $0x2e0] sm:$0xff]  }
 0x1ed   :  { %1878 = vmatmul.mubr.bf16.gmra.mrb[20].mxu1 %v790_v32 }
 0x1ee   :  { %1967 = vmatprep.mubr.bf16.mxu1 %v618_v46  ;;  %5583 = vmatpush3.bf16.msra.mxu0 %v5958_v31  ;;  %v5961_v46 = vld [vmem:[%s8259_s4 + $0x248] sm:$0xff]  }
 0x1ef   :  { %v5800_v39 = vpop.f32.mrb[36].mxu0  ;;  %5584 = vmatprep.subr.bf16.mxu0 %v5960_v33 }
 0x1f0   :  { %v679_v42 = vpop.f32.mrb[37].mxu0 }
 0x1f1   :  { %v5801_v48 = vpop.f32.mrb[38].mxu0 }
 0x1f2   :  { %v793_v49 = vpack.c.bf16 %v5801_v48, %v5800_v39  ;;  %v682_v52 = vpop.f32.mrb[39].mxu0  ;;  %5585 = vmatpush3.bf16.msra.mxu0 %v5962_v38  ;;  %v5982_v38 = vld [vmem:[%s8259_s4 + $0x230] sm:$0xff]   ;;  %v5983_v39 = vld [vmem:[%s8259_s4 + $0x2a0] sm:$0xff]   ;;  %v5986_v48 = vld [vmem:[%s8259_s4 + $0x238] sm:$0xff]  }
 0x1f3   :  { %v792_v44 = vpack.c.bf16 %v682_v52, %v679_v42  ;;  %5626 = vmatprep.subr.bf16.mxu0 %v5965_v41  ;;  %v5988_v52 = vld [vmem:[%s8259_s4 + $0x2f0] sm:$0xff]  }
 0x1f4   :  { %1926 = vmatprep.mubr.bf16.mxu0 %v793_v49  ;;  %v5987_v49 = vld [vmem:[%s8259_s4 + $0x2a8] sm:$0xff]  }
 0x1f5   :  { %1927 = vmatmul.mubr.bf16.gmra.mrb[68].mxu0 %v792_v44  ;;  %1968 = vmatmul.mubr.bf16.vlgmr.msra.gmra.mrb[24].mxu1 %v617_v51 }
 0x1f6   :  { %5599 = vmatpush3.bf16.msra.mxu1 %v5959_v40  ;;  %2016 = vmatprep.mubr.bf16.mxu0 %v620_v0  ;;  %v5968_v0 = vld [vmem:[%s8259_s4 + $0x258] sm:$0xff]   ;;  %v5989_v40 = vld [vmem:[%s8259_s4 + $0x340] sm:$0xff]  }
 0x1f7   :  { %v5804_v57 = vpop.f32.mrb[40].mxu0  ;;  %5600 = vmatprep.subr.bf16.mxu1 %v5961_v46 }
 0x1f8   :  { %v695_v59 = vpop.f32.mrb[41].mxu0 }
 0x1f9   :  { %v5805_v60 = vpop.f32.mrb[42].mxu0 }
 0x1fa   :  { %v795_v10 = vpack.c.bf16 %v5805_v60, %v5804_v57  ;;  %5601 = vmatpush3.bf16.msra.mxu1 %v5963_v53  ;;  %v698_v62 = vpop.f32.mrb[43].mxu0  ;;  %v5990_v57 = vld [vmem:[%s8259_s4 + $0x2b0] sm:$0xff]  }
 0x1fb   :  { %v794_v51 = vpack.c.bf16 %v698_v62, %v695_v59  ;;  %5602 = vmatprep.subr.bf16.mxu1 %v5964_v58  ;;  %v5991_v58 = vld [vmem:[%s8259_s4 + $0x300] sm:$0xff]   ;;  %v5993_v62 = vld [vmem:[%s8259_s4 + $0x348] sm:$0xff]  }
 0x1fc   :  { %1975 = vmatprep.mubr.bf16.mxu1 %v795_v10  ;;  %v5992_v10 = vld [vmem:[%s8259_s4 + $0x2f8] sm:$0xff]  }
 0x1fd   :  { %1976 = vmatmul.mubr.bf16.gmra.mrb[28].mxu1 %v794_v51  ;;  %2017 = vmatmul.mubr.bf16.vlgmr.msra.gmra.mrb[72].mxu0 %v619_v5  ;;  %v5995_v51 = vld [vmem:[%s8259_s4 + $0x308] sm:$0xff]  }
 0x1fe   :  { %5603 = vmatpush3.bf16.msra.mxu1 %v5966_v43  ;;  %5627 = vmatpush3.bf16.msra.mxu0 %v5967_v47  ;;  %v5994_v47 = vld [vmem:[%s8259_s4 + $0x2b8] sm:$0xff]  }
 0x1ff   :  { %v5808_v8 = vpop.f32.mrb[44].mxu0  ;;  %5604 = vmatprep.subr.bf16.mxu1 %v5968_v0  ;;  %5628 = vmatprep.subr.bf16.mxu0 %v5969_v2  ;;  %v5996_v0 = vld [vmem:[%s8259_s4 + $0x350] sm:$0xff]  }
 0x200   :  { %v711_v1 = vpop.f32.mrb[45].mxu0  ;;  %2065 = vmatprep.mubr.bf16.mxu1 %v622_v18  ;;  %v5978_v18 = vld [vmem:[%s8259_s4 + $0x228] sm:$0xff]  }
 0x201   :  { %v5809_v5 = vpop.f32.mrb[46].mxu0 }
 0x202   :  { %v797_v22 = vpack.c.bf16 %v5809_v5, %v5808_v8  ;;  %5605 = vmatpush3.bf16.msra.mxu1 %v5970_v3  ;;  %5629 = vmatpush3.bf16.msra.mxu0 %v5971_v6  ;;  %v714_v23 = vpop.f32.mrb[47].mxu0  ;;  %v5998_v3 = vld [vmem:[%s8259_s4 + $0x310] sm:$0xff]   ;;  %v5999_v6 = vld [vmem:[%s8259_s4 + $0x380] sm:$0xff]  }
 0x203   :  { %v796_v11 = vpack.c.bf16 %v714_v23, %v711_v1  ;;  %5606 = vmatprep.subr.bf16.mxu1 %v5972_v21  ;;  %5630 = vmatprep.subr.bf16.mxu0 %v5973_v61  ;;  %v6000_v61 = vld [vmem:[%s8259_s4 + $0x358] sm:$0xff]   ;;  %v6001_v1 = vld [vmem:[%s8259_s4 + $0x3c8] sm:$0xff]  }
 0x204   :  { %2024 = vmatprep.mubr.bf16.mxu0 %v797_v22  ;;  %v6002_v22 = vld [vmem:[%s8259_s4 + $0x318] sm:$0xff]   ;;  %v6003_v23 = vld [vmem:[%s8259_s4 + $0x388] sm:$0xff]  }
 0x205   :  { %2025 = vmatmul.mubr.bf16.gmra.mrb[76].mxu0 %v796_v11  ;;  %v6006_v11 = vld [vmem:[%s8259_s4 + $0x320] sm:$0xff]  }
 0x206   :  { %5607 = vmatpush3.bf16.msra.mxu1 %v5974_v24  ;;  %5631 = vmatpush3.bf16.msra.mxu0 %v5975_v25  ;;  %v6004_v24 = vld [vmem:[%s8259_s4 + $0x360] sm:$0xff]  }
 0x207   :  { %5608 = vmatprep.subr.bf16.mxu1 %v5976_v7  ;;  %5632 = vmatprep.subr.bf16.mxu0 %v5977_v17  ;;  %v5812_v31 = vpop.f32.mrb[48].mxu0  ;;  %v6007_v7 = vld [vmem:[%s8259_s4 + $0x390] sm:$0xff]  }
 0x208   :  { %v727_v32 = vpop.f32.mrb[49].mxu0  ;;  %2114 = vmatprep.mubr.bf16.mxu0 %v624_v35 }
 0x209   :  { %v5813_v33 = vpop.f32.mrb[50].mxu0 }
 0x20a   :  { %5609 = vmatpush3.bf16.msra.mxu1 %v5978_v18  ;;  %5633 = vmatpush3.bf16.msra.mxu0 %v5979_v27  ;;  %v799_v41 = vpack.c.bf16 %v5813_v33, %v5812_v31  ;;  %v730_v42 = vpop.f32.mrb[51].mxu0  ;;  %v6010_v27 = vld [vmem:[%s8259_s4 + $0x328] sm:$0xff]   ;;  %v6013_v31 = vld [vmem:[%s8259_s4 + $0x3e0] sm:$0xff]  }
 0x20b   :  { %5610 = vmatprep.subr.bf16.mxu1 %v5980_v28  ;;  %5634 = vmatprep.subr.bf16.mxu0 %v5981_v29  ;;  %v798_v35 = vpack.c.bf16 %v730_v42, %v727_v32  ;;  %v6011_v28 = vld [vmem:[%s8259_s4 + $0x398] sm:$0xff]   ;;  %v6012_v29 = vld [vmem:[%s8259_s4 + $0x370] sm:$0xff]   ;;  %v6015_v33 = vld [vmem:[%s8259_s4 + $0x3a0] sm:$0xff]  }
 0x20c   :  { %v6014_v32 = vld [vmem:[%s8259_s4 + $0x330] sm:$0xff]   ;;  %v6022_v42 = vld [vmem:[%s8259_s4 + $0x3f8] sm:$0xff]  }
 0x20e   :  { %5611 = vmatpush3.bf16.msra.mxu1 %v5982_v38  ;;  %5635 = vmatpush3.bf16.msra.mxu0 %v5983_v39  ;;  %v6016_v38 = vld [vmem:[%s8259_s4 + $0x378] sm:$0xff]   ;;  %v6020_v39 = vld [vmem:[%s8259_s4 + $0x3f0] sm:$0xff]  }
 0x20f   :  { %5612 = vmatprep.subr.bf16.mxu1 %v5984_v26  ;;  %5636 = vmatprep.subr.bf16.mxu0 %v5985_v34  ;;  %v5816_v44 = vpop.f32.mrb[52].mxu0  ;;  %v6023_v26 = vld [vmem:[%s8259_s4 + $0x3b8] sm:$0xff]  }
 0x210   :  { %v7032_v46 = vpop.f32.mrb[53].mxu0 }
 0x211   :  { %v5817_v53 = vpop.f32.mrb[54].mxu0 }
 0x212   :  { %5613 = vmatpush3.bf16.msra.mxu1 %v5986_v48  ;;  %5637 = vmatpush3.bf16.msra.mxu0 %v5987_v49  ;;  %v801_v59 = vpack.c.bf16 %v5817_v53, %v5816_v44  ;;  %v746_v60 = vpop.f32.mrb[55].mxu0  ;;  %v6024_v49 = vld [vmem:[%s8262_s6] sm:$0xff]  }
 0x213   :  { %5638 = vmatprep.subr.bf16.mxu0 %v5988_v52  ;;  %5654 = vmatprep.subr.bf16.mxu1 %v5989_v40  ;;  %v800_v43 = vpack.c.bf16 %v746_v60, %v7032_v46  ;;  %v5003_v52 = vld [vmem:[%s8261_s5] ss:$0 sm:$0xff] }
 0x215   :  { %2066 = vmatmul.mubr.bf16.vlgmr.msra.gmra.mrb[32].mxu1 %v621_v20 }
 0x216   :  { %5639 = vmatpush3.bf16.msra.mxu0 %v5990_v57  ;;  %5655 = vmatpush3.bf16.msra.mxu1 %v5991_v58 }
 0x217   :  { %5640 = vmatprep.subr.bf16.mxu0 %v5992_v10  ;;  %5656 = vmatprep.subr.bf16.mxu1 %v5993_v62  ;;  %v7062_v19 = vpop.f32.mrb[56].mxu0 }
 0x218   :  { %2073 = vmatprep.mubr.bf16.mxu1 %v799_v41  ;;  %v7064_v20 = vpop.f32.mrb[57].mxu0  ;;  %v6021_v41 = vld [vmem:[%s8259_s4 + $0x3b0] sm:$0xff]  }
 0x219   :  { %v7066_v2 = vpop.f32.mrb[58].mxu0 }
 0x21a   :  { %5641 = vmatpush3.bf16.msra.mxu0 %v5994_v47  ;;  %5657 = vmatpush3.bf16.msra.mxu1 %v5995_v51  ;;  %v803_v8 = vpack.c.bf16 %v7066_v2, %v7062_v19  ;;  %v7076_v21 = vpop.f32.mrb[59].mxu0 }
 0x21b   :  { %5658 = vmatprep.subr.bf16.mxu1 %v5996_v0  ;;  %5682 = vmatprep.subr.bf16.mxu0 %v5997_v14  ;;  %v802_v5 = vpack.c.bf16 %v7076_v21, %v7064_v20 }
 0x21d   :  { %2074 = vmatmul.mubr.bf16.gmra.mrb[36].mxu1 %v798_v35  ;;  %2115 = vmatmul.mubr.bf16.vlgmr.msra.gmra.mrb[80].mxu0 %v623_v37 }
 0x21e   :  { %5659 = vmatpush3.bf16.msra.mxu1 %v5998_v3  ;;  %5683 = vmatpush3.bf16.msra.mxu0 %v5999_v6 }
 0x21f   :  { %5660 = vmatprep.subr.bf16.mxu1 %v6000_v61  ;;  %5684 = vmatprep.subr.bf16.mxu0 %v6001_v1  ;;  %v5824_v36 = vpop.f32.mrb[60].mxu0 }
 0x220   :  { %2122 = vmatprep.mubr.bf16.mxu0 %v801_v59  ;;  %2163 = vmatprep.mubr.bf16.mxu1 %v626_v54  ;;  %v775_v37 = vpop.f32.mrb[61].mxu0 }
 0x221   :  { %v5825_v25 = vpop.f32.mrb[62].mxu0 }
 0x222   :  { %5661 = vmatpush3.bf16.msra.mxu1 %v6002_v22  ;;  %5685 = vmatpush3.bf16.msra.mxu0 %v6003_v23  ;;  %v805_v17 = vpack.c.bf16 %v5825_v25, %v5824_v36  ;;  %v778_v18 = vpop.f32.mrb[63].mxu0 }
 0x223   :  { %5662 = vmatprep.subr.bf16.mxu1 %v6004_v24  ;;  %5686 = vmatprep.subr.bf16.mxu0 %v6005_v30  ;;  %v804_v54 = vpack.c.bf16 %v778_v18, %v775_v37 }
 0x225   :  { %2123 = vmatmul.mubr.bf16.gmra.mrb[84].mxu0 %v800_v43 }
 0x226   :  { %5663 = vmatpush3.bf16.msra.mxu1 %v6006_v11  ;;  %5687 = vmatpush3.bf16.msra.mxu0 %v6007_v7 }
 0x227   :  { %5664 = vmatprep.subr.bf16.mxu1 %v6008_v45  ;;  %5688 = vmatprep.subr.bf16.mxu0 %v6009_v9 }
 0x228   :  { %2212 = vmatprep.mubr.bf16.mxu0 %v628_v13  ;;  %v6019_v13 = vld [vmem:[%s8259_s4 + $0x3a8] sm:$0xff]  }
 0x22a   :  { %5665 = vmatpush3.bf16.msra.mxu1 %v6010_v27  ;;  %5689 = vmatpush3.bf16.msra.mxu0 %v6011_v28 }
 0x22b   :  { %5666 = vmatprep.subr.bf16.mxu1 %v6012_v29  ;;  %5690 = vmatprep.subr.bf16.mxu0 %v6013_v31 }
 0x22e   :  { %5667 = vmatpush3.bf16.msra.mxu1 %v6014_v32  ;;  %5691 = vmatpush3.bf16.msra.mxu0 %v6015_v33 }
 0x22f   :  { %5668 = vmatprep.subr.bf16.mxu1 %v6016_v38  ;;  %5692 = vmatprep.subr.bf16.mxu0 %v6017_v63 }
 0x232   :  { %5669 = vmatpush3.bf16.msra.mxu1 %v6018_v12  ;;  %5693 = vmatpush3.bf16.msra.mxu0 %v6019_v13  ;;  %v6045_v12 = vld [vmem:[%s8263_s7 + $0x100] ss:$8 sps:$4 sm:$0xff]   ;;  %v6047_v13 = vld [vmem:[%s8263_s7 + $0x104] ss:$8 sps:$4 sm:$0xff]  }
 0x233   :  { %5694 = vmatprep.subr.bf16.mxu0 %v6020_v39 }
 0x235   :  { %2164 = vmatmul.mubr.bf16.vlgmr.msra.gmra.mrb[40].mxu1 %v625_v56 }
 0x236   :  { %5695 = vmatpush3.bf16.msra.mxu0 %v6021_v41  ;;  %2171 = vmatprep.mubr.bf16.mxu1 %v803_v8 }
 0x237   :  { %5696 = vmatprep.subr.bf16.mxu0 %v6022_v42  ;;  %v6053_v42 = vld [vmem:[%s8263_s7 + $0x114] ss:$8 sps:$4 sm:$0xff]  }
 0x23a   :  { %5697 = vmatpush3.bf16.msra.mxu0 %v6023_v26 }
 0x23b   :  { %4158 = vmatprep.subr.bf16.mxu0 %v6047_v13  ;;  %v6121_v13 = vld [vmem:[%s8263_s7 + $0x1c0] ss:$8 sps:$4 sm:$0xff]  }
 0x23d   :  { %2172 = vmatmul.mubr.bf16.gmra.mrb[44].mxu1 %v802_v5  ;;  %2213 = vmatmul.mubr.bf16.vlgmr.msra.gmra.mrb[88].mxu0 %v627_v16 }
 0x23e   :  { %2220 = vmatprep.mubr.bf16.mxu0 %v805_v17  ;;  %5830 = vmatprep.mubr.msk.bf16.mxu1 %vm2355_vm1, %v6024_v49 }
 0x23f   :  { %4159 = vmatpush1.bf16.msra.mxu0 %v6045_v12  ;;  %v6123_v12 = vld [vmem:[%s8263_s7 + $0x1c4] ss:$8 sps:$4 sm:$0xff]  }
 0x240   :  { %4160 = vmatprep.subr.bf16.mxu0 %v6053_v42 }
 0x245   :  { %2221 = vmatmul.mubr.bf16.gmra.mrb[92].mxu0 %v804_v54 }
 0x2a0   :  { %v5502_v50 = vpop.f32.mrb[16].mxu1 }
 0x2a1   :  { %v5503_v55 = vpop.f32.mrb[17].mxu1 }
 0x2a2   :  { %v5504_v56 = vadd.f32 %v5503_v55, %v5502_v50  ;;  %v5505_v34 = vpop.f32.mrb[18].mxu1  ;;  %v6051_v55 = vld [vmem:[%s8263_s7 + $0x110] ss:$8 sps:$4 sm:$0xff]  }
 0x2a3   :  { %v5506_v35 = vpop.f32.mrb[19].mxu1  ;;  %4161 = vmatpush1.bf16.msra.mxu0 %v6051_v55 }
 0x2a4   :  { %v5507_v48 = vadd.f32 %v5506_v35, %v5505_v34  ;;  %v1872_v15 = vadd.f32 %v5504_v56, %v5003_v52 }
 0x2a6   :  { %v1875_v53 = vadd.f32 %v5507_v48, %v5003_v52  ;;  %v6059_v48 = vld [vmem:[%s8263_s7 + $0x124] ss:$8 sps:$4 sm:$0xff]  }
 0x2a7   :  { %4162 = vmatprep.subr.bf16.mxu0 %v6059_v48 }
 0x2a8   :  { %v5530_v40 = vpop.f32.mrb[64].mxu0 }
 0x2a9   :  { %v5531_v4 = vpop.f32.mrb[65].mxu0 }
 0x2aa   :  { %v5532_v16 = vadd.f32 %v5531_v4, %v5530_v40  ;;  %v5533_v44 = vpop.f32.mrb[66].mxu0  ;;  %v6065_v40 = vld [vmem:[%s8263_s7 + $0x134] ss:$8 sps:$4 sm:$0xff]   ;;  %v6063_v4 = vld [vmem:[%s8263_s7 + $0x130] ss:$8 sps:$4 sm:$0xff]  }
 0x2ab   :  { %v5534_v46 = vpop.f32.mrb[67].mxu0 }
 0x2ac   :  { %v1921_v57 = vadd.f32 %v5532_v16, %v1872_v15  ;;  %v5535_v58 = vadd.f32 %v5534_v46, %v5533_v44  ;;  %v6071_v15 = vld [vmem:[%s8263_s7 + $0x144] ss:$8 sps:$4 sm:$0xff]   ;;  %v6069_v16 = vld [vmem:[%s8263_s7 + $0x140] ss:$8 sps:$4 sm:$0xff]   ;;  %v6077_v44 = vld [vmem:[%s8263_s7 + $0x154] ss:$8 sps:$4 sm:$0xff]  }
 0x2ae   :  { %v1924_v59 = vadd.f32 %v5535_v58, %v1875_v53 }
 0x2c0   :  { %v5508_v60 = vpop.f32.mrb[20].mxu1 }
 0x2c1   :  { %v5509_v10 = vpop.f32.mrb[21].mxu1 }
 0x2c2   :  { %v5510_v62 = vadd.f32 %v5509_v10, %v5508_v60  ;;  %v5511_v43 = vpop.f32.mrb[22].mxu1  ;;  %v6083_v10 = vld [vmem:[%s8263_s7 + $0x164] ss:$8 sps:$4 sm:$0xff]  }
 0x2c3   :  { %v5512_v47 = vpop.f32.mrb[23].mxu1 }
 0x2c4   :  { %v5513_v51 = vadd.f32 %v5512_v47, %v5511_v43  ;;  %v1880_v2 = vadd.f32 %v5510_v62, %v5003_v52 }
 0x2c6   :  { %v1883_v61 = vadd.f32 %v5513_v51, %v5003_v52  ;;  %v6057_v52 = vld [vmem:[%s8263_s7 + $0x120] ss:$8 sps:$4 sm:$0xff]  }
 0x2c7   :  { %4163 = vmatpush1.bf16.msra.mxu0 %v6057_v52  ;;  %v6081_v51 = vld [vmem:[%s8263_s7 + $0x160] ss:$8 sps:$4 sm:$0xff]  }
 0x2c8   :  { %v5536_v0 = vpop.f32.mrb[68].mxu0  ;;  %v5558_v14 = vpop.f32.mrb[24].mxu1  ;;  %4164 = vmatprep.subr.bf16.mxu0 %v6065_v40 }
 0x2c9   :  { %v5537_v19 = vpop.f32.mrb[69].mxu0  ;;  %v5559_v20 = vpop.f32.mrb[25].mxu1 }
 0x2ca   :  { %v5538_v3 = vadd.f32 %v5537_v19, %v5536_v0  ;;  %v5560_v6 = vadd.f32 %v5559_v20, %v5558_v14  ;;  %v5539_v8 = vpop.f32.mrb[70].mxu0  ;;  %v5561_v21 = vpop.f32.mrb[26].mxu1  ;;  %v6089_v0 = vld [vmem:[%s8263_s7 + $0x174] ss:$8 sps:$4 sm:$0xff]  }
 0x2cb   :  { %v5540_v1 = vpop.f32.mrb[71].mxu0  ;;  %v5562_v5 = vpop.f32.mrb[27].mxu1  ;;  %4165 = vmatpush1.bf16.msra.mxu0 %v6063_v4 }
 0x2cc   :  { %v1929_v22 = vadd.f32 %v5538_v3, %v1880_v2  ;;  %v1970_v23 = vadd.f32 %v5560_v6, %v1921_v57  ;;  %v5541_v24 = vadd.f32 %v5540_v1, %v5539_v8  ;;  %v5563_v30 = vadd.f32 %v5562_v5, %v5561_v21  ;;  %4166 = vmatprep.subr.bf16.mxu0 %v6071_v15 }
 0x2ce   :  { %v1932_v36 = vadd.f32 %v5541_v24, %v1883_v61  ;;  %v1973_v37 = vadd.f32 %v5563_v30, %v1924_v59  ;;  %v6075_v59 = vld [vmem:[%s8263_s7 + $0x150] ss:$8 sps:$4 sm:$0xff]  }
 0x2cf   :  { %4167 = vmatpush1.bf16.msra.mxu0 %v6069_v16  ;;  %v6087_v61 = vld [vmem:[%s8263_s7 + $0x170] ss:$8 sps:$4 sm:$0xff]  }
 0x2d0   :  { %v5564_v25 = vpop.f32.mrb[28].mxu1  ;;  %v5586_v11 = vpop.f32.mrb[72].mxu0  ;;  %4168 = vmatprep.subr.bf16.mxu0 %v6077_v44 }
 0x2d1   :  { %v5565_v7 = vpop.f32.mrb[29].mxu1  ;;  %v5587_v17 = vpop.f32.mrb[73].mxu0 }
 0x2d2   :  { %v5566_v18 = vadd.f32 %v5565_v7, %v5564_v25  ;;  %v5588_v45 = vadd.f32 %v5587_v17, %v5586_v11  ;;  %v5567_v9 = vpop.f32.mrb[30].mxu1  ;;  %v5589_v54 = vpop.f32.mrb[74].mxu0  ;;  %v6095_v11 = vld [vmem:[%s8263_s7 + $0x180] ss:$8 sps:$4 sm:$0xff]   ;;  %v6103_v7 = vld [vmem:[%s8263_s7 + $0x194] ss:$8 sps:$4 sm:$0xff]  }
 0x2d3   :  { %v5568_v27 = vpop.f32.mrb[31].mxu1  ;;  %v5590_v28 = vpop.f32.mrb[75].mxu0  ;;  %4169 = vmatpush1.bf16.msra.mxu0 %v6075_v59 }
 0x2d4   :  { %v1978_v29 = vadd.f32 %v5566_v18, %v1929_v22  ;;  %v2019_v31 = vadd.f32 %v5588_v45, %v1970_v23  ;;  %v5569_v32 = vadd.f32 %v5568_v27, %v5567_v9  ;;  %v5591_v33 = vadd.f32 %v5590_v28, %v5589_v54  ;;  %4170 = vmatprep.subr.bf16.mxu0 %v6083_v10  ;;  %v6097_v22 = vld [vmem:[%s8263_s7 + $0x184] ss:$8 sps:$4 sm:$0xff]   ;;  %v6101_v18 = vld [vmem:[%s8263_s7 + $0x190] ss:$8 sps:$4 sm:$0xff]  }
 0x2d5   :  { %v6111_v9 = vld [vmem:[%s8263_s7 + $0x1a4] ss:$8 sps:$4 sm:$0xff]  }
 0x2d6   :  { %v1981_v38 = vadd.f32 %v5569_v32, %v1932_v36  ;;  %v2022_v63 = vadd.f32 %v5591_v33, %v1973_v37  ;;  %v6109_v32 = vld [vmem:[%s8263_s7 + $0x1a0] ss:$8 sps:$4 sm:$0xff]   ;;  %v6117_v33 = vld [vmem:[%s8263_s7 + $0x1b4] ss:$8 sps:$4 sm:$0xff]  }
 0x2d7   :  { %4171 = vmatpush1.bf16.msra.mxu0 %v6081_v51 }
 0x2d8   :  { %v5592_v39 = vpop.f32.mrb[76].mxu0  ;;  %4172 = vmatprep.subr.bf16.mxu0 %v6089_v0 }
 0x2d9   :  { %v5593_v41 = vpop.f32.mrb[77].mxu0 }
 0x2da   :  { %v5594_v26 = vadd.f32 %v5593_v41, %v5592_v39  ;;  %v5595_v50 = vpop.f32.mrb[78].mxu0 }
 0x2db   :  { %v5596_v56 = vpop.f32.mrb[79].mxu0  ;;  %4173 = vmatpush1.bf16.msra.mxu0 %v6087_v61 }
 0x2dc   :  { %v2027_v34 = vadd.f32 %v5594_v26, %v1978_v29  ;;  %v5597_v35 = vadd.f32 %v5596_v56, %v5595_v50  ;;  %4174 = vmatprep.subr.bf16.mxu0 %v6097_v22 }
 0x2de   :  { %v2030_v49 = vadd.f32 %v5597_v35, %v1981_v38 }
 0x2df   :  { %4175 = vmatpush1.bf16.msra.mxu0 %v6095_v11  ;;  %v6039_v11 = vld [vmem:[%s8263_s7 + $0x10] ss:$8 sps:$4 sm:$0xff]  }
 0x2e0   :  { %4176 = vmatprep.subr.bf16.mxu0 %v6103_v7  ;;  %v6044_v7 = vld [vmem:[%s8263_s7 + $0x24] ss:$8 sps:$4 sm:$0xff]  }
 0x2e3   :  { %4177 = vmatpush1.bf16.msra.mxu0 %v6101_v18  ;;  %v6028_v18 = vld [vmem:[%s8262_s6 + $0x20] sm:$0xff]  }
 0x2e4   :  { %4178 = vmatprep.subr.bf16.mxu0 %v6111_v9  ;;  %v6050_v9 = vld [vmem:[%s8263_s7 + $0x34] ss:$8 sps:$4 sm:$0xff]  }
 0x2e7   :  { %4179 = vmatpush1.bf16.msra.mxu0 %v6109_v32  ;;  %v6062_v32 = vld [vmem:[%s8263_s7 + $0x54] ss:$8 sps:$4 sm:$0xff]  }
 0x2e8   :  { %v5614_v46 = vpop.f32.mrb[32].mxu1  ;;  %4180 = vmatprep.subr.bf16.mxu0 %v6117_v33  ;;  %v6060_v33 = vld [vmem:[%s8263_s7 + $0x50] ss:$8 sps:$4 sm:$0xff]  }
 0x2e9   :  { %v5615_v53 = vpop.f32.mrb[33].mxu1 }
 0x2ea   :  { %v5616_v57 = vadd.f32 %v5615_v53, %v5614_v46  ;;  %v5617_v58 = vpop.f32.mrb[34].mxu1 }
 0x2eb   :  { %v5618_v60 = vpop.f32.mrb[35].mxu1 }
 0x2ec   :  { %v2068_v62 = vadd.f32 %v5616_v57, %v2019_v31  ;;  %v5619_v43 = vadd.f32 %v5618_v60, %v5617_v58 }
 0x2ee   :  { %v2071_v47 = vadd.f32 %v5619_v43, %v2022_v63  ;;  %v6115_v63 = vld [vmem:[%s8263_s7 + $0x1b0] ss:$8 sps:$4 sm:$0xff]  }
 0x2ef   :  { %4181 = vmatpush1.bf16.msra.mxu0 %v6115_v63  ;;  %v6031_v63 = vld [vmem:[%s8262_s6 + $0x38] sm:$0xff]  }
 0x2f0   :  { %v5620_v14 = vpop.f32.mrb[36].mxu1  ;;  %v5642_v19 = vpop.f32.mrb[80].mxu0  ;;  %4182 = vmatprep.subr.bf16.mxu0 %v6123_v12  ;;  %v6032_v12 = vld [vmem:[%s8262_s6 + $0x40] sm:$0xff]  }
 0x2f1   :  { %v5621_v20 = vpop.f32.mrb[37].mxu1  ;;  %v5643_v2 = vpop.f32.mrb[81].mxu0 }
 0x2f2   :  { %v5622_v3 = vadd.f32 %v5621_v20, %v5620_v14  ;;  %v5644_v6 = vadd.f32 %v5643_v2, %v5642_v19  ;;  %v5623_v8 = vpop.f32.mrb[38].mxu1  ;;  %v5645_v21 = vpop.f32.mrb[82].mxu0 }
 0x2f3   :  { %v5624_v1 = vpop.f32.mrb[39].mxu1  ;;  %v5646_v5 = vpop.f32.mrb[83].mxu0  ;;  %4183 = vmatpush1.bf16.msra.mxu0 %v6121_v13  ;;  %v6066_v13 = vld [vmem:[%s8263_s7 + $0x60] ss:$8 sps:$4 sm:$0xff]  }
 0x2f4   :  { %v2076_v23 = vadd.f32 %v5622_v3, %v2027_v34  ;;  %v2117_v24 = vadd.f32 %v5644_v6, %v2068_v62  ;;  %v5625_v30 = vadd.f32 %v5624_v1, %v5623_v8  ;;  %v5647_v36 = vadd.f32 %v5646_v5, %v5645_v21  ;;  %v6038_v5 = vld [vmem:[%s8263_s7 + $0x4] ss:$8 sps:$4 sm:$0xff]  }
 0x2f6   :  { %v2079_v37 = vadd.f32 %v5625_v30, %v2030_v49  ;;  %v2120_v25 = vadd.f32 %v5647_v36, %v2071_v47  ;;  %v6025_v30 = vld [vmem:[%s8262_s6 + $0x8] sm:$0xff]   ;;  %v6026_v36 = vld [vmem:[%s8262_s6 + $0x10] sm:$0xff]  }
 0x2f8   :  { %v5648_v17 = vpop.f32.mrb[84].mxu0 }
 0x2f9   :  { %v5649_v45 = vpop.f32.mrb[85].mxu0 }
 0x2fa   :  { %v5650_v54 = vadd.f32 %v5649_v45, %v5648_v17  ;;  %v5651_v27 = vpop.f32.mrb[86].mxu0  ;;  %v6027_v17 = vld [vmem:[%s8262_s6 + $0x18] sm:$0xff]   ;;  %v6042_v45 = vld [vmem:[%s8263_s7 + $0x20] ss:$8 sps:$4 sm:$0xff]  }
 0x2fb   :  { %v5652_v28 = vpop.f32.mrb[87].mxu0 }
 0x2fc   :  { %v2125_v29 = vadd.f32 %v5650_v54, %v2076_v23  ;;  %v5653_v31 = vadd.f32 %v5652_v28, %v5651_v27  ;;  %v6048_v54 = vld [vmem:[%s8263_s7 + $0x30] ss:$8 sps:$4 sm:$0xff]   ;;  %v6056_v27 = vld [vmem:[%s8263_s7 + $0x44] ss:$8 sps:$4 sm:$0xff]  }
 0x2fd   :  { %v6029_v28 = vld [vmem:[%s8262_s6 + $0x28] sm:$0xff]  }
 0x2fe   :  { %v2128_v38 = vadd.f32 %v5653_v31, %v2079_v37  ;;  %v6036_v37 = vld [vmem:[%s8263_s7] ss:$8 sps:$4 sm:$0xff]  }
 0x2ff   :  { %v6054_v31 = vld [vmem:[%s8263_s7 + $0x40] ss:$8 sps:$4 sm:$0xff]  }
 0x308   :  { %v5670_v39 = vpop.f32.mrb[40].mxu1 }
 0x309   :  { %v5671_v41 = vpop.f32.mrb[41].mxu1 }
 0x30a   :  { %v5672_v42 = vadd.f32 %v5671_v41, %v5670_v39  ;;  %v5673_v26 = vpop.f32.mrb[42].mxu1  ;;  %v6074_v39 = vld [vmem:[%s8263_s7 + $0x74] ss:$8 sps:$4 sm:$0xff]   ;;  %v6072_v41 = vld [vmem:[%s8263_s7 + $0x70] ss:$8 sps:$4 sm:$0xff]  }
 0x30b   :  { %v5674_v50 = vpop.f32.mrb[43].mxu1 }
 0x30c   :  { %v2166_v55 = vadd.f32 %v5672_v42, %v2117_v24  ;;  %v5675_v56 = vadd.f32 %v5674_v50, %v5673_v26  ;;  %v6080_v42 = vld [vmem:[%s8263_s7 + $0x84] ss:$8 sps:$4 sm:$0xff]   ;;  %v6034_v50 = vld [vmem:[%s8262_s6 + $0x50] sm:$0xff]  }
 0x30d   :  { %v6033_v26 = vld [vmem:[%s8262_s6 + $0x48] sm:$0xff]  }
 0x30e   :  { %v2169_v34 = vadd.f32 %v5675_v56, %v2120_v25  ;;  %v6041_v25 = vld [vmem:[%s8263_s7 + $0x14] ss:$8 sps:$4 sm:$0xff]  }
 0x30f   :  { %v6086_v56 = vld [vmem:[%s8263_s7 + $0x94] ss:$8 sps:$4 sm:$0xff]  }
 0x310   :  { %v5676_v35 = vpop.f32.mrb[44].mxu1  ;;  %v5698_v48 = vpop.f32.mrb[88].mxu0 }
 0x311   :  { %v5677_v49 = vpop.f32.mrb[45].mxu1  ;;  %v5699_v52 = vpop.f32.mrb[89].mxu0 }
 0x312   :  { %v5678_v40 = vadd.f32 %v5677_v49, %v5676_v35  ;;  %v5700_v4 = vadd.f32 %v5699_v52, %v5698_v48  ;;  %v5679_v15 = vpop.f32.mrb[46].mxu1  ;;  %v5701_v16 = vpop.f32.mrb[90].mxu0  ;;  %v6094_v35 = vld [vmem:[%s8263_s7 + $0xa4] ss:$8 sps:$4 sm:$0xff]   ;;  %v6035_v48 = vld [vmem:[%s8262_s6 + $0x58] sm:$0xff]  }
 0x313   :  { %v5680_v44 = vpop.f32.mrb[47].mxu1  ;;  %v5702_v46 = vpop.f32.mrb[91].mxu0  ;;  %v6090_v49 = vld [vmem:[%s8262_s6 + $0x60] sm:$0xff]  }
 0x314   :  { %v2174_v53 = vadd.f32 %v5678_v40, %v2125_v29  ;;  %v2215_v57 = vadd.f32 %v5700_v4, %v2166_v55  ;;  %v5681_v58 = vadd.f32 %v5680_v44, %v5679_v15  ;;  %v5703_v59 = vadd.f32 %v5702_v46, %v5701_v16  ;;  %v6030_v29 = vld [vmem:[%s8262_s6 + $0x30] sm:$0xff]   ;;  %v6078_v55 = vld [vmem:[%s8263_s7 + $0x80] ss:$8 sps:$4 sm:$0xff]   ;;  %v6108_v15 = vld [vmem:[%s8263_s7 + $0xc4] ss:$8 sps:$4 sm:$0xff]  }
 0x315   :  { %v6092_v52 = vld [vmem:[%s8263_s7 + $0xa0] ss:$8 sps:$4 sm:$0xff]   ;;  %v6100_v40 = vld [vmem:[%s8263_s7 + $0xb4] ss:$8 sps:$4 sm:$0xff]   ;;  %v6098_v4 = vld [vmem:[%s8263_s7 + $0xb0] ss:$8 sps:$4 sm:$0xff]  }
 0x316   :  { %v2233_v60 = vmul.f32 0.2, %v2215_v57  ;;  %v2177_v10 = vadd.f32 %v5681_v58, %v2128_v38  ;;  %v2218_v62 = vadd.f32 %v5703_v59, %v2169_v34  ;;  %vm2229_vm3 = vcmp.ge.f32.partialorder %v2215_v57, 0.0  ;;  %v6068_v38 = vld [vmem:[%s8263_s7 + $0x64] ss:$8 sps:$4 sm:$0xff]   ;;  %v6104_v44 = vld [vmem:[%s8262_s6 + $0x70] sm:$0xff]  }
 0x317   :  { %v6084_v34 = vld [vmem:[%s8263_s7 + $0x90] ss:$8 sps:$4 sm:$0xff]   ;;  %v6091_v16 = vld [vmem:[%s8262_s6 + $0x68] sm:$0xff]  }
 0x318   :  { %vm2230_vm4 = vcmp.ge.f32.partialorder %v2218_v62, 0.0  ;;  %v2234_v43 = vmul.f32 0.2, %v2218_v62  ;;  %v5704_v47 = vpop.f32.mrb[92].mxu0  ;;  %v2237_v19 = vsel %vm2229_vm3, %v2215_v57, %v2233_v60  ;;  %v6106_v46 = vld [vmem:[%s8263_s7 + $0xc0] ss:$8 sps:$4 sm:$0xff]  }
 0x319   :  { %v5705_v51 = vpop.f32.mrb[93].mxu0  ;;  %v6112_v57 = vld [vmem:[%s8263_s7 + $0xd0] ss:$8 sps:$4 sm:$0xff]   ;;  %v6120_v58 = vld [vmem:[%s8263_s7 + $0xe4] ss:$8 sps:$4 sm:$0xff]  }
 0x31a   :  { %v5706_v0 = vadd.f32 %v5705_v51, %v5704_v47  ;;  %v5707_v14 = vpop.f32.mrb[94].mxu0  ;;  %v2238_v20 = vsel %vm2230_vm4, %v2218_v62, %v2234_v43  ;;  %v6105_v59 = vld [vmem:[%s8262_s6 + $0x78] sm:$0xff]   ;;  %v6118_v60 = vld [vmem:[%s8263_s7 + $0xe0] ss:$8 sps:$4 sm:$0xff]   ;;  %v6132_v51 = vld [vmem:[%s8263_s7 + $0x1e4] ss:$8 sps:$4 sm:$0xff]  }
 0x31b   :  { %v5708_v2 = vpop.f32.mrb[95].mxu0  ;;  %v2241_v3 = vpack.c.bf16 %v2238_v20, %v2237_v19  ;;  %v6129_v62 = vld [vmem:[%s8263_s7 + $0x1d4] ss:$8 sps:$4 sm:$0xff]   ;;  %v6124_v43 = vld [vmem:[%s8263_s7 + $0xf0] ss:$8 sps:$4 sm:$0xff]  }
 0x31c   :  { %v2223_v6 = vadd.f32 %v5706_v0, %v2174_v53  ;;  %v5709_v8 = vadd.f32 %v5708_v2, %v5707_v14  ;;  %v6114_v53 = vld [vmem:[%s8263_s7 + $0xd4] ss:$8 sps:$4 sm:$0xff]   ;;  %v6127_v47 = vld [vmem:[%s8263_s7 + $0x1d0] ss:$8 sps:$4 sm:$0xff]   ;;  %4184 = vmatprep.subr.bf16.mxu0 %v6129_v62  ;;  %v6135_v0 = vld [vmem:[%s8263_s7 + $0x204] ss:$8 sps:$4 sm:$0xff]  }
 0x31d   :  { %5826 = vmatprep.subr.bf16.mxu1 %v2241_v3  ;;  %4185 = vmatpush1.bf16.msra.mxu0 %v6127_v47  ;;  %v6130_v14 = vld [vmem:[%s8263_s7 + $0x1e0] ss:$8 sps:$4 sm:$0xff]   ;;  %v6138_v19 = vld [vmem:[%s8263_s7 + $0x1f4] ss:$8 sps:$4 sm:$0xff]   ;;  %v6136_v20 = vld [vmem:[%s8263_s7 + $0x1f0] ss:$8 sps:$4 sm:$0xff]  }
 0x31e   :  { %v2235_v21 = vmul.f32 0.2, %v2223_v6  ;;  %v2226_v61 = vadd.f32 %v5709_v8, %v2177_v10  ;;  %5827 = vmatpush3.bf16.msra.mxu1 %v2241_v3  ;;  %vm2231_vm5 = vcmp.ge.f32.partialorder %v2223_v6, 0.0  ;;  %v6126_v10 = vld [vmem:[%s8263_s7 + $0xf4] ss:$8 sps:$4 sm:$0xff]   ;;  %4186 = vmatprep.subr.bf16.mxu0 %v6132_v51 }
 0x31f   :  { %v6147_v2 = vld [vmem:[%s8263_s7 + $0x304] ss:$8 sps:$4 sm:$0xff]   ;;  %v6178_v62 = vld [vmem:[%s8263_s7 + $0x280] ss:$8 sps:$4 sm:$0xff]  }
 0x320   :  { %vm2232_vm6 = vcmp.ge.f32.partialorder %v2226_v61, 0.0  ;;  %v2236_v1 = vmul.f32 0.2, %v2226_v61  ;;  %v2239_v22 = vsel %vm2231_vm5, %v2223_v6, %v2235_v21 }
 0x321   :  { %4187 = vmatpush1.bf16.msra.mxu0 %v6130_v14  ;;  %v6189_v14 = vld [vmem:[%s8263_s7 + $0x374] ss:$8 sps:$4 sm:$0xff]  }
 0x322   :  { %v2240_v23 = vsel %vm2232_vm6, %v2226_v61, %v2236_v1  ;;  %4188 = vmatprep.subr.bf16.mxu0 %v6138_v19  ;;  %v6133_v1 = vld [vmem:[%s8263_s7 + $0x200] ss:$8 sps:$4 sm:$0xff]  }
 0x323   :  { %v2242_v24 = vpack.c.bf16 %v2240_v23, %v2239_v22  ;;  %v6141_v22 = vld [vmem:[%s8263_s7 + $0x214] ss:$8 sps:$4 sm:$0xff]   ;;  %v6139_v23 = vld [vmem:[%s8263_s7 + $0x210] ss:$8 sps:$4 sm:$0xff]  }
 0x325   :  { %5828 = vmatprep.subr.bf16.mxu1 %v2242_v24  ;;  %4189 = vmatpush1.bf16.msra.mxu0 %v6136_v20  ;;  %v6184_v20 = vld [vmem:[%s8263_s7 + $0x290] ss:$8 sps:$4 sm:$0xff]  }
 0x326   :  { %5829 = vmatpush3.bf16.msra.mxu1 %v2242_v24  ;;  %4240 = vmatprep.subr.bf16.mxu0 %v6147_v2  ;;  %v6187_v2 = vld [vmem:[%s8263_s7 + $0x370] ss:$8 sps:$4 sm:$0xff]  }
 0x327   :  { %4117 = vmatprep.subr.bf16.mxu1 %v6038_v5 }
 0x329   :  { %5831 = vmatmul.mubr.msk.bf16.vlgmr.msra.gmra.mrb[48].mxu1 %vm2355_vm1, %v6025_v30  ;;  %v6144_v30 = vld [vmem:[%s8263_s7 + $0x224] ss:$8 sps:$4 sm:$0xff]  }
 0x32a   :  { %5834 = vmatprep.mubr.msk.bf16.mxu1 %vm2355_vm1, %v6026_v36  ;;  %4118 = vmatpush1.bf16.msra.mxu1 %v6036_v37 }
 0x32b   :  { %4119 = vmatprep.subr.bf16.mxu1 %v6041_v25 }
 0x32e   :  { %4120 = vmatpush1.bf16.msra.mxu1 %v6039_v11 }
 0x32f   :  { %4121 = vmatprep.subr.bf16.mxu1 %v6044_v7  ;;  %v6142_v7 = vld [vmem:[%s8263_s7 + $0x220] ss:$8 sps:$4 sm:$0xff]  }
 0x331   :  { %5835 = vmatmul.mubr.msk.bf16.gmra.mrb[52].mxu1 %vm2355_vm1, %v6027_v17  ;;  %v6145_v17 = vld [vmem:[%s8263_s7 + $0x300] ss:$8 sps:$4 sm:$0xff]  }
 0x332   :  { %5838 = vmatprep.mubr.msk.bf16.mxu1 %vm2355_vm1, %v6028_v18  ;;  %4122 = vmatpush1.bf16.msra.mxu1 %v6042_v45  ;;  %v6150_v45 = vld [vmem:[%s8263_s7 + $0x234] ss:$8 sps:$4 sm:$0xff]  }
 0x333   :  { %4123 = vmatprep.subr.bf16.mxu1 %v6050_v9  ;;  %v6153_v9 = vld [vmem:[%s8263_s7 + $0x314] ss:$8 sps:$4 sm:$0xff]  }
 0x336   :  { %4124 = vmatpush1.bf16.msra.mxu1 %v6048_v54  ;;  %v6148_v54 = vld [vmem:[%s8263_s7 + $0x230] ss:$8 sps:$4 sm:$0xff]  }
 0x337   :  { %4125 = vmatprep.subr.bf16.mxu1 %v6056_v27  ;;  %v6151_v27 = vld [vmem:[%s8263_s7 + $0x310] ss:$8 sps:$4 sm:$0xff]  }
 0x339   :  { %5839 = vmatmul.mubr.msk.bf16.gmra.mrb[56].mxu1 %vm2355_vm1, %v6029_v28  ;;  %v6156_v28 = vld [vmem:[%s8263_s7 + $0x244] ss:$8 sps:$4 sm:$0xff]  }
 0x33a   :  { %5842 = vmatprep.mubr.msk.bf16.mxu1 %vm2355_vm1, %v6030_v29  ;;  %4126 = vmatpush1.bf16.msra.mxu1 %v6054_v31  ;;  %v6159_v29 = vld [vmem:[%s8263_s7 + $0x324] ss:$8 sps:$4 sm:$0xff]  }
 0x33b   :  { %4127 = vmatprep.subr.bf16.mxu1 %v6062_v32 }
 0x33e   :  { %4128 = vmatpush1.bf16.msra.mxu1 %v6060_v33 }
 0x33f   :  { %4129 = vmatprep.subr.bf16.mxu1 %v6068_v38  ;;  %v6154_v38 = vld [vmem:[%s8263_s7 + $0x240] ss:$8 sps:$4 sm:$0xff]  }
 0x341   :  { %5843 = vmatmul.mubr.msk.bf16.gmra.mrb[60].mxu1 %vm2355_vm1, %v6031_v63  ;;  %v6157_v63 = vld [vmem:[%s8263_s7 + $0x320] ss:$8 sps:$4 sm:$0xff]  }
 0x342   :  { %5846 = vmatprep.mubr.msk.bf16.mxu1 %vm2355_vm1, %v6032_v12  ;;  %4130 = vmatpush1.bf16.msra.mxu1 %v6066_v13 }
 0x343   :  { %4131 = vmatprep.subr.bf16.mxu1 %v6074_v39  ;;  %v6162_v39 = vld [vmem:[%s8263_s7 + $0x254] ss:$8 sps:$4 sm:$0xff]  }
 0x346   :  { %4132 = vmatpush1.bf16.msra.mxu1 %v6072_v41  ;;  %v6165_v41 = vld [vmem:[%s8263_s7 + $0x334] ss:$8 sps:$4 sm:$0xff]  }
 0x347   :  { %4133 = vmatprep.subr.bf16.mxu1 %v6080_v42 }
 0x349   :  { %5847 = vmatmul.mubr.msk.bf16.gmra.mrb[64].mxu1 %vm2355_vm1, %v6033_v26  ;;  %v6160_v26 = vld [vmem:[%s8263_s7 + $0x250] ss:$8 sps:$4 sm:$0xff]  }
 0x34a   :  { %5850 = vmatprep.mubr.msk.bf16.mxu1 %vm2355_vm1, %v6034_v50  ;;  %4134 = vmatpush1.bf16.msra.mxu1 %v6078_v55  ;;  %v6163_v50 = vld [vmem:[%s8263_s7 + $0x330] ss:$8 sps:$4 sm:$0xff]   ;;  %v6168_v55 = vld [vmem:[%s8263_s7 + $0x264] ss:$8 sps:$4 sm:$0xff]  }
 0x34b   :  { %4135 = vmatprep.subr.bf16.mxu1 %v6086_v56  ;;  %v6171_v56 = vld [vmem:[%s8263_s7 + $0x344] ss:$8 sps:$4 sm:$0xff]  }
 0x34e   :  { %4136 = vmatpush1.bf16.msra.mxu1 %v6084_v34 }
 0x34f   :  { %4137 = vmatprep.subr.bf16.mxu1 %v6094_v35 }
 0x351   :  { %5851 = vmatmul.mubr.msk.bf16.gmra.mrb[68].mxu1 %vm2355_vm1, %v6035_v48 }
 0x352   :  { %5854 = vmatprep.mubr.msk.bf16.mxu1 %vm2355_vm1, %v6090_v49  ;;  %4138 = vmatpush1.bf16.msra.mxu1 %v6092_v52  ;;  %v6166_v49 = vld [vmem:[%s8263_s7 + $0x260] ss:$8 sps:$4 sm:$0xff]  }
 0x353   :  { %4139 = vmatprep.subr.bf16.mxu1 %v6100_v40  ;;  %v6169_v52 = vld [vmem:[%s8263_s7 + $0x340] ss:$8 sps:$4 sm:$0xff]  }
 0x356   :  { %4140 = vmatpush1.bf16.msra.mxu1 %v6098_v4 }
 0x357   :  { %4141 = vmatprep.subr.bf16.mxu1 %v6108_v15  ;;  %v6174_v15 = vld [vmem:[%s8263_s7 + $0x274] ss:$8 sps:$4 sm:$0xff]  }
 0x359   :  { %5855 = vmatmul.mubr.msk.bf16.gmra.mrb[72].mxu1 %vm2355_vm1, %v6091_v16  ;;  %v6177_v16 = vld [vmem:[%s8263_s7 + $0x354] ss:$8 sps:$4 sm:$0xff]  }
 0x35a   :  { %5858 = vmatprep.mubr.msk.bf16.mxu1 %vm2355_vm1, %v6104_v44  ;;  %4142 = vmatpush1.bf16.msra.mxu1 %v6106_v46  ;;  %v6172_v46 = vld [vmem:[%s8263_s7 + $0x270] ss:$8 sps:$4 sm:$0xff]  }
 0x35b   :  { %4143 = vmatprep.subr.bf16.mxu1 %v6114_v53  ;;  %v6175_v53 = vld [vmem:[%s8263_s7 + $0x350] ss:$8 sps:$4 sm:$0xff]  }
 0x35e   :  { %4144 = vmatpush1.bf16.msra.mxu1 %v6112_v57  ;;  %v6180_v57 = vld [vmem:[%s8263_s7 + $0x284] ss:$8 sps:$4 sm:$0xff]  }
 0x35f   :  { %4145 = vmatprep.subr.bf16.mxu1 %v6120_v58  ;;  %v6183_v58 = vld [vmem:[%s8263_s7 + $0x364] ss:$8 sps:$4 sm:$0xff]  }
 0x361   :  { %5859 = vmatmul.mubr.msk.bf16.gmra.mrb[76].mxu1 %vm2355_vm1, %v6105_v59 }
 0x362   :  { %4146 = vmatpush1.bf16.msra.mxu1 %v6118_v60 }
 0x363   :  { %4147 = vmatprep.subr.bf16.mxu1 %v6126_v10 }
 0x366   :  { %4148 = vmatpush1.bf16.msra.mxu1 %v6124_v43  ;;  %v6181_v43 = vld [vmem:[%s8263_s7 + $0x360] ss:$8 sps:$4 sm:$0xff]  }
 0x367   :  { %4199 = vmatprep.subr.bf16.mxu1 %v6135_v0  ;;  %v6186_v0 = vld [vmem:[%s8263_s7 + $0x294] ss:$8 sps:$4 sm:$0xff]  }
 0x3fc   :  { %v5832_v3 = vpop.f32.mrb[48].mxu1 }
 0x3fd   :  { %v2438_v6 = vpop.f32.mrb[49].mxu1 }
 0x3fe   :  { %v5833_v8 = vpop.f32.mrb[50].mxu1 }
 0x3ff   :  { %v2566_v21 = vpack.c.bf16 %v5833_v8, %v5832_v3  ;;  %v2441_v61 = vpop.f32.mrb[51].mxu1  ;;  %v6192_v3 = vld [vmem:[%s8263_s7 + $0x2a4] ss:$8 sps:$4 sm:$0xff]  }
 0x400   :  { %v2565_v5 = vpack.c.bf16 %v2441_v61, %v2438_v6  ;;  %v6195_v6 = vld [vmem:[%s8263_s7 + $0x384] ss:$8 sps:$4 sm:$0xff]  }
 0x401   :  { %4149 = vmatprep.mubr.bf16.mxu1 %v2566_v21 }
 0x402   :  { %4150 = vmatmul.mubr.bf16.vlgmr.msra.gmra.mrb[80].mxu1 %v2565_v5  ;;  %v6193_v5 = vld [vmem:[%s8263_s7 + $0x380] ss:$8 sps:$4 sm:$0xff]  }
 0x403   :  { %4200 = vmatpush1.bf16.msra.mxu1 %v6133_v1  ;;  %v6190_v1 = vld [vmem:[%s8263_s7 + $0x2a0] ss:$8 sps:$4 sm:$0xff]  }
 0x404   :  { %v5836_v24 = vpop.f32.mrb[52].mxu1  ;;  %4201 = vmatprep.subr.bf16.mxu1 %v6141_v22 }
 0x405   :  { %v2454_v36 = vpop.f32.mrb[53].mxu1 }
 0x406   :  { %v5837_v37 = vpop.f32.mrb[54].mxu1 }
 0x407   :  { %v2568_v25 = vpack.c.bf16 %v5837_v37, %v5836_v24  ;;  %4202 = vmatpush1.bf16.msra.mxu1 %v6139_v23  ;;  %v2457_v11 = vpop.f32.mrb[55].mxu1  ;;  %v6198_v24 = vld [vmem:[%s8263_s7 + $0x2b4] ss:$8 sps:$4 sm:$0xff]   ;;  %v6196_v37 = vld [vmem:[%s8263_s7 + $0x2b0] ss:$8 sps:$4 sm:$0xff]  }
 0x408   :  { %v2567_v18 = vpack.c.bf16 %v2457_v11, %v2454_v36  ;;  %4203 = vmatprep.subr.bf16.mxu1 %v6144_v30  ;;  %v6201_v30 = vld [vmem:[%s8263_s7 + $0x394] ss:$8 sps:$4 sm:$0xff]   ;;  %v6204_v11 = vld [vmem:[%s8263_s7 + $0x2c4] ss:$8 sps:$4 sm:$0xff]  }
 0x409   :  { %4190 = vmatprep.mubr.bf16.mxu0 %v2568_v25  ;;  %v6199_v25 = vld [vmem:[%s8263_s7 + $0x390] ss:$8 sps:$4 sm:$0xff]  }
 0x40a   :  { %4191 = vmatmul.mubr.bf16.vlgmr.msra.gmra.mrb[96].mxu0 %v2567_v18  ;;  %v6205_v18 = vld [vmem:[%s8263_s7 + $0x3a0] ss:$8 sps:$4 sm:$0xff]  }
 0x40b   :  { %4204 = vmatpush1.bf16.msra.mxu1 %v6142_v7  ;;  %4241 = vmatpush1.bf16.msra.mxu0 %v6145_v17  ;;  %v6207_v7 = vld [vmem:[%s8263_s7 + $0x3a4] ss:$8 sps:$4 sm:$0xff]   ;;  %v6202_v17 = vld [vmem:[%s8263_s7 + $0x2c0] ss:$8 sps:$4 sm:$0xff]  }
 0x40c   :  { %4205 = vmatprep.subr.bf16.mxu1 %v6150_v45  ;;  %4242 = vmatprep.subr.bf16.mxu0 %v6153_v9  ;;  %v5840_v31 = vpop.f32.mrb[56].mxu1  ;;  %v6210_v45 = vld [vmem:[%s8263_s7 + $0x2d4] ss:$8 sps:$4 sm:$0xff]  }
 0x40d   :  { %v7471_v32 = vpop.f32.mrb[57].mxu1  ;;  %v6213_v9 = vld [vmem:[%s8263_s7 + $0x3b4] ss:$8 sps:$4 sm:$0xff]  }
 0x40e   :  { %v5841_v33 = vpop.f32.mrb[58].mxu1 }
 0x40f   :  { %4206 = vmatpush1.bf16.msra.mxu1 %v6148_v54  ;;  %4243 = vmatpush1.bf16.msra.mxu0 %v6151_v27  ;;  %v2570_v12 = vpack.c.bf16 %v5841_v33, %v5840_v31  ;;  %v7479_v13 = vpop.f32.mrb[59].mxu1  ;;  %v6208_v54 = vld [vmem:[%s8263_s7 + $0x2d0] ss:$8 sps:$4 sm:$0xff]   ;;  %v6214_v31 = vld [vmem:[%s8263_s7 + $0x2e0] ss:$8 sps:$4 sm:$0xff]  }
 0x410   :  { %4207 = vmatprep.subr.bf16.mxu1 %v6156_v28  ;;  %4244 = vmatprep.subr.bf16.mxu0 %v6159_v29  ;;  %v2569_v42 = vpack.c.bf16 %v7479_v13, %v7471_v32  ;;  %v6211_v27 = vld [vmem:[%s8263_s7 + $0x3b0] ss:$8 sps:$4 sm:$0xff]   ;;  %v6216_v28 = vld [vmem:[%s8263_s7 + $0x2e4] ss:$8 sps:$4 sm:$0xff]   ;;  %v6217_v33 = vld [vmem:[%s8263_s7 + $0x3c0] ss:$8 sps:$4 sm:$0xff]  }
 0x411   :  { %4231 = vmatprep.mubr.bf16.mxu1 %v2570_v12  ;;  %v6219_v29 = vld [vmem:[%s8263_s7 + $0x3c4] ss:$8 sps:$4 sm:$0xff]  }
 0x412   :  { %v6240_v32 = vld [vmem:[%s8263_s7 + $0x424] ss:$8 sps:$4 sm:$0xff]  }
 0x413   :  { %4208 = vmatpush1.bf16.msra.mxu1 %v6154_v38  ;;  %4245 = vmatpush1.bf16.msra.mxu0 %v6157_v63  ;;  %v6222_v38 = vld [vmem:[%s8263_s7 + $0x2f4] ss:$8 sps:$4 sm:$0xff]   ;;  %v6243_v13 = vld [vmem:[%s8263_s7 + $0x504] ss:$8 sps:$4 sm:$0xff]  }
 0x414   :  { %4209 = vmatprep.subr.bf16.mxu1 %v6162_v39  ;;  %4246 = vmatprep.subr.bf16.mxu0 %v6165_v41  ;;  %v5844_v34 = vpop.f32.mrb[60].mxu1  ;;  %v6225_v63 = vld [vmem:[%s8263_s7 + $0x3d4] ss:$8 sps:$4 sm:$0xff]   ;;  %v6220_v41 = vld [vmem:[%s8263_s7 + $0x2f0] ss:$8 sps:$4 sm:$0xff]  }
 0x415   :  { %v7501_v35 = vpop.f32.mrb[61].mxu1 }
 0x416   :  { %v5845_v48 = vpop.f32.mrb[62].mxu1 }
 0x417   :  { %4210 = vmatpush1.bf16.msra.mxu1 %v6160_v26  ;;  %4247 = vmatpush1.bf16.msra.mxu0 %v6163_v50  ;;  %v2572_v40 = vpack.c.bf16 %v5845_v48, %v5844_v34  ;;  %v7509_v4 = vpop.f32.mrb[63].mxu1  ;;  %v6223_v26 = vld [vmem:[%s8263_s7 + $0x3d0] ss:$8 sps:$4 sm:$0xff]  }
 0x418   :  { %4211 = vmatprep.subr.bf16.mxu1 %v6168_v55  ;;  %4248 = vmatprep.subr.bf16.mxu0 %v6171_v56  ;;  %v2571_v44 = vpack.c.bf16 %v7509_v4, %v7501_v35  ;;  %v6228_v55 = vld [vmem:[%s8263_s7 + $0x3e4] ss:$8 sps:$4 sm:$0xff]   ;;  %v6250_v4 = vld [vmem:[%s8263_s7 + $0x440] ss:$8 sps:$4 sm:$0xff]  }
 0x419   :  { %4272 = vmatprep.mubr.bf16.mxu0 %v2572_v40  ;;  %v6231_v56 = vld [vmem:[%s8263_s7 + $0x404] ss:$8 sps:$4 sm:$0xff]   ;;  %v6229_v40 = vld [vmem:[%s8263_s7 + $0x400] ss:$8 sps:$4 sm:$0xff]  }
 0x41a   :  { %v6255_v35 = vld [vmem:[%s8263_s7 + $0x524] ss:$8 sps:$4 sm:$0xff]  }
 0x41b   :  { %4212 = vmatpush1.bf16.msra.mxu1 %v6166_v49  ;;  %4249 = vmatpush1.bf16.msra.mxu0 %v6169_v52  ;;  %v6226_v52 = vld [vmem:[%s8263_s7 + $0x3e0] ss:$8 sps:$4 sm:$0xff]  }
 0x41c   :  { %4213 = vmatprep.subr.bf16.mxu1 %v6174_v15  ;;  %4250 = vmatprep.subr.bf16.mxu0 %v6177_v16  ;;  %v7531_v59 = vpop.f32.mrb[64].mxu1  ;;  %v6234_v15 = vld [vmem:[%s8263_s7 + $0x3f4] ss:$8 sps:$4 sm:$0xff]  }
 0x41d   :  { %v7533_v60 = vpop.f32.mrb[65].mxu1  ;;  %v6237_v16 = vld [vmem:[%s8263_s7 + $0x414] ss:$8 sps:$4 sm:$0xff]  }
 0x41e   :  { %v7535_v10 = vpop.f32.mrb[66].mxu1 }
 0x41f   :  { %4214 = vmatpush1.bf16.msra.mxu1 %v6172_v46  ;;  %4251 = vmatpush1.bf16.msra.mxu0 %v6175_v53  ;;  %v2574_v47 = vpack.c.bf16 %v7535_v10, %v7531_v59  ;;  %v7545_v51 = vpop.f32.mrb[67].mxu1  ;;  %v6246_v59 = vld [vmem:[%s8263_s7 + $0x434] ss:$8 sps:$4 sm:$0xff]  }
 0x420   :  { %4215 = vmatprep.subr.bf16.mxu1 %v6180_v57  ;;  %4252 = vmatprep.subr.bf16.mxu0 %v6183_v58  ;;  %v2573_v19 = vpack.c.bf16 %v7545_v51, %v7533_v60  ;;  %v6232_v57 = vld [vmem:[%s8263_s7 + $0x3f0] ss:$8 sps:$4 sm:$0xff]   ;;  %v6249_v10 = vld [vmem:[%s8263_s7 + $0x514] ss:$8 sps:$4 sm:$0xff]   ;;  %v6339_v60 = vld [vmem:[%s8263_s7 + $0x704] ss:$8 sps:$4 sm:$0xff]  }
 0x421   :  { %v6235_v58 = vld [vmem:[%s8263_s7 + $0x410] ss:$8 sps:$4 sm:$0xff]   ;;  %v6334_v51 = vld [vmem:[%s8263_s7 + $0x620] ss:$8 sps:$4 sm:$0xff]  }
 0x423   :  { %4216 = vmatpush1.bf16.msra.mxu1 %v6178_v62  ;;  %4253 = vmatpush1.bf16.msra.mxu0 %v6181_v43 }
 0x424   :  { %4217 = vmatprep.subr.bf16.mxu1 %v6186_v0  ;;  %4254 = vmatprep.subr.bf16.mxu0 %v6189_v14  ;;  %v7567_v8 = vpop.f32.mrb[68].mxu1  ;;  %v6238_v14 = vld [vmem:[%s8263_s7 + $0x420] ss:$8 sps:$4 sm:$0xff]  }
 0x425   :  { %v7569_v21 = vpop.f32.mrb[69].mxu1 }
 0x426   :  { %v7571_v61 = vpop.f32.mrb[70].mxu1 }
 0x427   :  { %4218 = vmatpush1.bf16.msra.mxu1 %v6184_v20  ;;  %4255 = vmatpush1.bf16.msra.mxu0 %v6187_v2  ;;  %v2576_v22 = vpack.c.bf16 %v7571_v61, %v7567_v8  ;;  %v7581_v23 = vpop.f32.mrb[71].mxu1  ;;  %v6241_v20 = vld [vmem:[%s8263_s7 + $0x500] ss:$8 sps:$4 sm:$0xff]   ;;  %v6247_v2 = vld [vmem:[%s8263_s7 + $0x510] ss:$8 sps:$4 sm:$0xff]  }
 0x428   :  { %4219 = vmatprep.subr.bf16.mxu1 %v6192_v3  ;;  %4256 = vmatprep.subr.bf16.mxu0 %v6195_v6  ;;  %v2575_v36 = vpack.c.bf16 %v7581_v23, %v7569_v21  ;;  %v6252_v3 = vld [vmem:[%s8263_s7 + $0x444] ss:$8 sps:$4 sm:$0xff]   ;;  %v6258_v6 = vld [vmem:[%s8263_s7 + $0x454] ss:$8 sps:$4 sm:$0xff]   ;;  %v6256_v61 = vld [vmem:[%s8263_s7 + $0x450] ss:$8 sps:$4 sm:$0xff]  }
 0x429   :  { %v6261_v8 = vld [vmem:[%s8263_s7 + $0x534] ss:$8 sps:$4 sm:$0xff]   ;;  %v6351_v21 = vld [vmem:[%s8263_s7 + $0x724] ss:$8 sps:$4 sm:$0xff]   ;;  %v6346_v23 = vld [vmem:[%s8263_s7 + $0x640] ss:$8 sps:$4 sm:$0xff]  }
 0x42b   :  { %4220 = vmatpush1.bf16.msra.mxu1 %v6190_v1  ;;  %4257 = vmatpush1.bf16.msra.mxu0 %v6193_v5  ;;  %v6259_v1 = vld [vmem:[%s8263_s7 + $0x530] ss:$8 sps:$4 sm:$0xff]   ;;  %v6264_v5 = vld [vmem:[%s8263_s7 + $0x464] ss:$8 sps:$4 sm:$0xff]  }
 0x42c   :  { %4221 = vmatprep.subr.bf16.mxu1 %v6198_v24  ;;  %4258 = vmatprep.subr.bf16.mxu0 %v6201_v30  ;;  %v7639_v12 = vpop.f32.mrb[72].mxu1  ;;  %v6262_v24 = vld [vmem:[%s8263_s7 + $0x460] ss:$8 sps:$4 sm:$0xff]  }
 0x42d   :  { %v7641_v39 = vpop.f32.mrb[73].mxu1  ;;  %v6265_v30 = vld [vmem:[%s8263_s7 + $0x540] ss:$8 sps:$4 sm:$0xff]  }
 0x42e   :  { %v7649_v50 = vpop.f32.mrb[74].mxu1 }
 0x42f   :  { %4222 = vmatpush1.bf16.msra.mxu1 %v6196_v37  ;;  %4259 = vmatpush1.bf16.msra.mxu0 %v6199_v25  ;;  %v2578_v34 = vpack.c.bf16 %v7649_v50, %v7639_v12  ;;  %v7659_v48 = vpop.f32.mrb[75].mxu1  ;;  %v6270_v37 = vld [vmem:[%s8263_s7 + $0x474] ss:$8 sps:$4 sm:$0xff]   ;;  %v6340_v50 = vld [vmem:[%s8263_s7 + $0x630] ss:$8 sps:$4 sm:$0xff]  }
 0x430   :  { %4223 = vmatprep.subr.bf16.mxu1 %v6204_v11  ;;  %4260 = vmatprep.subr.bf16.mxu0 %v6207_v7  ;;  %v2577_v49 = vpack.c.bf16 %v7659_v48, %v7641_v39  ;;  %v6273_v25 = vld [vmem:[%s8263_s7 + $0x554] ss:$8 sps:$4 sm:$0xff]   ;;  %v6268_v11 = vld [vmem:[%s8263_s7 + $0x470] ss:$8 sps:$4 sm:$0xff]  }
 0x431   :  { %v6271_v7 = vld [vmem:[%s8263_s7 + $0x550] ss:$8 sps:$4 sm:$0xff]   ;;  %v6345_v12 = vld [vmem:[%s8263_s7 + $0x714] ss:$8 sps:$4 sm:$0xff]  }
 0x433   :  { %4224 = vmatpush1.bf16.msra.mxu1 %v6202_v17  ;;  %4261 = vmatpush1.bf16.msra.mxu0 %v6205_v18  ;;  %v6276_v17 = vld [vmem:[%s8263_s7 + $0x484] ss:$8 sps:$4 sm:$0xff]  }
 0x434   :  { %4225 = vmatprep.subr.bf16.mxu1 %v6210_v45  ;;  %4262 = vmatprep.subr.bf16.mxu0 %v6213_v9  ;;  %v7675_v46 = vpop.f32.mrb[76].mxu1  ;;  %v6279_v18 = vld [vmem:[%s8263_s7 + $0x564] ss:$8 sps:$4 sm:$0xff]   ;;  %v6274_v45 = vld [vmem:[%s8263_s7 + $0x480] ss:$8 sps:$4 sm:$0xff]  }
 0x435   :  { %v7680_v53 = vpop.f32.mrb[77].mxu1  ;;  %v6277_v9 = vld [vmem:[%s8263_s7 + $0x560] ss:$8 sps:$4 sm:$0xff]  }
 0x436   :  { %v7688_v62 = vpop.f32.mrb[78].mxu1 }
 0x437   :  { %4226 = vmatpush1.bf16.msra.mxu1 %v6208_v54  ;;  %4263 = vmatpush1.bf16.msra.mxu0 %v6211_v27  ;;  %v7698_v43 = vpop.f32.mrb[79].mxu1  ;;  %v6282_v54 = vld [vmem:[%s8263_s7 + $0x494] ss:$8 sps:$4 sm:$0xff]  }
 0x438   :  { %4227 = vmatprep.subr.bf16.mxu1 %v6216_v28  ;;  %4264 = vmatprep.subr.bf16.mxu0 %v6219_v29  ;;  %v2579_v0 = vpack.c.bf16 %v7698_v43, %v7680_v53  ;;  %v6285_v27 = vld [vmem:[%s8263_s7 + $0x574] ss:$8 sps:$4 sm:$0xff]   ;;  %v6280_v28 = vld [vmem:[%s8263_s7 + $0x490] ss:$8 sps:$4 sm:$0xff]  }
 0x439   :  { %v6283_v29 = vld [vmem:[%s8263_s7 + $0x570] ss:$8 sps:$4 sm:$0xff]  }
 0x43b   :  { %4228 = vmatpush1.bf16.msra.mxu1 %v6214_v31  ;;  %4265 = vmatpush1.bf16.msra.mxu0 %v6217_v33  ;;  %v6288_v31 = vld [vmem:[%s8263_s7 + $0x4a4] ss:$8 sps:$4 sm:$0xff]  }
 0x43c   :  { %4229 = vmatprep.subr.bf16.mxu1 %v6222_v38  ;;  %4266 = vmatprep.subr.bf16.mxu0 %v6225_v63  ;;  %v6291_v33 = vld [vmem:[%s8263_s7 + $0x584] ss:$8 sps:$4 sm:$0xff]   ;;  %v6286_v38 = vld [vmem:[%s8263_s7 + $0x4a0] ss:$8 sps:$4 sm:$0xff]  }
 0x43d   :  { %v6289_v63 = vld [vmem:[%s8263_s7 + $0x580] ss:$8 sps:$4 sm:$0xff]  }
 0x43f   :  { %4230 = vmatpush1.bf16.msra.mxu1 %v6220_v41  ;;  %4267 = vmatpush1.bf16.msra.mxu0 %v6223_v26  ;;  %v6294_v41 = vld [vmem:[%s8263_s7 + $0x4b4] ss:$8 sps:$4 sm:$0xff]  }
 0x440   :  { %4268 = vmatprep.subr.bf16.mxu0 %v6228_v55  ;;  %4281 = vmatprep.subr.bf16.mxu1 %v6231_v56  ;;  %v6297_v26 = vld [vmem:[%s8263_s7 + $0x594] ss:$8 sps:$4 sm:$0xff]   ;;  %v6292_v55 = vld [vmem:[%s8263_s7 + $0x4b0] ss:$8 sps:$4 sm:$0xff]  }
 0x441   :  { %v6295_v56 = vld [vmem:[%s8263_s7 + $0x590] ss:$8 sps:$4 sm:$0xff]  }
 0x442   :  { %4232 = vmatmul.mubr.bf16.vlgmr.msra.gmra.mrb[84].mxu1 %v2569_v42  ;;  %v2580_v42 = vpack.c.bf16 %v7688_v62, %v7675_v46  ;;  %v6357_v46 = vld [vmem:[%s8263_s7 + $0x734] ss:$8 sps:$4 sm:$0xff]   ;;  %v6352_v62 = vld [vmem:[%s8263_s7 + $0x650] ss:$8 sps:$4 sm:$0xff]  }
 0x443   :  { %4269 = vmatpush1.bf16.msra.mxu0 %v6226_v52  ;;  %4282 = vmatpush1.bf16.msra.mxu1 %v6229_v40  ;;  %v6300_v52 = vld [vmem:[%s8263_s7 + $0x4c4] ss:$8 sps:$4 sm:$0xff]  }
 0x444   :  { %4270 = vmatprep.subr.bf16.mxu0 %v6234_v15  ;;  %4283 = vmatprep.subr.bf16.mxu1 %v6237_v16  ;;  %v6303_v40 = vld [vmem:[%s8263_s7 + $0x5a4] ss:$8 sps:$4 sm:$0xff]   ;;  %v6298_v15 = vld [vmem:[%s8263_s7 + $0x4c0] ss:$8 sps:$4 sm:$0xff]  }
 0x445   :  { %4313 = vmatprep.mubr.bf16.mxu1 %v2574_v47  ;;  %v6244_v47 = vld [vmem:[%s8263_s7 + $0x430] ss:$8 sps:$4 sm:$0xff]   ;;  %v6301_v16 = vld [vmem:[%s8263_s7 + $0x5a0] ss:$8 sps:$4 sm:$0xff]  }
 0x447   :  { %4271 = vmatpush1.bf16.msra.mxu0 %v6232_v57  ;;  %4284 = vmatpush1.bf16.msra.mxu1 %v6235_v58  ;;  %v6306_v57 = vld [vmem:[%s8263_s7 + $0x4d4] ss:$8 sps:$4 sm:$0xff]  }
 0x448   :  { %4285 = vmatprep.subr.bf16.mxu1 %v6240_v32  ;;  %4322 = vmatprep.subr.bf16.mxu0 %v6243_v13  ;;  %v6309_v58 = vld [vmem:[%s8263_s7 + $0x5b4] ss:$8 sps:$4 sm:$0xff]   ;;  %v6304_v32 = vld [vmem:[%s8263_s7 + $0x4d0] ss:$8 sps:$4 sm:$0xff]  }
 0x449   :  { %v6307_v13 = vld [vmem:[%s8263_s7 + $0x5b0] ss:$8 sps:$4 sm:$0xff]  }
 0x44a   :  { %4273 = vmatmul.mubr.bf16.vlgmr.msra.gmra.mrb[100].mxu0 %v2571_v44  ;;  %v6253_v44 = vld [vmem:[%s8263_s7 + $0x520] ss:$8 sps:$4 sm:$0xff]  }
 0x44b   :  { %4286 = vmatpush1.bf16.msra.mxu1 %v6238_v14  ;;  %4323 = vmatpush1.bf16.msra.mxu0 %v6241_v20  ;;  %v6312_v14 = vld [vmem:[%s8263_s7 + $0x4e4] ss:$8 sps:$4 sm:$0xff]  }
 0x44c   :  { %4287 = vmatprep.subr.bf16.mxu1 %v6246_v59  ;;  %4324 = vmatprep.subr.bf16.mxu0 %v6249_v10  ;;  %v6315_v20 = vld [vmem:[%s8263_s7 + $0x5c4] ss:$8 sps:$4 sm:$0xff]   ;;  %v6310_v59 = vld [vmem:[%s8263_s7 + $0x4e0] ss:$8 sps:$4 sm:$0xff]  }
 0x44d   :  { %4354 = vmatprep.mubr.bf16.mxu0 %v2576_v22  ;;  %v6267_v22 = vld [vmem:[%s8263_s7 + $0x544] ss:$8 sps:$4 sm:$0xff]   ;;  %v6313_v10 = vld [vmem:[%s8263_s7 + $0x5c0] ss:$8 sps:$4 sm:$0xff]  }
 0x44f   :  { %4288 = vmatpush1.bf16.msra.mxu1 %v6244_v47  ;;  %4325 = vmatpush1.bf16.msra.mxu0 %v6247_v2  ;;  %v6318_v47 = vld [vmem:[%s8263_s7 + $0x4f4] ss:$8 sps:$4 sm:$0xff]  }
 0x450   :  { %4289 = vmatprep.subr.bf16.mxu1 %v6252_v3  ;;  %4326 = vmatprep.subr.bf16.mxu0 %v6255_v35  ;;  %v6321_v2 = vld [vmem:[%s8263_s7 + $0x5d4] ss:$8 sps:$4 sm:$0xff]   ;;  %v6316_v3 = vld [vmem:[%s8263_s7 + $0x4f0] ss:$8 sps:$4 sm:$0xff]  }
 0x451   :  { %v6319_v35 = vld [vmem:[%s8263_s7 + $0x5d0] ss:$8 sps:$4 sm:$0xff]  }
 0x453   :  { %4290 = vmatpush1.bf16.msra.mxu1 %v6250_v4  ;;  %4327 = vmatpush1.bf16.msra.mxu0 %v6253_v44  ;;  %v6324_v4 = vld [vmem:[%s8263_s7 + $0x5e4] ss:$8 sps:$4 sm:$0xff]  }
 0x454   :  { %4291 = vmatprep.subr.bf16.mxu1 %v6258_v6  ;;  %4328 = vmatprep.subr.bf16.mxu0 %v6261_v8  ;;  %v6327_v44 = vld [vmem:[%s8263_s7 + $0x604] ss:$8 sps:$4 sm:$0xff]   ;;  %v6322_v6 = vld [vmem:[%s8263_s7 + $0x5e0] ss:$8 sps:$4 sm:$0xff]  }
 0x455   :  { %v6325_v8 = vld [vmem:[%s8263_s7 + $0x600] ss:$8 sps:$4 sm:$0xff]  }
 0x457   :  { %4292 = vmatpush1.bf16.msra.mxu1 %v6256_v61  ;;  %4329 = vmatpush1.bf16.msra.mxu0 %v6259_v1  ;;  %v6330_v61 = vld [vmem:[%s8263_s7 + $0x5f4] ss:$8 sps:$4 sm:$0xff]  }
 0x458   :  { %4293 = vmatprep.subr.bf16.mxu1 %v6264_v5  ;;  %4330 = vmatprep.subr.bf16.mxu0 %v6267_v22  ;;  %v6333_v1 = vld [vmem:[%s8263_s7 + $0x614] ss:$8 sps:$4 sm:$0xff]   ;;  %v6328_v5 = vld [vmem:[%s8263_s7 + $0x5f0] ss:$8 sps:$4 sm:$0xff]  }
 0x459   :  { %v6331_v22 = vld [vmem:[%s8263_s7 + $0x610] ss:$8 sps:$4 sm:$0xff]  }
 0x45b   :  { %4294 = vmatpush1.bf16.msra.mxu1 %v6262_v24  ;;  %4331 = vmatpush1.bf16.msra.mxu0 %v6265_v30  ;;  %v6336_v24 = vld [vmem:[%s8263_s7 + $0x624] ss:$8 sps:$4 sm:$0xff]   ;;  %v6342_v30 = vld [vmem:[%s8263_s7 + $0x634] ss:$8 sps:$4 sm:$0xff]  }
 0x45c   :  { %4295 = vmatprep.subr.bf16.mxu1 %v6270_v37  ;;  %4332 = vmatprep.subr.bf16.mxu0 %v6273_v25  ;;  %v6348_v37 = vld [vmem:[%s8263_s7 + $0x644] ss:$8 sps:$4 sm:$0xff]   ;;  %v6354_v25 = vld [vmem:[%s8263_s7 + $0x654] ss:$8 sps:$4 sm:$0xff]  }
 0x45f   :  { %4296 = vmatpush1.bf16.msra.mxu1 %v6268_v11  ;;  %4333 = vmatpush1.bf16.msra.mxu0 %v6271_v7  ;;  %v6360_v11 = vld [vmem:[%s8263_s7 + $0x664] ss:$8 sps:$4 sm:$0xff]  }
 0x460   :  { %4297 = vmatprep.subr.bf16.mxu1 %v6276_v17  ;;  %4334 = vmatprep.subr.bf16.mxu0 %v6279_v18  ;;  %v6363_v7 = vld [vmem:[%s8263_s7 + $0x744] ss:$8 sps:$4 sm:$0xff]   ;;  %v6358_v17 = vld [vmem:[%s8263_s7 + $0x660] ss:$8 sps:$4 sm:$0xff]  }
 0x461   :  { %v6361_v18 = vld [vmem:[%s8263_s7 + $0x740] ss:$8 sps:$4 sm:$0xff]  }
 0x463   :  { %4298 = vmatpush1.bf16.msra.mxu1 %v6274_v45  ;;  %4335 = vmatpush1.bf16.msra.mxu0 %v6277_v9  ;;  %v6366_v45 = vld [vmem:[%s8263_s7 + $0x674] ss:$8 sps:$4 sm:$0xff]  }
 0x464   :  { %4299 = vmatprep.subr.bf16.mxu1 %v6282_v54  ;;  %4336 = vmatprep.subr.bf16.mxu0 %v6285_v27  ;;  %v6369_v9 = vld [vmem:[%s8263_s7 + $0x754] ss:$8 sps:$4 sm:$0xff]   ;;  %v6364_v54 = vld [vmem:[%s8263_s7 + $0x670] ss:$8 sps:$4 sm:$0xff]  }
 0x465   :  { %v6367_v27 = vld [vmem:[%s8263_s7 + $0x750] ss:$8 sps:$4 sm:$0xff]  }
 0x467   :  { %4300 = vmatpush1.bf16.msra.mxu1 %v6280_v28  ;;  %4337 = vmatpush1.bf16.msra.mxu0 %v6283_v29  ;;  %v6372_v28 = vld [vmem:[%s8263_s7 + $0x684] ss:$8 sps:$4 sm:$0xff]  }
 0x468   :  { %4301 = vmatprep.subr.bf16.mxu1 %v6288_v31  ;;  %4338 = vmatprep.subr.bf16.mxu0 %v6291_v33  ;;  %v6375_v29 = vld [vmem:[%s8263_s7 + $0x764] ss:$8 sps:$4 sm:$0xff]   ;;  %v6370_v31 = vld [vmem:[%s8263_s7 + $0x680] ss:$8 sps:$4 sm:$0xff]  }
 0x469   :  { %v6373_v33 = vld [vmem:[%s8263_s7 + $0x760] ss:$8 sps:$4 sm:$0xff]  }
 0x46b   :  { %4302 = vmatpush1.bf16.msra.mxu1 %v6286_v38  ;;  %4339 = vmatpush1.bf16.msra.mxu0 %v6289_v63  ;;  %v6378_v38 = vld [vmem:[%s8263_s7 + $0x694] ss:$8 sps:$4 sm:$0xff]  }
 0x46c   :  { %4303 = vmatprep.subr.bf16.mxu1 %v6294_v41  ;;  %4340 = vmatprep.subr.bf16.mxu0 %v6297_v26  ;;  %v6381_v63 = vld [vmem:[%s8263_s7 + $0x774] ss:$8 sps:$4 sm:$0xff]   ;;  %v6376_v41 = vld [vmem:[%s8263_s7 + $0x690] ss:$8 sps:$4 sm:$0xff]  }
 0x46d   :  { %v6379_v26 = vld [vmem:[%s8263_s7 + $0x770] ss:$8 sps:$4 sm:$0xff]  }
 0x46f   :  { %4304 = vmatpush1.bf16.msra.mxu1 %v6292_v55  ;;  %4341 = vmatpush1.bf16.msra.mxu0 %v6295_v56  ;;  %v6384_v55 = vld [vmem:[%s8263_s7 + $0x6a4] ss:$8 sps:$4 sm:$0xff]  }
 0x470   :  { %4305 = vmatprep.subr.bf16.mxu1 %v6300_v52  ;;  %4342 = vmatprep.subr.bf16.mxu0 %v6303_v40  ;;  %v6387_v56 = vld [vmem:[%s8263_s7 + $0x784] ss:$8 sps:$4 sm:$0xff]   ;;  %v6382_v52 = vld [vmem:[%s8263_s7 + $0x6a0] ss:$8 sps:$4 sm:$0xff]  }
 0x471   :  { %v6385_v40 = vld [vmem:[%s8263_s7 + $0x780] ss:$8 sps:$4 sm:$0xff]  }
 0x473   :  { %4306 = vmatpush1.bf16.msra.mxu1 %v6298_v15  ;;  %4343 = vmatpush1.bf16.msra.mxu0 %v6301_v16  ;;  %v6390_v15 = vld [vmem:[%s8263_s7 + $0x6b4] ss:$8 sps:$4 sm:$0xff]  }
 0x474   :  { %4307 = vmatprep.subr.bf16.mxu1 %v6306_v57  ;;  %4344 = vmatprep.subr.bf16.mxu0 %v6309_v58  ;;  %v6393_v16 = vld [vmem:[%s8263_s7 + $0x794] ss:$8 sps:$4 sm:$0xff]   ;;  %v6388_v57 = vld [vmem:[%s8263_s7 + $0x6b0] ss:$8 sps:$4 sm:$0xff]  }
 0x475   :  { %v6391_v58 = vld [vmem:[%s8263_s7 + $0x790] ss:$8 sps:$4 sm:$0xff]  }
 0x477   :  { %4308 = vmatpush1.bf16.msra.mxu1 %v6304_v32  ;;  %4345 = vmatpush1.bf16.msra.mxu0 %v6307_v13  ;;  %v6396_v32 = vld [vmem:[%s8263_s7 + $0x6c4] ss:$8 sps:$4 sm:$0xff]  }
 0x478   :  { %4309 = vmatprep.subr.bf16.mxu1 %v6312_v14  ;;  %4346 = vmatprep.subr.bf16.mxu0 %v6315_v20  ;;  %v6399_v13 = vld [vmem:[%s8263_s7 + $0x7a4] ss:$8 sps:$4 sm:$0xff]   ;;  %v6394_v14 = vld [vmem:[%s8263_s7 + $0x6c0] ss:$8 sps:$4 sm:$0xff]  }
 0x479   :  { %v6397_v20 = vld [vmem:[%s8263_s7 + $0x7a0] ss:$8 sps:$4 sm:$0xff]  }
 0x47b   :  { %4310 = vmatpush1.bf16.msra.mxu1 %v6310_v59  ;;  %4347 = vmatpush1.bf16.msra.mxu0 %v6313_v10  ;;  %v6402_v59 = vld [vmem:[%s8263_s7 + $0x6d4] ss:$8 sps:$4 sm:$0xff]  }
 0x47c   :  { %4311 = vmatprep.subr.bf16.mxu1 %v6318_v47  ;;  %4348 = vmatprep.subr.bf16.mxu0 %v6321_v2  ;;  %v6405_v10 = vld [vmem:[%s8263_s7 + $0x7b4] ss:$8 sps:$4 sm:$0xff]   ;;  %v6400_v47 = vld [vmem:[%s8263_s7 + $0x6d0] ss:$8 sps:$4 sm:$0xff]  }
 0x47d   :  { %v6403_v2 = vld [vmem:[%s8263_s7 + $0x7b0] ss:$8 sps:$4 sm:$0xff]  }
 0x47f   :  { %4312 = vmatpush1.bf16.msra.mxu1 %v6316_v3  ;;  %4349 = vmatpush1.bf16.msra.mxu0 %v6319_v35  ;;  %v6408_v3 = vld [vmem:[%s8263_s7 + $0x6e4] ss:$8 sps:$4 sm:$0xff]  }
 0x480   :  { %4350 = vmatprep.subr.bf16.mxu0 %v6324_v4  ;;  %4363 = vmatprep.subr.bf16.mxu1 %v6327_v44  ;;  %v6411_v35 = vld [vmem:[%s8263_s7 + $0x7c4] ss:$8 sps:$4 sm:$0xff]   ;;  %v6406_v4 = vld [vmem:[%s8263_s7 + $0x6e0] ss:$8 sps:$4 sm:$0xff]  }
 0x481   :  { %v6409_v44 = vld [vmem:[%s8263_s7 + $0x7c0] ss:$8 sps:$4 sm:$0xff]  }
 0x482   :  { %4314 = vmatmul.mubr.bf16.vlgmr.msra.gmra.mrb[88].mxu1 %v2573_v19  ;;  %v6337_v19 = vld [vmem:[%s8263_s7 + $0x700] ss:$8 sps:$4 sm:$0xff]  }
 0x483   :  { %4351 = vmatpush1.bf16.msra.mxu0 %v6322_v6  ;;  %4364 = vmatpush1.bf16.msra.mxu1 %v6325_v8  ;;  %v6414_v6 = vld [vmem:[%s8263_s7 + $0x6f4] ss:$8 sps:$4 sm:$0xff]  }
 0x484   :  { %4352 = vmatprep.subr.bf16.mxu0 %v6330_v61  ;;  %4365 = vmatprep.subr.bf16.mxu1 %v6333_v1  ;;  %v6417_v8 = vld [vmem:[%s8263_s7 + $0x7d4] ss:$8 sps:$4 sm:$0xff]   ;;  %v6412_v61 = vld [vmem:[%s8263_s7 + $0x6f0] ss:$8 sps:$4 sm:$0xff]  }
 0x485   :  { %4395 = vmatprep.mubr.bf16.mxu1 %v2578_v34  ;;  %v6343_v34 = vld [vmem:[%s8263_s7 + $0x710] ss:$8 sps:$4 sm:$0xff]  }
 0x486   :  { %v6415_v1 = vld [vmem:[%s8263_s7 + $0x7d0] ss:$8 sps:$4 sm:$0xff]  }
 0x487   :  { %4353 = vmatpush1.bf16.msra.mxu0 %v6328_v5  ;;  %4366 = vmatpush1.bf16.msra.mxu1 %v6331_v22  ;;  %v6420_v5 = vld [vmem:[%s8263_s7 + $0x7e4] ss:$8 sps:$4 sm:$0xff]   ;;  %v6418_v22 = vld [vmem:[%s8263_s7 + $0x7e0] ss:$8 sps:$4 sm:$0xff]  }
 0x488   :  { %4367 = vmatprep.subr.bf16.mxu1 %v6336_v24  ;;  %4404 = vmatprep.subr.bf16.mxu0 %v6339_v60  ;;  %v6423_v24 = vld [vmem:[%s8263_s7 + $0x7f4] ss:$8 sps:$4 sm:$0xff]   ;;  %v6421_v60 = vld [vmem:[%s8263_s7 + $0x7f0] ss:$8 sps:$4 sm:$0xff]  }
 0x48a   :  { %4355 = vmatmul.mubr.bf16.vlgmr.msra.gmra.mrb[104].mxu0 %v2575_v36  ;;  %v6349_v36 = vld [vmem:[%s8263_s7 + $0x720] ss:$8 sps:$4 sm:$0xff]  }
 0x48b   :  { %4368 = vmatpush1.bf16.msra.mxu1 %v6334_v51  ;;  %4405 = vmatpush1.bf16.msra.mxu0 %v6337_v19 }
 0x48c   :  { %4369 = vmatprep.subr.bf16.mxu1 %v6342_v30  ;;  %4406 = vmatprep.subr.bf16.mxu0 %v6345_v12 }
 0x48d   :  { %4436 = vmatprep.mubr.bf16.mxu0 %v2580_v42  ;;  %v6355_v42 = vld [vmem:[%s8263_s7 + $0x730] ss:$8 sps:$4 sm:$0xff]  }
 0x48f   :  { %4370 = vmatpush1.bf16.msra.mxu1 %v6340_v50  ;;  %4407 = vmatpush1.bf16.msra.mxu0 %v6343_v34 }
 0x490   :  { %4371 = vmatprep.subr.bf16.mxu1 %v6348_v37  ;;  %4408 = vmatprep.subr.bf16.mxu0 %v6351_v21 }
 0x493   :  { %4372 = vmatpush1.bf16.msra.mxu1 %v6346_v23  ;;  %4409 = vmatpush1.bf16.msra.mxu0 %v6349_v36 }
 0x494   :  { %4373 = vmatprep.subr.bf16.mxu1 %v6354_v25  ;;  %4410 = vmatprep.subr.bf16.mxu0 %v6357_v46 }
 0x497   :  { %4374 = vmatpush1.bf16.msra.mxu1 %v6352_v62  ;;  %4411 = vmatpush1.bf16.msra.mxu0 %v6355_v42 }
 0x498   :  { %4375 = vmatprep.subr.bf16.mxu1 %v6360_v11  ;;  %4412 = vmatprep.subr.bf16.mxu0 %v6363_v7 }
 0x49b   :  { %4376 = vmatpush1.bf16.msra.mxu1 %v6358_v17  ;;  %4413 = vmatpush1.bf16.msra.mxu0 %v6361_v18  ;;  %v6424_v17 = vmov 0.0  }
 0x49c   :  { %4377 = vmatprep.subr.bf16.mxu1 %v6366_v45  ;;  %4414 = vmatprep.subr.bf16.mxu0 %v6369_v9 }
 0x49f   :  { %4378 = vmatpush1.bf16.msra.mxu1 %v6364_v54  ;;  %4415 = vmatpush1.bf16.msra.mxu0 %v6367_v27 }
 0x4a0   :  { %4379 = vmatprep.subr.bf16.mxu1 %v6372_v28  ;;  %4416 = vmatprep.subr.bf16.mxu0 %v6375_v29 }
 0x4a3   :  { %4380 = vmatpush1.bf16.msra.mxu1 %v6370_v31  ;;  %4417 = vmatpush1.bf16.msra.mxu0 %v6373_v33 }
 0x4a4   :  { %4381 = vmatprep.subr.bf16.mxu1 %v6378_v38  ;;  %4418 = vmatprep.subr.bf16.mxu0 %v6381_v63 }
 0x4a7   :  { %4382 = vmatpush1.bf16.msra.mxu1 %v6376_v41  ;;  %4419 = vmatpush1.bf16.msra.mxu0 %v6379_v26  ;;  %v4447_v26 = vlaneseq }
 0x4a8   :  { %4383 = vmatprep.subr.bf16.mxu1 %v6384_v55  ;;  %4420 = vmatprep.subr.bf16.mxu0 %v6387_v56 }
 0x4a9   :  { %v8096_v55 = vshrl.u32 %v4447_v26, 7 }
 0x4ab   :  { %4384 = vmatpush1.bf16.msra.mxu1 %v6382_v52  ;;  %4421 = vmatpush1.bf16.msra.mxu0 %v6385_v40 }
 0x4ac   :  { %4385 = vmatprep.subr.bf16.mxu1 %v6390_v15  ;;  %4422 = vmatprep.subr.bf16.mxu0 %v6393_v16 }
 0x4af   :  { %4386 = vmatpush1.bf16.msra.mxu1 %v6388_v57  ;;  %4423 = vmatpush1.bf16.msra.mxu0 %v6391_v58  ;;  %v8099_v58 = vsub.s32 0, %v8096_v55 }
 0x4b0   :  { %4387 = vmatprep.subr.bf16.mxu1 %v6396_v32  ;;  %4424 = vmatprep.subr.bf16.mxu0 %v6399_v13  ;;  %v4445_v32 = vld [vmem:[%s8264_s8] sm:$0x3]  ;;  %v8105_v13 = vsub.s32 1, %v8096_v55 }
 0x4b3   :  { %4388 = vmatpush1.bf16.msra.mxu1 %v6394_v14  ;;  %4425 = vmatpush1.bf16.msra.mxu0 %v6397_v20  ;;  %v4450_v14 = vrot.slane %v4445_v32, %v8099_v58 }
 0x4b4   :  { %4389 = vmatprep.subr.bf16.mxu1 %v6402_v59  ;;  %4426 = vmatprep.subr.bf16.mxu0 %v6405_v10  ;;  %v4454_v59 = vrot.slane %v4445_v32, %v8105_v13  ;;  %v4692_v32 = vld [vmem:[%s8266_s10 + $0x8] sm:$0xff] }
 0x4b7   :  { %4390 = vmatpush1.bf16.msra.mxu1 %v6400_v47  ;;  %4427 = vmatpush1.bf16.msra.mxu0 %v6403_v2 }
 0x4b8   :  { %4391 = vmatprep.subr.bf16.mxu1 %v6408_v3  ;;  %4428 = vmatprep.subr.bf16.mxu0 %v6411_v35 }
 0x4bb   :  { %4392 = vmatpush1.bf16.msra.mxu1 %v6406_v4  ;;  %4429 = vmatpush1.bf16.msra.mxu0 %v6409_v44 }
 0x4bc   :  { %4393 = vmatprep.subr.bf16.mxu1 %v6414_v6  ;;  %4430 = vmatprep.subr.bf16.mxu0 %v6417_v8 }
 0x4bf   :  { %4394 = vmatpush1.bf16.msra.mxu1 %v6412_v61  ;;  %4431 = vmatpush1.bf16.msra.mxu0 %v6415_v1  ;;  %v4465_v1 = vld [vmem:[%s8265_s9] sm:$0xff] }
 0x4c0   :  { %4432 = vmatprep.subr.bf16.mxu0 %v6420_v5 }
 0x4c2   :  { %4396 = vmatmul.mubr.bf16.vlgmr.msra.gmra.mrb[92].mxu1 %v2577_v49 }
 0x4c3   :  { %4433 = vmatpush1.bf16.msra.mxu0 %v6418_v22  ;;  %4594 = vmatprep.mubr.f32.mxu1 %v6424_v17  ;;  %v4466_v22 = vld [vmem:[%s8265_s9 + $0x8] sm:$0xff] }
 0x4c4   :  { %4434 = vmatprep.subr.bf16.mxu0 %v6423_v24  ;;  %v4467_v24 = vld [vmem:[%s8265_s9 + $0x10] sm:$0xff] }
 0x4c7   :  { %4435 = vmatpush1.bf16.msra.mxu0 %v6421_v60  ;;  %v4468_v60 = vld [vmem:[%s8265_s9 + $0x18] sm:$0xff] }
 0x4ca   :  { %4437 = vmatmul.mubr.bf16.vlgmr.msra.gmra.mrb[108].mxu0 %v2579_v0 }
 0x4d5   :  { %v4151_v51 = vpop.f32.mrb[80].mxu1 }
 0x4d6   :  { %v4153_v19 = vpop.f32.mrb[81].mxu1 }
 0x4d7   :  { %v4155_v30 = vpop.f32.mrb[82].mxu1 }
 0x4d8   :  { %v4156_v12 = vpop.f32.mrb[83].mxu1  ;;  %v4471_v30 = vld [vmem:[%s8265_s9 + $0x30] sm:$0xff] }
 0x4d9   :  { %v4472_v12 = vld [vmem:[%s8265_s9 + $0x38] sm:$0xff] }
 0x4dd   :  { %v4192_v50 = vpop.f32.mrb[96].mxu0 }
 0x4de   :  { %v4193_v34 = vadd.f32 %v4192_v50, %v4151_v51  ;;  %v4194_v37 = vpop.f32.mrb[97].mxu0  ;;  %v4469_v51 = vld [vmem:[%s8265_s9 + $0x20] sm:$0xff] }
 0x4df   :  { %v4195_v39 = vadd.f32 %v4194_v37, %v4153_v19  ;;  %v4196_v48 = vpop.f32.mrb[98].mxu0  ;;  %v4470_v19 = vld [vmem:[%s8265_s9 + $0x28] sm:$0xff]  ;;  %v4473_v50 = vld [vmem:[%s8265_s9 + $0x40] sm:$0xff]  ;;  %v4475_v37 = vld [vmem:[%s8265_s9 + $0x50] sm:$0xff] }
 0x4e0   :  { %v4197_v49 = vpop.f32.mrb[99].mxu0  ;;  %v4477_v48 = vld [vmem:[%s8265_s9 + $0x60] sm:$0xff] }
 0x4e1   :  { %v4478_v49 = vld [vmem:[%s8265_s9 + $0x68] sm:$0xff] }
 0x515   :  { %v4233_v21 = vpop.f32.mrb[84].mxu1 }
 0x516   :  { %v4234_v23 = vadd.f32 %v4233_v21, %v4193_v34  ;;  %v4235_v36 = vpop.f32.mrb[85].mxu1  ;;  %v4474_v34 = vld [vmem:[%s8265_s9 + $0x48] sm:$0xff]  ;;  %v4479_v21 = vld [vmem:[%s8265_s9 + $0x70] sm:$0xff] }
 0x517   :  { %v4236_v25 = vadd.f32 %v4235_v36, %v4195_v39  ;;  %v4237_v46 = vpop.f32.mrb[86].mxu1  ;;  %v4476_v39 = vld [vmem:[%s8265_s9 + $0x58] sm:$0xff]  ;;  %v4691_v36 = vld [vmem:[%s8266_s10] sm:$0xff] }
 0x518   :  { %v4238_v62 = vpop.f32.mrb[87].mxu1  ;;  %v8193_v46 = vsub.s32 2, %v8096_v55 }
 0x519   :  { %v4706_v62 = vrot.slane %v4691_v36, %v8105_v13 }
 0x51d   :  { %v4274_v42 = vpop.f32.mrb[100].mxu0 }
 0x51e   :  { %v4275_v11 = vadd.f32 %v4274_v42, %v4234_v23  ;;  %v4276_v53 = vpop.f32.mrb[101].mxu0  ;;  %v4480_v23 = vld [vmem:[%s8265_s9 + $0x78] sm:$0xff]  ;;  %v8197_v42 = vsub.s32 3, %v8096_v55 }
 0x51f   :  { %v4277_v43 = vadd.f32 %v4276_v53, %v4236_v25  ;;  %v4278_v0 = vpop.f32.mrb[102].mxu0  ;;  %v4702_v25 = vrot.slane %v4691_v36, %v8099_v58 }
 0x520   :  { %v4279_v7 = vpop.f32.mrb[103].mxu0  ;;  %v4710_v0 = vrot.slane %v4691_v36, %v8193_v46 }
 0x521   :  { %v8201_v7 = vsub.s32 4, %v8096_v55 }
 0x555   :  { %v4315_v18 = vpop.f32.mrb[88].mxu1 }
 0x556   :  { %v4316_v45 = vadd.f32 %v4315_v18, %v4275_v11  ;;  %v4317_v9 = vpop.f32.mrb[89].mxu1  ;;  %v4714_v18 = vrot.slane %v4691_v36, %v8197_v42 }
 0x557   :  { %v4318_v54 = vadd.f32 %v4317_v9, %v4277_v43  ;;  %v4319_v27 = vpop.f32.mrb[90].mxu1 }
 0x558   :  { %v4320_v28 = vpop.f32.mrb[91].mxu1 }
 0x55d   :  { %v4356_v29 = vpop.f32.mrb[104].mxu0 }
 0x55e   :  { %v4357_v31 = vadd.f32 %v4356_v29, %v4316_v45  ;;  %v4358_v33 = vpop.f32.mrb[105].mxu0  ;;  %v8205_v45 = vsub.s32 5, %v8096_v55  ;;  %v4718_v29 = vrot.slane %v4691_v36, %v8201_v7 }
 0x55f   :  { %v4359_v38 = vadd.f32 %v4358_v33, %v4318_v54  ;;  %v4360_v63 = vpop.f32.mrb[106].mxu0 }
 0x560   :  { %v4361_v41 = vpop.f32.mrb[107].mxu0  ;;  %v8213_v63 = vsub.s32 7, %v8096_v55 }
 0x595   :  { %v4397_v56 = vpop.f32.mrb[92].mxu1 }
 0x596   :  { %v4398_v52 = vadd.f32 %v4397_v56, %v4357_v31  ;;  %v4399_v40 = vpop.f32.mrb[93].mxu1  ;;  %v8209_v31 = vsub.s32 6, %v8096_v55 }
 0x597   :  { %v4400_v15 = vadd.f32 %v4399_v40, %v4359_v38  ;;  %v4401_v16 = vpop.f32.mrb[94].mxu1  ;;  %v4722_v38 = vrot.slane %v4691_v36, %v8205_v45 }
 0x598   :  { %v4402_v57 = vpop.f32.mrb[95].mxu1 }
 0x599   :  { %v4730_v57 = vrot.slane %v4691_v36, %v8213_v63 }
 0x59d   :  { %v4438_v20 = vpop.f32.mrb[108].mxu0 }
 0x59e   :  { %v4439_v10 = vadd.f32 %v4438_v20, %v4398_v52  ;;  %v4440_v47 = vpop.f32.mrb[109].mxu0 }
 0x59f   :  { %v4441_v2 = vadd.f32 %v4440_v47, %v4400_v15  ;;  %v4442_v3 = vpop.f32.mrb[110].mxu0  ;;  %v4726_v15 = vrot.slane %v4691_v36, %v8209_v31  ;;  %v4734_v47 = vrot.slane %v4692_v32, %v8099_v58  ;;  %v4762_v36 = vrot.slane %v4692_v32, %v8213_v63 }
 0x5a0   :  { %v4457_v35 = vadd.f32 %v4450_v14, %v4439_v10  ;;  %v4443_v4 = vpop.f32.mrb[111].mxu0  ;;  %v4738_v3 = vrot.slane %v4692_v32, %v8105_v13 }
 0x5a1   :  { %v4458_v44 = vadd.f32 %v4454_v59, %v4441_v2 }
 0x5a2   :  { %v4461_v6 = vmul.f32 0.2, %v4457_v35  ;;  %vm4459_vm8 = vcmp.ge.f32.partialorder %v4457_v35, 0.0 }
 0x5a3   :  { %vm4460_vm7 = vcmp.ge.f32.partialorder %v4458_v44, 0.0  ;;  %v4462_v8 = vmul.f32 0.2, %v4458_v44 }
 0x5a4   :  { %v4463_v5 = vsel %vm4459_vm8, %v4457_v35, %v4461_v6 }
 0x5a5   :  { %v4464_v61 = vsel %vm4460_vm7, %v4458_v44, %v4462_v8 }
 0x5a6   :  { %4530 = vmatprep.subr.mxu1 %v4464_v61  ;;  %v4742_v61 = vrot.slane %v4692_v32, %v8193_v46 }
 0x5a7   :  { %4531 = vmatpush1.msra.mxu1 %v4463_v5  ;;  %v4746_v5 = vrot.slane %v4692_v32, %v8197_v42 }
 0x5a8   :  { %5420 = vmatmul.mubr.msk.f32.vlgmr.msra.gmra.mrb[96].mxu1 %vm4481_vm9, %v4465_v1 }
 0x5a9   :  { %4600 = vmatprep.mubr.f32.mxu1 %v6424_v17 }
 0x5ac   :  { %5421 = vmatmul.mubr.msk.f32.gmra.mrb[98].mxu1 %vm4481_vm9, %v4466_v22 }
 0x5ad   :  { %4606 = vmatprep.mubr.f32.mxu1 %v6424_v17 }
 0x5b0   :  { %5422 = vmatmul.mubr.msk.f32.gmra.mrb[100].mxu1 %vm4481_vm9, %v4467_v24 }
 0x5b1   :  { %4612 = vmatprep.mubr.f32.mxu1 %v6424_v17 }
 0x5b4   :  { %5423 = vmatmul.mubr.msk.f32.gmra.mrb[102].mxu1 %vm4481_vm9, %v4468_v60 }
 0x5b5   :  { %4618 = vmatprep.mubr.f32.mxu1 %v6424_v17 }
 0x5b8   :  { %5424 = vmatmul.mubr.msk.f32.gmra.mrb[104].mxu1 %vm4481_vm9, %v4469_v51 }
 0x5b9   :  { %4624 = vmatprep.mubr.f32.mxu1 %v6424_v17 }
 0x5bc   :  { %5425 = vmatmul.mubr.msk.f32.gmra.mrb[106].mxu1 %vm4481_vm9, %v4470_v19 }
 0x5bd   :  { %4630 = vmatprep.mubr.f32.mxu1 %v6424_v17 }
 0x5c0   :  { %5426 = vmatmul.mubr.msk.f32.gmra.mrb[108].mxu1 %vm4481_vm9, %v4471_v30  ;;  %v4750_v30 = vrot.slane %v4692_v32, %v8201_v7 }
 0x5c1   :  { %4636 = vmatprep.mubr.f32.mxu1 %v6424_v17 }
 0x5c4   :  { %5427 = vmatmul.mubr.msk.f32.gmra.mrb[110].mxu1 %vm4481_vm9, %v4472_v12 }
 0x5c5   :  { %4642 = vmatprep.mubr.f32.mxu1 %v6424_v17 }
 0x5c8   :  { %5428 = vmatmul.mubr.msk.f32.gmra.mrb[112].mxu1 %vm4481_vm9, %v4473_v50  ;;  %v4754_v50 = vrot.slane %v4692_v32, %v8205_v45 }
 0x5c9   :  { %4648 = vmatprep.mubr.f32.mxu1 %v6424_v17 }
 0x5cc   :  { %5429 = vmatmul.mubr.msk.f32.gmra.mrb[114].mxu1 %vm4481_vm9, %v4474_v34 }
 0x5cd   :  { %4654 = vmatprep.mubr.f32.mxu1 %v6424_v17 }
 0x5d0   :  { %5430 = vmatmul.mubr.msk.f32.gmra.mrb[116].mxu1 %vm4481_vm9, %v4475_v37 }
 0x5d1   :  { %4660 = vmatprep.mubr.f32.mxu1 %v6424_v17 }
 0x5d4   :  { %5431 = vmatmul.mubr.msk.f32.gmra.mrb[118].mxu1 %vm4481_vm9, %v4476_v39 }
 0x5d5   :  { %4666 = vmatprep.mubr.f32.mxu1 %v6424_v17 }
 0x5d8   :  { %5432 = vmatmul.mubr.msk.f32.gmra.mrb[120].mxu1 %vm4481_vm9, %v4477_v48 }
 0x5d9   :  { %4672 = vmatprep.mubr.f32.mxu1 %v6424_v17 }
 0x5dc   :  { %5433 = vmatmul.mubr.msk.f32.gmra.mrb[122].mxu1 %vm4481_vm9, %v4478_v49 }
 0x5dd   :  { %4678 = vmatprep.mubr.f32.mxu1 %v6424_v17 }
 0x5e0   :  { %5434 = vmatmul.mubr.msk.f32.gmra.mrb[124].mxu1 %vm4481_vm9, %v4479_v21  ;;  %v4758_v21 = vrot.slane %v4692_v32, %v8209_v31 }
 0x5e1   :  { %4684 = vmatprep.mubr.f32.mxu1 %v6424_v17 }
 0x5e4   :  { %5435 = vmatmul.mubr.msk.f32.gmra.mrb[126].mxu1 %vm4481_vm9, %v4480_v23 }
 0x67b   :  { %v4596_v11 = vpop.f32.mrb[96].mxu1 }
 0x67c   :  { %v4859_v53 = vmul.f32 %v4702_v25, %v4596_v11  ;;  %v4598_v43 = vpop.f32.mrb[97].mxu1  ;;  %v4693_v25 = vld [vmem:[%s8266_s10 + $0x10] sm:$0xff] }
 0x67d   :  { %v4860_v17 = vmul.f32 %v4706_v62, %v4598_v43 }
 0x67f   :  { %v4891_v9 = vadd.f32 %v4860_v17, %v4859_v53  ;;  %v4602_v54 = vpop.f32.mrb[98].mxu1  ;;  %v4766_v17 = vrot.slane %v4693_v25, %v8099_v58 }
 0x680   :  { %v4861_v27 = vmul.f32 %v4710_v0, %v4602_v54  ;;  %v4604_v28 = vpop.f32.mrb[99].mxu1 }
 0x681   :  { %v4862_v33 = vmul.f32 %v4714_v18, %v4604_v28 }
 0x682   :  { %v4892_v41 = vadd.f32 %v4891_v9, %v4861_v27  ;;  %v4770_v9 = vrot.slane %v4693_v25, %v8105_v13 }
 0x683   :  { %v4608_v26 = vpop.f32.mrb[100].mxu1 }
 0x684   :  { %v4893_v56 = vadd.f32 %v4892_v41, %v4862_v33  ;;  %v4863_v52 = vmul.f32 %v4718_v29, %v4608_v26  ;;  %v4610_v40 = vpop.f32.mrb[101].mxu1  ;;  %v4778_v26 = vrot.slane %v4693_v25, %v8197_v42 }
 0x685   :  { %v4864_v16 = vmul.f32 %v4722_v38, %v4610_v40  ;;  %v4774_v38 = vrot.slane %v4693_v25, %v8193_v46 }
 0x686   :  { %v4894_v14 = vadd.f32 %v4893_v56, %v4863_v52 }
 0x687   :  { %v4614_v20 = vpop.f32.mrb[102].mxu1 }
 0x688   :  { %v4895_v59 = vadd.f32 %v4894_v14, %v4864_v16  ;;  %v4865_v10 = vmul.f32 %v4726_v15, %v4614_v20  ;;  %v4616_v55 = vpop.f32.mrb[103].mxu1  ;;  %v4786_v14 = vrot.slane %v4693_v25, %v8205_v45 }
 0x689   :  { %v4866_v2 = vmul.f32 %v4730_v57, %v4616_v55  ;;  %v4782_v57 = vrot.slane %v4693_v25, %v8201_v7 }
 0x68a   :  { %v4896_v35 = vadd.f32 %v4895_v59, %v4865_v10 }
 0x68b   :  { %v4620_v4 = vpop.f32.mrb[104].mxu1 }
 0x68c   :  { %v4897_v44 = vadd.f32 %v4896_v35, %v4866_v2  ;;  %v4867_v6 = vmul.f32 %v4734_v47, %v4620_v4  ;;  %v4622_v8 = vpop.f32.mrb[105].mxu1  ;;  %v4790_v2 = vrot.slane %v4693_v25, %v8209_v31  ;;  %v4794_v35 = vrot.slane %v4693_v25, %v8213_v63  ;;  %v4694_v4 = vld [vmem:[%s8266_s10 + $0x18] sm:$0xff] }
 0x68d   :  { %v4868_v1 = vmul.f32 %v4738_v3, %v4622_v8 }
 0x68e   :  { %v4898_v22 = vadd.f32 %v4897_v44, %v4867_v6 }
 0x68f   :  { %v4626_v24 = vpop.f32.mrb[106].mxu1 }
 0x690   :  { %v4899_v60 = vadd.f32 %v4898_v22, %v4868_v1  ;;  %v4869_v51 = vmul.f32 %v4742_v61, %v4626_v24  ;;  %v4628_v19 = vpop.f32.mrb[107].mxu1  ;;  %v4802_v24 = vrot.slane %v4694_v4, %v8105_v13  ;;  %v4818_v13 = vrot.slane %v4694_v4, %v8205_v45  ;;  %v5436_v45 = vld [vmem:[%s8267_s11] ss:$0 sm:$0xff] }
 0x691   :  { %v4870_v12 = vmul.f32 %v4746_v5, %v4628_v19  ;;  %v4798_v5 = vrot.slane %v4694_v4, %v8099_v58  ;;  %v4814_v58 = vrot.slane %v4694_v4, %v8201_v7 }
 0x692   :  { %v4900_v34 = vadd.f32 %v4899_v60, %v4869_v51 }
 0x693   :  { %v4632_v37 = vpop.f32.mrb[108].mxu1 }
 0x694   :  { %v4901_v39 = vadd.f32 %v4900_v34, %v4870_v12  ;;  %v4871_v48 = vmul.f32 %v4750_v30, %v4632_v37  ;;  %v4634_v49 = vpop.f32.mrb[109].mxu1  ;;  %v4810_v37 = vrot.slane %v4694_v4, %v8197_v42  ;;  %v4826_v42 = vrot.slane %v4694_v4, %v8213_v63 }
 0x695   :  { %v4872_v23 = vmul.f32 %v4754_v50, %v4634_v49  ;;  %v4806_v50 = vrot.slane %v4694_v4, %v8193_v46  ;;  %v4822_v46 = vrot.slane %v4694_v4, %v8209_v31 }
 0x696   :  { %v4902_v62 = vadd.f32 %v4901_v39, %v4871_v48 }
 0x697   :  { %v4638_v11 = vpop.f32.mrb[110].mxu1 }
 0x698   :  { %v4903_v53 = vadd.f32 %v4902_v62, %v4872_v23  ;;  %v4873_v43 = vmul.f32 %v4758_v21, %v4638_v11  ;;  %v4640_v0 = vpop.f32.mrb[111].mxu1 }
 0x699   :  { %v4874_v18 = vmul.f32 %v4762_v36, %v4640_v0 }
 0x69a   :  { %v4904_v54 = vadd.f32 %v4903_v53, %v4873_v43 }
 0x69b   :  { %v4644_v27 = vpop.f32.mrb[112].mxu1 }
 0x69c   :  { %v4905_v28 = vadd.f32 %v4904_v54, %v4874_v18  ;;  %v4875_v29 = vmul.f32 %v4766_v17, %v4644_v27  ;;  %v4646_v33 = vpop.f32.mrb[113].mxu1 }
 0x69d   :  { %v4876_v41 = vmul.f32 %v4770_v9, %v4646_v33 }
 0x69e   :  { %v4906_v56 = vadd.f32 %v4905_v28, %v4875_v29 }
 0x69f   :  { %v4650_v52 = vpop.f32.mrb[114].mxu1 }
 0x6a0   :  { %v4907_v40 = vadd.f32 %v4906_v56, %v4876_v41  ;;  %v4877_v15 = vmul.f32 %v4774_v38, %v4650_v52  ;;  %v4652_v16 = vpop.f32.mrb[115].mxu1 }
 0x6a1   :  { %v4878_v32 = vmul.f32 %v4778_v26, %v4652_v16 }
 0x6a2   :  { %v4908_v20 = vadd.f32 %v4907_v40, %v4877_v15 }
 0x6a3   :  { %v4656_v59 = vpop.f32.mrb[116].mxu1 }
 0x6a4   :  { %v4909_v10 = vadd.f32 %v4908_v20, %v4878_v32  ;;  %v4879_v55 = vmul.f32 %v4782_v57, %v4656_v59  ;;  %v4658_v47 = vpop.f32.mrb[117].mxu1 }
 0x6a5   :  { %v4880_v3 = vmul.f32 %v4786_v14, %v4658_v47 }
 0x6a6   :  { %v4910_v44 = vadd.f32 %v4909_v10, %v4879_v55 }
 0x6a7   :  { %v4662_v6 = vpop.f32.mrb[118].mxu1 }
 0x6a8   :  { %v4911_v8 = vadd.f32 %v4910_v44, %v4880_v3  ;;  %v4881_v61 = vmul.f32 %v4790_v2, %v4662_v6  ;;  %v4664_v1 = vpop.f32.mrb[119].mxu1 }
 0x6a9   :  { %v4882_v22 = vmul.f32 %v4794_v35, %v4664_v1 }
 0x6aa   :  { %v4912_v60 = vadd.f32 %v4911_v8, %v4881_v61 }
 0x6ab   :  { %v4668_v51 = vpop.f32.mrb[120].mxu1 }
 0x6ac   :  { %v4913_v19 = vadd.f32 %v4912_v60, %v4882_v22  ;;  %v4883_v30 = vmul.f32 %v4798_v5, %v4668_v51  ;;  %v4670_v12 = vpop.f32.mrb[121].mxu1 }
 0x6ad   :  { %v4884_v34 = vmul.f32 %v4802_v24, %v4670_v12 }
 0x6ae   :  { %v4914_v39 = vadd.f32 %v4913_v19, %v4883_v30 }
 0x6af   :  { %v4674_v48 = vpop.f32.mrb[122].mxu1 }
 0x6b0   :  { %v4915_v49 = vadd.f32 %v4914_v39, %v4884_v34  ;;  %v4885_v21 = vmul.f32 %v4806_v50, %v4674_v48  ;;  %v4676_v23 = vpop.f32.mrb[123].mxu1 }
 0x6b1   :  { %v4886_v36 = vmul.f32 %v4810_v37, %v4676_v23 }
 0x6b2   :  { %v4916_v25 = vadd.f32 %v4915_v49, %v4885_v21 }
 0x6b3   :  { %v4680_v62 = vpop.f32.mrb[124].mxu1 }
 0x6b4   :  { %v4917_v11 = vadd.f32 %v4916_v25, %v4886_v36  ;;  %v4887_v53 = vmul.f32 %v4814_v58, %v4680_v62  ;;  %v4682_v43 = vpop.f32.mrb[125].mxu1 }
 0x6b5   :  { %v4888_v0 = vmul.f32 %v4818_v13, %v4682_v43 }
 0x6b6   :  { %v4918_v17 = vadd.f32 %v4917_v11, %v4887_v53 }
 0x6b7   :  { %v4686_v18 = vpop.f32.mrb[126].mxu1 }
 0x6b8   :  { %v4919_v9 = vadd.f32 %v4918_v17, %v4888_v0  ;;  %v4889_v54 = vmul.f32 %v4822_v46, %v4686_v18  ;;  %v4688_v27 = vpop.f32.mrb[127].mxu1 }
 0x6b9   :  { %v4890_v28 = vmul.f32 %v4826_v42, %v4688_v27 }
 0x6ba   :  { %v4920_v7 = vadd.f32 %v4919_v9, %v4889_v54 }
 0x6bc   :  { %v4921_v29 = vadd.f32 %v4920_v7, %v4890_v28 }
 0x6be   :  { %4922 = vadd.xlane.f32.xlu0 %v4921_v29 }
 0x74b   :  { %v4923_v33 = vpop.xlane.xlu0 %4922 }
 0x74c   :  { %v4931_v38 = vadd.f32 %v5436_v45, %v4923_v33 }
 0x74e   :  { %4932 = vst [vmem:[%s8268_s12] sm:$0xff] %v4931_v38 }

</bundles_post_ra>
